<compile_context>
chip_gen: v7x
topology: tpu7x:2x2x1
jax: 0.10.0
libtpu: 0.0.40
codegen_flags: <defaults>
</compile_context>

<pallas_src>
import numpy as np
import jax
import jax.numpy as jnp
from jax.experimental import pallas as pl
from jax.experimental.pallas import tpu as pltpu

INPUT_DIM = 4
HIDDEN_DIM = 32
OUTPUT_DIM = 4
N_LAYERS = 2
SEQ_LEN = 8
GATE_BLOCK = 128                 # one full 128-lane block per gate (r | z | n)
GATE_PAD = 3 * GATE_BLOCK        # 384-wide stacked gate dimension
HIDDEN_PAD = 128                 # hidden / input feature dim padded to one lane block
OUT_PAD = 128                    # fc output padded to one lane block


def gru_kernel(x_ref, h0_ref, wih_ref, whh_ref, bgi_ref, bgh_ref,
               wfc_ref, bfc_ref, out_ref, hout_ref, gi0_ref):
    # x_ref   : (SEQ, 128)             layer-0 input, features padded 4 -> 128
    # h0_ref  : (L, 1, 128)            initial hidden, padded 32 -> 128 (pad lanes zero)
    # wih_ref : (L, 128, 384)          input->gate weights, gate blocks [r | z | n]
    # whh_ref : (L, 128, 384)          hidden->gate weights, same block layout
    # bgi_ref : (L, 1, 384)            folded biases [b_ir+b_hr | b_iz+b_hz | b_in]
    # bgh_ref : (L, 1, 384)            hidden-side bias [0 | 0 | b_hn]
    # wfc_ref : (128, 128), bfc_ref : (1, 128)   (first OUTPUT_DIM columns real)
    # out_ref : (1, 128) lane-dense slab; hout_ref : (L, 1, 128) lane-dense
    # gi0_ref : (SEQ, 384) VMEM scratch for layer-0's hoisted input projection
    GB = GATE_BLOCK

    # Hoisted layer-0 input-side projection for ALL time steps: one batched
    # (SEQ,128)@(128,384) matmul, completely off the recurrent chain.  Rows are
    # re-read per step from VMEM scratch (single-sublane vld, hoistable by the
    # scheduler) instead of sublane-extracting from a live vreg value.
    gi0_ref[...] = (jnp.dot(x_ref[...], wih_ref[0],
                            preferred_element_type=jnp.float32) + bgi_ref[0])

    h0 = h0_ref[0]                                    # (1, 128) layer-0 hidden
    h1 = h0_ref[1]                                    # (1, 128) layer-1 hidden

    # Wavefront schedule over the fully-unrolled time loop: layer-1 step t depends
    # only on h0_t (just produced) and h1_{t-1}, so its matmul/EUP/VPU work overlaps
    # layer-0 step t+1's stall bubbles.  All gate slices are whole 128-lane blocks
    # (lane-aligned -> no XLU shuffles on the serial chain).
    for t in range(SEQ_LEN):
        # ---- layer 0, step t (the only work on layer-0's recurrence chain) ----
        gh0 = jnp.dot(h0, whh_ref[0], preferred_element_type=jnp.float32) + bgh_ref[0]
        gi0_t = gi0_ref[pl.ds(t, 1), :]               # (1, 384)
        s0 = gi0_t + gh0
        r0 = jax.nn.sigmoid(s0[:, 0:GB])
        z0 = jax.nn.sigmoid(s0[:, GB:2 * GB])
        n0 = jnp.tanh(gi0_t[:, 2 * GB:3 * GB] + r0 * gh0[:, 2 * GB:3 * GB])
        h0 = (1.0 - z0) * n0 + z0 * h0                # (1, 128)

        # ---- layer-1 input projection for step t: off layer-1's recurrence chain ----
        gi1_t = jnp.dot(h0, wih_ref[1], preferred_element_type=jnp.float32) + bgi_ref[1]

        # ---- layer 1, step t ----
        gh1 = jnp.dot(h1, whh_ref[1], preferred_element_type=jnp.float32) + bgh_ref[1]
        s1 = gi1_t + gh1
        r1 = jax.nn.sigmoid(s1[:, 0:GB])
        z1 = jax.nn.sigmoid(s1[:, GB:2 * GB])
        n1 = jnp.tanh(gi1_t[:, 2 * GB:3 * GB] + r1 * gh1[:, 2 * GB:3 * GB])
        h1 = (1.0 - z1) * n1 + z1 * h1                # (1, 128)
        # TODO(synk): PyTorch applies inter-layer dropout only in train mode; omitted
        # (inference semantics).

    hout_ref[0] = h0                                  # lane-dense (128-wide) stores
    hout_ref[1] = h1

    # out = fc(relu(out[:, -1])) — top-layer hidden at the last time step.
    feat = jnp.maximum(h1, 0.0)                       # (1, 128)
    out_ref[...] = jnp.dot(feat, wfc_ref[...],
                           preferred_element_type=jnp.float32) + bfc_ref[...]


def gru_net_forward(x, h0, packed_params):
    wih, whh, bgi, bgh, wfc, bfc = packed_params
    seq, in_dim = x.shape
    # pad input features and hidden state to one full 128-lane block
    x_pad = jnp.zeros((seq, HIDDEN_PAD), jnp.float32).at[:, :in_dim].set(x)
    h0_pad = jnp.zeros((N_LAYERS, 1, HIDDEN_PAD), jnp.float32).at[:, :, :HIDDEN_DIM].set(h0)

    vmem = pl.BlockSpec(memory_space=pltpu.MemorySpace.VMEM)
    out_pad, h_out_pad = pl.pallas_call(
        gru_kernel,
        out_shape=(jax.ShapeDtypeStruct((1, OUT_PAD), jnp.float32),
                   jax.ShapeDtypeStruct((N_LAYERS, 1, HIDDEN_PAD), jnp.float32)),
        in_specs=[vmem] * 8,
        out_specs=(vmem, vmem),
        scratch_shapes=[pltpu.VMEM((SEQ_LEN, GATE_PAD), jnp.float32)],
    )(x_pad, h0_pad, wih, whh, bgi, bgh, wfc, bfc)
    return out_pad[:, :OUTPUT_DIM], h_out_pad[:, :, :HIDDEN_DIM]


def init_torch_like_params(key):
    """Deterministic parameters with PyTorch's default shapes/init ranges."""
    p = {}
    k = 1.0 / np.sqrt(HIDDEN_DIM)
    keys = iter(jax.random.split(key, 4 * N_LAYERS + 2))

    def uni(kk, shape):
        return jax.random.uniform(kk, shape, jnp.float32, -k, k)

    for l in range(N_LAYERS):
        in_dim = INPUT_DIM if l == 0 else HIDDEN_DIM
        p[f"weight_ih_l{l}"] = uni(next(keys), (3 * HIDDEN_DIM, in_dim))
        p[f"weight_hh_l{l}"] = uni(next(keys), (3 * HIDDEN_DIM, HIDDEN_DIM))
        p[f"bias_ih_l{l}"] = uni(next(keys), (3 * HIDDEN_DIM,))
        p[f"bias_hh_l{l}"] = uni(next(keys), (3 * HIDDEN_DIM,))
    p["fc_weight"] = uni(next(keys), (OUTPUT_DIM, HIDDEN_DIM))
    p["fc_bias"] = uni(next(keys), (OUTPUT_DIM,))
    return p


def pack_params(p):
    """Fuse PyTorch GRU weights into per-layer stacked, transposed gate tensors with
    one 128-lane block per gate (r | z | n), contraction dim zero-padded to 128, and
    biases pre-folded (r/z biases combined into the input side; b_hn kept on gh)."""
    H = HIDDEN_DIM
    GB = GATE_BLOCK
    wih = np.zeros((N_LAYERS, HIDDEN_PAD, GATE_PAD), np.float32)
    whh = np.zeros((N_LAYERS, HIDDEN_PAD, GATE_PAD), np.float32)
    bgi = np.zeros((N_LAYERS, 1, GATE_PAD), np.float32)
    bgh = np.zeros((N_LAYERS, 1, GATE_PAD), np.float32)
    for l in range(N_LAYERS):
        w_ih = np.asarray(p[f"weight_ih_l{l}"])          # (3H, in_dim)
        w_hh = np.asarray(p[f"weight_hh_l{l}"])          # (3H, H)
        b_ih = np.asarray(p[f"bias_ih_l{l}"])            # (3H,)
        b_hh = np.asarray(p[f"bias_hh_l{l}"])            # (3H,)
        in_dim = w_ih.shape[1]
        for g in range(3):                               # gate order: r, z, n
            wih[l, :in_dim, g * GB:g * GB + H] = w_ih[g * H:(g + 1) * H, :].T
            whh[l, :H, g * GB:g * GB + H] = w_hh[g * H:(g + 1) * H, :].T
        # fold: r/z biases fully into the input-side projection; n keeps b_hn on the
        # hidden side because n = tanh(gi_n + b_in + r*(gh_n + b_hn)).
        bgi[l, 0, 0:H] = b_ih[0:H] + b_hh[0:H]
        bgi[l, 0, GB:GB + H] = b_ih[H:2 * H] + b_hh[H:2 * H]
        bgi[l, 0, 2 * GB:2 * GB + H] = b_ih[2 * H:3 * H]
        bgh[l, 0, 2 * GB:2 * GB + H] = b_hh[2 * H:3 * H]
    wfc = np.zeros((HIDDEN_PAD, OUT_PAD), np.float32)
    wfc[:H, :OUTPUT_DIM] = np.asarray(p["fc_weight"]).T  # (H, OUT) in first OUT cols
    bfc = np.zeros((1, OUT_PAD), np.float32)
    bfc[0, :OUTPUT_DIM] = np.asarray(p["fc_bias"])
    return tuple(jnp.asarray(a) for a in (wih, whh, bgi, bgh, wfc, bfc))


def reference_forward(x, h0, p):
    """Float64 NumPy reference reproducing torch.nn.GRU (eval) + Linear head."""
    H = HIDDEN_DIM

    def sigmoid(v):
        return 1.0 / (1.0 + np.exp(-v))

    inp_seq = np.asarray(x, np.float64)
    h = [np.asarray(h0[l, 0], np.float64) for l in range(N_LAYERS)]
    for l in range(N_LAYERS):
        w_ih = np.asarray(p[f"weight_ih_l{l}"], np.float64)
        w_hh = np.asarray(p[f"weight_hh_l{l}"], np.float64)
        b_ih = np.asarray(p[f"bias_ih_l{l}"], np.float64)
        b_hh = np.asarray(p[f"bias_hh_l{l}"], np.float64)
        ht = h[l]
        outs = []
        for t in range(inp_seq.shape[0]):
            gi = w_ih @ inp_seq[t] + b_ih
            gh = w_hh @ ht + b_hh
            r = sigmoid(gi[:H] + gh[:H])
            z = sigmoid(gi[H:2 * H] + gh[H:2 * H])
            n = np.tanh(gi[2 * H:] + r * gh[2 * H:])
            ht = (1.0 - z) * n + z * ht
            outs.append(ht)
        h[l] = ht
        inp_seq = np.stack(outs)
    feat = np.maximum(inp_seq[-1], 0.0)
    out = np.asarray(p["fc_weight"], np.float64) @ feat + np.asarray(p["fc_bias"], np.float64)
    return out[None, :], np.stack(h)[:, None, :]


if __name__ == "__main__":
    key = jax.random.PRNGKey(0)
    kx, kp = jax.random.split(key)
    # forward() sees input of shape (seq, input_dim) and adds a batch dim of 1
    x = jax.random.normal(kx, (SEQ_LEN, INPUT_DIM), jnp.float32)
    h0 = jnp.zeros((N_LAYERS, 1, HIDDEN_DIM), jnp.float32)   # init_hidden(batch_size=1)

    params = init_torch_like_params(kp)
    packed = pack_params(params)

    out, h_out = gru_net_forward(x, h0, packed)
    jax.block_until_ready((out, h_out))

    ref_out, ref_h = reference_forward(np.asarray(x), np.asarray(h0),
                                       {k: np.asarray(v) for k, v in params.items()})
    np.testing.assert_allclose(np.asarray(out), ref_out, rtol=1e-4, atol=2e-5)
    np.testing.assert_allclose(np.asarray(h_out), ref_h, rtol=1e-4, atol=2e-5)

    print("KERNEL_OK")
</pallas_src>

<mosaic_0001>
module attributes {stable_mosaic.version = 11 : i64} {
  func.func @gru_kernel(%arg0: memref<8x128xf32, #tpu.memory_space<vmem>>, %arg1: memref<2x1x128xf32, #tpu.memory_space<vmem>>, %arg2: memref<2x128x384xf32, #tpu.memory_space<vmem>>, %arg3: memref<2x128x384xf32, #tpu.memory_space<vmem>>, %arg4: memref<2x1x384xf32, #tpu.memory_space<vmem>>, %arg5: memref<2x1x384xf32, #tpu.memory_space<vmem>>, %arg6: memref<128x128xf32, #tpu.memory_space<vmem>>, %arg7: memref<1x128xf32, #tpu.memory_space<vmem>>, %arg8: memref<1x128xf32, #tpu.memory_space<vmem>>, %arg9: memref<2x1x128xf32, #tpu.memory_space<vmem>>, %arg10: memref<8x384xf32, #tpu.memory_space<vmem>>) attributes {dimension_semantics = [], scalar_prefetch = 0 : i64, scratch_operands = 1 : i64, tpu.core_type = #tpu.core_type<tc>} {
    %c0 = arith.constant 0 : index
    %c0_0 = arith.constant 0 : index
    %0 = vector.load %arg0[%c0, %c0_0] : memref<8x128xf32, #tpu.memory_space<vmem>>, vector<8x128xf32>
    %c0_1 = arith.constant 0 : index
    %c0_2 = arith.constant 0 : index
    %c0_3 = arith.constant 0 : index
    %1 = vector.load %arg2[%c0_1, %c0_2, %c0_3] : memref<2x128x384xf32, #tpu.memory_space<vmem>>, vector<1x128x384xf32>
    %2 = vector.shape_cast %1 : vector<1x128x384xf32> to vector<128x384xf32>
    %cst = arith.constant dense<0.000000e+00> : vector<8x384xf32>
    %3 = tpu.matmul %0, %2, %cst {dimension_numbers = #tpu.dot_dimension_numbers<[1], [0], [0], [1], [0, 0, 1, 1], [], []>} : vector<8x128xf32>, vector<128x384xf32>, vector<8x384xf32> -> vector<8x384xf32>
    %c0_4 = arith.constant 0 : index
    %c0_5 = arith.constant 0 : index
    %c0_6 = arith.constant 0 : index
    %4 = vector.load %arg4[%c0_4, %c0_5, %c0_6] : memref<2x1x384xf32, #tpu.memory_space<vmem>>, vector<1x1x384xf32>
    %5 = vector.shape_cast %4 : vector<1x1x384xf32> to vector<1x384xf32>
    %6 = vector.broadcast %5 : vector<1x384xf32> to vector<8x384xf32>
    %7 = arith.addf %3, %6 : vector<8x384xf32>
    %c0_7 = arith.constant 0 : index
    %c0_8 = arith.constant 0 : index
    %8 = vector.load %arg10[%c0_7, %c0_8] : memref<8x384xf32, #tpu.memory_space<vmem>>, vector<8x384xf32>
    tpu.vector_store %arg10[%c0_7, %c0_8], %7 {strides = array<i32>} : memref<8x384xf32, #tpu.memory_space<vmem>>, vector<8x384xf32>,
    %c0_9 = arith.constant 0 : index
    %c0_10 = arith.constant 0 : index
    %c0_11 = arith.constant 0 : index
    %9 = vector.load %arg1[%c0_9, %c0_10, %c0_11] : memref<2x1x128xf32, #tpu.memory_space<vmem>>, vector<1x1x128xf32>
    %10 = vector.shape_cast %9 : vector<1x1x128xf32> to vector<1x128xf32>
    %c1 = arith.constant 1 : index
    %c0_12 = arith.constant 0 : index
    %c0_13 = arith.constant 0 : index
    %11 = vector.load %arg1[%c1, %c0_12, %c0_13] : memref<2x1x128xf32, #tpu.memory_space<vmem>>, vector<1x1x128xf32>
    %12 = vector.shape_cast %11 : vector<1x1x128xf32> to vector<1x128xf32>
    %c0_14 = arith.constant 0 : index
    %c0_15 = arith.constant 0 : index
    %c0_16 = arith.constant 0 : index
    %13 = vector.load %arg3[%c0_14, %c0_15, %c0_16] : memref<2x128x384xf32, #tpu.memory_space<vmem>>, vector<1x128x384xf32>
    %14 = vector.shape_cast %13 : vector<1x128x384xf32> to vector<128x384xf32>
    %cst_17 = arith.constant dense<0.000000e+00> : vector<1x384xf32>
    %15 = tpu.matmul %10, %14, %cst_17 {dimension_numbers = #tpu.dot_dimension_numbers<[1], [0], [0], [1], [0, 0, 1, 1], [], []>} : vector<1x128xf32>, vector<128x384xf32>, vector<1x384xf32> -> vector<1x384xf32>
    %c0_18 = arith.constant 0 : index
    %c0_19 = arith.constant 0 : index
    %c0_20 = arith.constant 0 : index
    %16 = vector.load %arg5[%c0_18, %c0_19, %c0_20] : memref<2x1x384xf32, #tpu.memory_space<vmem>>, vector<1x1x384xf32>
    %17 = vector.shape_cast %16 : vector<1x1x384xf32> to vector<1x384xf32>
    %18 = arith.addf %15, %17 : vector<1x384xf32>
    %c0_21 = arith.constant 0 : index
    %c0_22 = arith.constant 0 : index
    %19 = vector.load %arg10[%c0_21, %c0_22] : memref<8x384xf32, #tpu.memory_space<vmem>>, vector<1x384xf32>
    %20 = arith.addf %19, %18 : vector<1x384xf32>
    %21 = vector.extract_strided_slice %20 {offsets = [0, 0], sizes = [1, 128], strides = [1, 1]} : vector<1x384xf32> to vector<1x128xf32>
    %22 = arith.negf %21 : vector<1x128xf32>
    %23 = math.exp %22 : vector<1x128xf32>
    %cst_23 = arith.constant 1.000000e+00 : f32
    %24 = vector.broadcast %cst_23 : f32 to vector<1x128xf32>
    %25 = arith.addf %24, %23 : vector<1x128xf32>
    %26 = arith.divf %24, %25 : vector<1x128xf32>
    %27 = vector.extract_strided_slice %20 {offsets = [0, 128], sizes = [1, 128], strides = [1, 1]} : vector<1x384xf32> to vector<1x128xf32>
    %28 = arith.negf %27 : vector<1x128xf32>
    %29 = math.exp %28 : vector<1x128xf32>
    %cst_24 = arith.constant 1.000000e+00 : f32
    %30 = vector.broadcast %cst_24 : f32 to vector<1x128xf32>
    %31 = arith.addf %30, %29 : vector<1x128xf32>
    %32 = arith.divf %30, %31 : vector<1x128xf32>
    %33 = vector.extract_strided_slice %19 {offsets = [0, 256], sizes = [1, 128], strides = [1, 1]} : vector<1x384xf32> to vector<1x128xf32>
    %34 = vector.extract_strided_slice %18 {offsets = [0, 256], sizes = [1, 128], strides = [1, 1]} : vector<1x384xf32> to vector<1x128xf32>
    %35 = arith.mulf %26, %34 : vector<1x128xf32>
    %36 = arith.addf %33, %35 : vector<1x128xf32>
    %37 = math.tanh %36 : vector<1x128xf32>
    %cst_25 = arith.constant 1.000000e+00 : f32
    %38 = vector.broadcast %cst_25 : f32 to vector<1x128xf32>
    %39 = arith.subf %38, %32 : vector<1x128xf32>
    %40 = arith.mulf %39, %37 : vector<1x128xf32>
    %41 = arith.mulf %32, %10 : vector<1x128xf32>
    %42 = arith.addf %40, %41 : vector<1x128xf32>
    %c1_26 = arith.constant 1 : index
    %c0_27 = arith.constant 0 : index
    %c0_28 = arith.constant 0 : index
    %43 = vector.load %arg2[%c1_26, %c0_27, %c0_28] : memref<2x128x384xf32, #tpu.memory_space<vmem>>, vector<1x128x384xf32>
    %44 = vector.shape_cast %43 : vector<1x128x384xf32> to vector<128x384xf32>
    %cst_29 = arith.constant dense<0.000000e+00> : vector<1x384xf32>
    %45 = tpu.matmul %42, %44, %cst_29 {dimension_numbers = #tpu.dot_dimension_numbers<[1], [0], [0], [1], [0, 0, 1, 1], [], []>} : vector<1x128xf32>, vector<128x384xf32>, vector<1x384xf32> -> vector<1x384xf32>
    %c1_30 = arith.constant 1 : index
    %c0_31 = arith.constant 0 : index
    %c0_32 = arith.constant 0 : index
    %46 = vector.load %arg4[%c1_30, %c0_31, %c0_32] : memref<2x1x384xf32, #tpu.memory_space<vmem>>, vector<1x1x384xf32>
    %47 = vector.shape_cast %46 : vector<1x1x384xf32> to vector<1x384xf32>
    %48 = arith.addf %45, %47 : vector<1x384xf32>
    %c1_33 = arith.constant 1 : index
    %c0_34 = arith.constant 0 : index
    %c0_35 = arith.constant 0 : index
    %49 = vector.load %arg3[%c1_33, %c0_34, %c0_35] : memref<2x128x384xf32, #tpu.memory_space<vmem>>, vector<1x128x384xf32>
    %50 = vector.shape_cast %49 : vector<1x128x384xf32> to vector<128x384xf32>
    %cst_36 = arith.constant dense<0.000000e+00> : vector<1x384xf32>
    %51 = tpu.matmul %12, %50, %cst_36 {dimension_numbers = #tpu.dot_dimension_numbers<[1], [0], [0], [1], [0, 0, 1, 1], [], []>} : vector<1x128xf32>, vector<128x384xf32>, vector<1x384xf32> -> vector<1x384xf32>
    %c1_37 = arith.constant 1 : index
    %c0_38 = arith.constant 0 : index
    %c0_39 = arith.constant 0 : index
    %52 = vector.load %arg5[%c1_37, %c0_38, %c0_39] : memref<2x1x384xf32, #tpu.memory_space<vmem>>, vector<1x1x384xf32>
    %53 = vector.shape_cast %52 : vector<1x1x384xf32> to vector<1x384xf32>
    %54 = arith.addf %51, %53 : vector<1x384xf32>
    %55 = arith.addf %48, %54 : vector<1x384xf32>
    %56 = vector.extract_strided_slice %55 {offsets = [0, 0], sizes = [1, 128], strides = [1, 1]} : vector<1x384xf32> to vector<1x128xf32>
    %57 = arith.negf %56 : vector<1x128xf32>
    %58 = math.exp %57 : vector<1x128xf32>
    %cst_40 = arith.constant 1.000000e+00 : f32
    %59 = vector.broadcast %cst_40 : f32 to vector<1x128xf32>
    %60 = arith.addf %59, %58 : vector<1x128xf32>
    %61 = arith.divf %59, %60 : vector<1x128xf32>
    %62 = vector.extract_strided_slice %55 {offsets = [0, 128], sizes = [1, 128], strides = [1, 1]} : vector<1x384xf32> to vector<1x128xf32>
    %63 = arith.negf %62 : vector<1x128xf32>
    %64 = math.exp %63 : vector<1x128xf32>
    %cst_41 = arith.constant 1.000000e+00 : f32
    %65 = vector.broadcast %cst_41 : f32 to vector<1x128xf32>
    %66 = arith.addf %65, %64 : vector<1x128xf32>
    %67 = arith.divf %65, %66 : vector<1x128xf32>
    %68 = vector.extract_strided_slice %48 {offsets = [0, 256], sizes = [1, 128], strides = [1, 1]} : vector<1x384xf32> to vector<1x128xf32>
    %69 = vector.extract_strided_slice %54 {offsets = [0, 256], sizes = [1, 128], strides = [1, 1]} : vector<1x384xf32> to vector<1x128xf32>
    %70 = arith.mulf %61, %69 : vector<1x128xf32>
    %71 = arith.addf %68, %70 : vector<1x128xf32>
    %72 = math.tanh %71 : vector<1x128xf32>
    %cst_42 = arith.constant 1.000000e+00 : f32
    %73 = vector.broadcast %cst_42 : f32 to vector<1x128xf32>
    %74 = arith.subf %73, %67 : vector<1x128xf32>
    %75 = arith.mulf %74, %72 : vector<1x128xf32>
    %76 = arith.mulf %67, %12 : vector<1x128xf32>
    %77 = arith.addf %75, %76 : vector<1x128xf32>
    %c0_43 = arith.constant 0 : index
    %c0_44 = arith.constant 0 : index
    %c0_45 = arith.constant 0 : index
    %78 = vector.load %arg3[%c0_43, %c0_44, %c0_45] : memref<2x128x384xf32, #tpu.memory_space<vmem>>, vector<1x128x384xf32>
    %79 = vector.shape_cast %78 : vector<1x128x384xf32> to vector<128x384xf32>
    %cst_46 = arith.constant dense<0.000000e+00> : vector<1x384xf32>
    %80 = tpu.matmul %42, %79, %cst_46 {dimension_numbers = #tpu.dot_dimension_numbers<[1], [0], [0], [1], [0, 0, 1, 1], [], []>} : vector<1x128xf32>, vector<128x384xf32>, vector<1x384xf32> -> vector<1x384xf32>
    %c0_47 = arith.constant 0 : index
    %c0_48 = arith.constant 0 : index
    %c0_49 = arith.constant 0 : index
    %81 = vector.load %arg5[%c0_47, %c0_48, %c0_49] : memref<2x1x384xf32, #tpu.memory_space<vmem>>, vector<1x1x384xf32>
    %82 = vector.shape_cast %81 : vector<1x1x384xf32> to vector<1x384xf32>
    %83 = arith.addf %80, %82 : vector<1x384xf32>
    %c1_50 = arith.constant 1 : index
    %c0_51 = arith.constant 0 : index
    %84 = vector.load %arg10[%c1_50, %c0_51] : memref<8x384xf32, #tpu.memory_space<vmem>>, vector<1x384xf32>
    %85 = arith.addf %84, %83 : vector<1x384xf32>
    %86 = vector.extract_strided_slice %85 {offsets = [0, 0], sizes = [1, 128], strides = [1, 1]} : vector<1x384xf32> to vector<1x128xf32>
    %87 = arith.negf %86 : vector<1x128xf32>
    %88 = math.exp %87 : vector<1x128xf32>
    %cst_52 = arith.constant 1.000000e+00 : f32
    %89 = vector.broadcast %cst_52 : f32 to vector<1x128xf32>
    %90 = arith.addf %89, %88 : vector<1x128xf32>
    %91 = arith.divf %89, %90 : vector<1x128xf32>
    %92 = vector.extract_strided_slice %85 {offsets = [0, 128], sizes = [1, 128], strides = [1, 1]} : vector<1x384xf32> to vector<1x128xf32>
    %93 = arith.negf %92 : vector<1x128xf32>
    %94 = math.exp %93 : vector<1x128xf32>
    %cst_53 = arith.constant 1.000000e+00 : f32
    %95 = vector.broadcast %cst_53 : f32 to vector<1x128xf32>
    %96 = arith.addf %95, %94 : vector<1x128xf32>
    %97 = arith.divf %95, %96 : vector<1x128xf32>
    %98 = vector.extract_strided_slice %84 {offsets = [0, 256], sizes = [1, 128], strides = [1, 1]} : vector<1x384xf32> to vector<1x128xf32>
    %99 = vector.extract_strided_slice %83 {offsets = [0, 256], sizes = [1, 128], strides = [1, 1]} : vector<1x384xf32> to vector<1x128xf32>
    %100 = arith.mulf %91, %99 : vector<1x128xf32>
    %101 = arith.addf %98, %100 : vector<1x128xf32>
    %102 = math.tanh %101 : vector<1x128xf32>
    %cst_54 = arith.constant 1.000000e+00 : f32
    %103 = vector.broadcast %cst_54 : f32 to vector<1x128xf32>
    %104 = arith.subf %103, %97 : vector<1x128xf32>
    %105 = arith.mulf %104, %102 : vector<1x128xf32>
    %106 = arith.mulf %97, %42 : vector<1x128xf32>
    %107 = arith.addf %105, %106 : vector<1x128xf32>
    %c1_55 = arith.constant 1 : index
    %c0_56 = arith.constant 0 : index
    %c0_57 = arith.constant 0 : index
    %108 = vector.load %arg2[%c1_55, %c0_56, %c0_57] : memref<2x128x384xf32, #tpu.memory_space<vmem>>, vector<1x128x384xf32>
    %109 = vector.shape_cast %108 : vector<1x128x384xf32> to vector<128x384xf32>
    %cst_58 = arith.constant dense<0.000000e+00> : vector<1x384xf32>
    %110 = tpu.matmul %107, %109, %cst_58 {dimension_numbers = #tpu.dot_dimension_numbers<[1], [0], [0], [1], [0, 0, 1, 1], [], []>} : vector<1x128xf32>, vector<128x384xf32>, vector<1x384xf32> -> vector<1x384xf32>
    %c1_59 = arith.constant 1 : index
    %c0_60 = arith.constant 0 : index
    %c0_61 = arith.constant 0 : index
    %111 = vector.load %arg4[%c1_59, %c0_60, %c0_61] : memref<2x1x384xf32, #tpu.memory_space<vmem>>, vector<1x1x384xf32>
    %112 = vector.shape_cast %111 : vector<1x1x384xf32> to vector<1x384xf32>
    %113 = arith.addf %110, %112 : vector<1x384xf32>
    %c1_62 = arith.constant 1 : index
    %c0_63 = arith.constant 0 : index
    %c0_64 = arith.constant 0 : index
    %114 = vector.load %arg3[%c1_62, %c0_63, %c0_64] : memref<2x128x384xf32, #tpu.memory_space<vmem>>, vector<1x128x384xf32>
    %115 = vector.shape_cast %114 : vector<1x128x384xf32> to vector<128x384xf32>
    %cst_65 = arith.constant dense<0.000000e+00> : vector<1x384xf32>
    %116 = tpu.matmul %77, %115, %cst_65 {dimension_numbers = #tpu.dot_dimension_numbers<[1], [0], [0], [1], [0, 0, 1, 1], [], []>} : vector<1x128xf32>, vector<128x384xf32>, vector<1x384xf32> -> vector<1x384xf32>
    %c1_66 = arith.constant 1 : index
    %c0_67 = arith.constant 0 : index
    %c0_68 = arith.constant 0 : index
    %117 = vector.load %arg5[%c1_66, %c0_67, %c0_68] : memref<2x1x384xf32, #tpu.memory_space<vmem>>, vector<1x1x384xf32>
    %118 = vector.shape_cast %117 : vector<1x1x384xf32> to vector<1x384xf32>
    %119 = arith.addf %116, %118 : vector<1x384xf32>
    %120 = arith.addf %113, %119 : vector<1x384xf32>
    %121 = vector.extract_strided_slice %120 {offsets = [0, 0], sizes = [1, 128], strides = [1, 1]} : vector<1x384xf32> to vector<1x128xf32>
    %122 = arith.negf %121 : vector<1x128xf32>
    %123 = math.exp %122 : vector<1x128xf32>
    %cst_69 = arith.constant 1.000000e+00 : f32
    %124 = vector.broadcast %cst_69 : f32 to vector<1x128xf32>
    %125 = arith.addf %124, %123 : vector<1x128xf32>
    %126 = arith.divf %124, %125 : vector<1x128xf32>
    %127 = vector.extract_strided_slice %120 {offsets = [0, 128], sizes = [1, 128], strides = [1, 1]} : vector<1x384xf32> to vector<1x128xf32>
    %128 = arith.negf %127 : vector<1x128xf32>
    %129 = math.exp %128 : vector<1x128xf32>
    %cst_70 = arith.constant 1.000000e+00 : f32
    %130 = vector.broadcast %cst_70 : f32 to vector<1x128xf32>
    %131 = arith.addf %130, %129 : vector<1x128xf32>
    %132 = arith.divf %130, %131 : vector<1x128xf32>
    %133 = vector.extract_strided_slice %113 {offsets = [0, 256], sizes = [1, 128], strides = [1, 1]} : vector<1x384xf32> to vector<1x128xf32>
    %134 = vector.extract_strided_slice %119 {offsets = [0, 256], sizes = [1, 128], strides = [1, 1]} : vector<1x384xf32> to vector<1x128xf32>
    %135 = arith.mulf %126, %134 : vector<1x128xf32>
    %136 = arith.addf %133, %135 : vector<1x128xf32>
    %137 = math.tanh %136 : vector<1x128xf32>
    %cst_71 = arith.constant 1.000000e+00 : f32
    %138 = vector.broadcast %cst_71 : f32 to vector<1x128xf32>
    %139 = arith.subf %138, %132 : vector<1x128xf32>
    %140 = arith.mulf %139, %137 : vector<1x128xf32>
    %141 = arith.mulf %132, %77 : vector<1x128xf32>
    %142 = arith.addf %140, %141 : vector<1x128xf32>
    %c0_72 = arith.constant 0 : index
    %c0_73 = arith.constant 0 : index
    %c0_74 = arith.constant 0 : index
    %143 = vector.load %arg3[%c0_72, %c0_73, %c0_74] : memref<2x128x384xf32, #tpu.memory_space<vmem>>, vector<1x128x384xf32>
    %144 = vector.shape_cast %143 : vector<1x128x384xf32> to vector<128x384xf32>
    %cst_75 = arith.constant dense<0.000000e+00> : vector<1x384xf32>
    %145 = tpu.matmul %107, %144, %cst_75 {dimension_numbers = #tpu.dot_dimension_numbers<[1], [0], [0], [1], [0, 0, 1, 1], [], []>} : vector<1x128xf32>, vector<128x384xf32>, vector<1x384xf32> -> vector<1x384xf32>
    %c0_76 = arith.constant 0 : index
    %c0_77 = arith.constant 0 : index
    %c0_78 = arith.constant 0 : index
    %146 = vector.load %arg5[%c0_76, %c0_77, %c0_78] : memref<2x1x384xf32, #tpu.memory_space<vmem>>, vector<1x1x384xf32>
    %147 = vector.shape_cast %146 : vector<1x1x384xf32> to vector<1x384xf32>
    %148 = arith.addf %145, %147 : vector<1x384xf32>
    %c2 = arith.constant 2 : index
    %c0_79 = arith.constant 0 : index
    %149 = vector.load %arg10[%c2, %c0_79] : memref<8x384xf32, #tpu.memory_space<vmem>>, vector<1x384xf32>
    %150 = arith.addf %149, %148 : vector<1x384xf32>
    %151 = vector.extract_strided_slice %150 {offsets = [0, 0], sizes = [1, 128], strides = [1, 1]} : vector<1x384xf32> to vector<1x128xf32>
    %152 = arith.negf %151 : vector<1x128xf32>
    %153 = math.exp %152 : vector<1x128xf32>
    %cst_80 = arith.constant 1.000000e+00 : f32
    %154 = vector.broadcast %cst_80 : f32 to vector<1x128xf32>
    %155 = arith.addf %154, %153 : vector<1x128xf32>
    %156 = arith.divf %154, %155 : vector<1x128xf32>
    %157 = vector.extract_strided_slice %150 {offsets = [0, 128], sizes = [1, 128], strides = [1, 1]} : vector<1x384xf32> to vector<1x128xf32>
    %158 = arith.negf %157 : vector<1x128xf32>
    %159 = math.exp %158 : vector<1x128xf32>
    %cst_81 = arith.constant 1.000000e+00 : f32
    %160 = vector.broadcast %cst_81 : f32 to vector<1x128xf32>
    %161 = arith.addf %160, %159 : vector<1x128xf32>
    %162 = arith.divf %160, %161 : vector<1x128xf32>
    %163 = vector.extract_strided_slice %149 {offsets = [0, 256], sizes = [1, 128], strides = [1, 1]} : vector<1x384xf32> to vector<1x128xf32>
    %164 = vector.extract_strided_slice %148 {offsets = [0, 256], sizes = [1, 128], strides = [1, 1]} : vector<1x384xf32> to vector<1x128xf32>
    %165 = arith.mulf %156, %164 : vector<1x128xf32>
    %166 = arith.addf %163, %165 : vector<1x128xf32>
    %167 = math.tanh %166 : vector<1x128xf32>
    %cst_82 = arith.constant 1.000000e+00 : f32
    %168 = vector.broadcast %cst_82 : f32 to vector<1x128xf32>
    %169 = arith.subf %168, %162 : vector<1x128xf32>
    %170 = arith.mulf %169, %167 : vector<1x128xf32>
    %171 = arith.mulf %162, %107 : vector<1x128xf32>
    %172 = arith.addf %170, %171 : vector<1x128xf32>
    %c1_83 = arith.constant 1 : index
    %c0_84 = arith.constant 0 : index
    %c0_85 = arith.constant 0 : index
    %173 = vector.load %arg2[%c1_83, %c0_84, %c0_85] : memref<2x128x384xf32, #tpu.memory_space<vmem>>, vector<1x128x384xf32>
    %174 = vector.shape_cast %173 : vector<1x128x384xf32> to vector<128x384xf32>
    %cst_86 = arith.constant dense<0.000000e+00> : vector<1x384xf32>
    %175 = tpu.matmul %172, %174, %cst_86 {dimension_numbers = #tpu.dot_dimension_numbers<[1], [0], [0], [1], [0, 0, 1, 1], [], []>} : vector<1x128xf32>, vector<128x384xf32>, vector<1x384xf32> -> vector<1x384xf32>
    %c1_87 = arith.constant 1 : index
    %c0_88 = arith.constant 0 : index
    %c0_89 = arith.constant 0 : index
    %176 = vector.load %arg4[%c1_87, %c0_88, %c0_89] : memref<2x1x384xf32, #tpu.memory_space<vmem>>, vector<1x1x384xf32>
    %177 = vector.shape_cast %176 : vector<1x1x384xf32> to vector<1x384xf32>
    %178 = arith.addf %175, %177 : vector<1x384xf32>
    %c1_90 = arith.constant 1 : index
    %c0_91 = arith.constant 0 : index
    %c0_92 = arith.constant 0 : index
    %179 = vector.load %arg3[%c1_90, %c0_91, %c0_92] : memref<2x128x384xf32, #tpu.memory_space<vmem>>, vector<1x128x384xf32>
    %180 = vector.shape_cast %179 : vector<1x128x384xf32> to vector<128x384xf32>
    %cst_93 = arith.constant dense<0.000000e+00> : vector<1x384xf32>
    %181 = tpu.matmul %142, %180, %cst_93 {dimension_numbers = #tpu.dot_dimension_numbers<[1], [0], [0], [1], [0, 0, 1, 1], [], []>} : vector<1x128xf32>, vector<128x384xf32>, vector<1x384xf32> -> vector<1x384xf32>
    %c1_94 = arith.constant 1 : index
    %c0_95 = arith.constant 0 : index
    %c0_96 = arith.constant 0 : index
    %182 = vector.load %arg5[%c1_94, %c0_95, %c0_96] : memref<2x1x384xf32, #tpu.memory_space<vmem>>, vector<1x1x384xf32>
    %183 = vector.shape_cast %182 : vector<1x1x384xf32> to vector<1x384xf32>
    %184 = arith.addf %181, %183 : vector<1x384xf32>
    %185 = arith.addf %178, %184 : vector<1x384xf32>
    %186 = vector.extract_strided_slice %185 {offsets = [0, 0], sizes = [1, 128], strides = [1, 1]} : vector<1x384xf32> to vector<1x128xf32>
    %187 = arith.negf %186 : vector<1x128xf32>
    %188 = math.exp %187 : vector<1x128xf32>
    %cst_97 = arith.constant 1.000000e+00 : f32
    %189 = vector.broadcast %cst_97 : f32 to vector<1x128xf32>
    %190 = arith.addf %189, %188 : vector<1x128xf32>
    %191 = arith.divf %189, %190 : vector<1x128xf32>
    %192 = vector.extract_strided_slice %185 {offsets = [0, 128], sizes = [1, 128], strides = [1, 1]} : vector<1x384xf32> to vector<1x128xf32>
    %193 = arith.negf %192 : vector<1x128xf32>
    %194 = math.exp %193 : vector<1x128xf32>
    %cst_98 = arith.constant 1.000000e+00 : f32
    %195 = vector.broadcast %cst_98 : f32 to vector<1x128xf32>
    %196 = arith.addf %195, %194 : vector<1x128xf32>
    %197 = arith.divf %195, %196 : vector<1x128xf32>
    %198 = vector.extract_strided_slice %178 {offsets = [0, 256], sizes = [1, 128], strides = [1, 1]} : vector<1x384xf32> to vector<1x128xf32>
    %199 = vector.extract_strided_slice %184 {offsets = [0, 256], sizes = [1, 128], strides = [1, 1]} : vector<1x384xf32> to vector<1x128xf32>
    %200 = arith.mulf %191, %199 : vector<1x128xf32>
    %201 = arith.addf %198, %200 : vector<1x128xf32>
    %202 = math.tanh %201 : vector<1x128xf32>
    %cst_99 = arith.constant 1.000000e+00 : f32
    %203 = vector.broadcast %cst_99 : f32 to vector<1x128xf32>
    %204 = arith.subf %203, %197 : vector<1x128xf32>
    %205 = arith.mulf %204, %202 : vector<1x128xf32>
    %206 = arith.mulf %197, %142 : vector<1x128xf32>
    %207 = arith.addf %205, %206 : vector<1x128xf32>
    %c0_100 = arith.constant 0 : index
    %c0_101 = arith.constant 0 : index
    %c0_102 = arith.constant 0 : index
    %208 = vector.load %arg3[%c0_100, %c0_101, %c0_102] : memref<2x128x384xf32, #tpu.memory_space<vmem>>, vector<1x128x384xf32>
    %209 = vector.shape_cast %208 : vector<1x128x384xf32> to vector<128x384xf32>
    %cst_103 = arith.constant dense<0.000000e+00> : vector<1x384xf32>
    %210 = tpu.matmul %172, %209, %cst_103 {dimension_numbers = #tpu.dot_dimension_numbers<[1], [0], [0], [1], [0, 0, 1, 1], [], []>} : vector<1x128xf32>, vector<128x384xf32>, vector<1x384xf32> -> vector<1x384xf32>
    %c0_104 = arith.constant 0 : index
    %c0_105 = arith.constant 0 : index
    %c0_106 = arith.constant 0 : index
    %211 = vector.load %arg5[%c0_104, %c0_105, %c0_106] : memref<2x1x384xf32, #tpu.memory_space<vmem>>, vector<1x1x384xf32>
    %212 = vector.shape_cast %211 : vector<1x1x384xf32> to vector<1x384xf32>
    %213 = arith.addf %210, %212 : vector<1x384xf32>
    %c3 = arith.constant 3 : index
    %c0_107 = arith.constant 0 : index
    %214 = vector.load %arg10[%c3, %c0_107] : memref<8x384xf32, #tpu.memory_space<vmem>>, vector<1x384xf32>
    %215 = arith.addf %214, %213 : vector<1x384xf32>
    %216 = vector.extract_strided_slice %215 {offsets = [0, 0], sizes = [1, 128], strides = [1, 1]} : vector<1x384xf32> to vector<1x128xf32>
    %217 = arith.negf %216 : vector<1x128xf32>
    %218 = math.exp %217 : vector<1x128xf32>
    %cst_108 = arith.constant 1.000000e+00 : f32
    %219 = vector.broadcast %cst_108 : f32 to vector<1x128xf32>
    %220 = arith.addf %219, %218 : vector<1x128xf32>
    %221 = arith.divf %219, %220 : vector<1x128xf32>
    %222 = vector.extract_strided_slice %215 {offsets = [0, 128], sizes = [1, 128], strides = [1, 1]} : vector<1x384xf32> to vector<1x128xf32>
    %223 = arith.negf %222 : vector<1x128xf32>
    %224 = math.exp %223 : vector<1x128xf32>
    %cst_109 = arith.constant 1.000000e+00 : f32
    %225 = vector.broadcast %cst_109 : f32 to vector<1x128xf32>
    %226 = arith.addf %225, %224 : vector<1x128xf32>
    %227 = arith.divf %225, %226 : vector<1x128xf32>
    %228 = vector.extract_strided_slice %214 {offsets = [0, 256], sizes = [1, 128], strides = [1, 1]} : vector<1x384xf32> to vector<1x128xf32>
    %229 = vector.extract_strided_slice %213 {offsets = [0, 256], sizes = [1, 128], strides = [1, 1]} : vector<1x384xf32> to vector<1x128xf32>
    %230 = arith.mulf %221, %229 : vector<1x128xf32>
    %231 = arith.addf %228, %230 : vector<1x128xf32>
    %232 = math.tanh %231 : vector<1x128xf32>
    %cst_110 = arith.constant 1.000000e+00 : f32
    %233 = vector.broadcast %cst_110 : f32 to vector<1x128xf32>
    %234 = arith.subf %233, %227 : vector<1x128xf32>
    %235 = arith.mulf %234, %232 : vector<1x128xf32>
    %236 = arith.mulf %227, %172 : vector<1x128xf32>
    %237 = arith.addf %235, %236 : vector<1x128xf32>
    %c1_111 = arith.constant 1 : index
    %c0_112 = arith.constant 0 : index
    %c0_113 = arith.constant 0 : index
    %238 = vector.load %arg2[%c1_111, %c0_112, %c0_113] : memref<2x128x384xf32, #tpu.memory_space<vmem>>, vector<1x128x384xf32>
    %239 = vector.shape_cast %238 : vector<1x128x384xf32> to vector<128x384xf32>
    %cst_114 = arith.constant dense<0.000000e+00> : vector<1x384xf32>
    %240 = tpu.matmul %237, %239, %cst_114 {dimension_numbers = #tpu.dot_dimension_numbers<[1], [0], [0], [1], [0, 0, 1, 1], [], []>} : vector<1x128xf32>, vector<128x384xf32>, vector<1x384xf32> -> vector<1x384xf32>
    %c1_115 = arith.constant 1 : index
    %c0_116 = arith.constant 0 : index
    %c0_117 = arith.constant 0 : index
    %241 = vector.load %arg4[%c1_115, %c0_116, %c0_117] : memref<2x1x384xf32, #tpu.memory_space<vmem>>, vector<1x1x384xf32>
    %242 = vector.shape_cast %241 : vector<1x1x384xf32> to vector<1x384xf32>
    %243 = arith.addf %240, %242 : vector<1x384xf32>
    %c1_118 = arith.constant 1 : index
    %c0_119 = arith.constant 0 : index
    %c0_120 = arith.constant 0 : index
    %244 = vector.load %arg3[%c1_118, %c0_119, %c0_120] : memref<2x128x384xf32, #tpu.memory_space<vmem>>, vector<1x128x384xf32>
    %245 = vector.shape_cast %244 : vector<1x128x384xf32> to vector<128x384xf32>
    %cst_121 = arith.constant dense<0.000000e+00> : vector<1x384xf32>
    %246 = tpu.matmul %207, %245, %cst_121 {dimension_numbers = #tpu.dot_dimension_numbers<[1], [0], [0], [1], [0, 0, 1, 1], [], []>} : vector<1x128xf32>, vector<128x384xf32>, vector<1x384xf32> -> vector<1x384xf32>
    %c1_122 = arith.constant 1 : index
    %c0_123 = arith.constant 0 : index
    %c0_124 = arith.constant 0 : index
    %247 = vector.load %arg5[%c1_122, %c0_123, %c0_124] : memref<2x1x384xf32, #tpu.memory_space<vmem>>, vector<1x1x384xf32>
    %248 = vector.shape_cast %247 : vector<1x1x384xf32> to vector<1x384xf32>
    %249 = arith.addf %246, %248 : vector<1x384xf32>
    %250 = arith.addf %243, %249 : vector<1x384xf32>
    %251 = vector.extract_strided_slice %250 {offsets = [0, 0], sizes = [1, 128], strides = [1, 1]} : vector<1x384xf32> to vector<1x128xf32>
    %252 = arith.negf %251 : vector<1x128xf32>
    %253 = math.exp %252 : vector<1x128xf32>
    %cst_125 = arith.constant 1.000000e+00 : f32
    %254 = vector.broadcast %cst_125 : f32 to vector<1x128xf32>
    %255 = arith.addf %254, %253 : vector<1x128xf32>
    %256 = arith.divf %254, %255 : vector<1x128xf32>
    %257 = vector.extract_strided_slice %250 {offsets = [0, 128], sizes = [1, 128], strides = [1, 1]} : vector<1x384xf32> to vector<1x128xf32>
    %258 = arith.negf %257 : vector<1x128xf32>
    %259 = math.exp %258 : vector<1x128xf32>
    %cst_126 = arith.constant 1.000000e+00 : f32
    %260 = vector.broadcast %cst_126 : f32 to vector<1x128xf32>
    %261 = arith.addf %260, %259 : vector<1x128xf32>
    %262 = arith.divf %260, %261 : vector<1x128xf32>
    %263 = vector.extract_strided_slice %243 {offsets = [0, 256], sizes = [1, 128], strides = [1, 1]} : vector<1x384xf32> to vector<1x128xf32>
    %264 = vector.extract_strided_slice %249 {offsets = [0, 256], sizes = [1, 128], strides = [1, 1]} : vector<1x384xf32> to vector<1x128xf32>
    %265 = arith.mulf %256, %264 : vector<1x128xf32>
    %266 = arith.addf %263, %265 : vector<1x128xf32>
    %267 = math.tanh %266 : vector<1x128xf32>
    %cst_127 = arith.constant 1.000000e+00 : f32
    %268 = vector.broadcast %cst_127 : f32 to vector<1x128xf32>
    %269 = arith.subf %268, %262 : vector<1x128xf32>
    %270 = arith.mulf %269, %267 : vector<1x128xf32>
    %271 = arith.mulf %262, %207 : vector<1x128xf32>
    %272 = arith.addf %270, %271 : vector<1x128xf32>
    %c0_128 = arith.constant 0 : index
    %c0_129 = arith.constant 0 : index
    %c0_130 = arith.constant 0 : index
    %273 = vector.load %arg3[%c0_128, %c0_129, %c0_130] : memref<2x128x384xf32, #tpu.memory_space<vmem>>, vector<1x128x384xf32>
    %274 = vector.shape_cast %273 : vector<1x128x384xf32> to vector<128x384xf32>
    %cst_131 = arith.constant dense<0.000000e+00> : vector<1x384xf32>
    %275 = tpu.matmul %237, %274, %cst_131 {dimension_numbers = #tpu.dot_dimension_numbers<[1], [0], [0], [1], [0, 0, 1, 1], [], []>} : vector<1x128xf32>, vector<128x384xf32>, vector<1x384xf32> -> vector<1x384xf32>
    %c0_132 = arith.constant 0 : index
    %c0_133 = arith.constant 0 : index
    %c0_134 = arith.constant 0 : index
    %276 = vector.load %arg5[%c0_132, %c0_133, %c0_134] : memref<2x1x384xf32, #tpu.memory_space<vmem>>, vector<1x1x384xf32>
    %277 = vector.shape_cast %276 : vector<1x1x384xf32> to vector<1x384xf32>
    %278 = arith.addf %275, %277 : vector<1x384xf32>
    %c4 = arith.constant 4 : index
    %c0_135 = arith.constant 0 : index
    %279 = vector.load %arg10[%c4, %c0_135] : memref<8x384xf32, #tpu.memory_space<vmem>>, vector<1x384xf32>
    %280 = arith.addf %279, %278 : vector<1x384xf32>
    %281 = vector.extract_strided_slice %280 {offsets = [0, 0], sizes = [1, 128], strides = [1, 1]} : vector<1x384xf32> to vector<1x128xf32>
    %282 = arith.negf %281 : vector<1x128xf32>
    %283 = math.exp %282 : vector<1x128xf32>
    %cst_136 = arith.constant 1.000000e+00 : f32
    %284 = vector.broadcast %cst_136 : f32 to vector<1x128xf32>
    %285 = arith.addf %284, %283 : vector<1x128xf32>
    %286 = arith.divf %284, %285 : vector<1x128xf32>
    %287 = vector.extract_strided_slice %280 {offsets = [0, 128], sizes = [1, 128], strides = [1, 1]} : vector<1x384xf32> to vector<1x128xf32>
    %288 = arith.negf %287 : vector<1x128xf32>
    %289 = math.exp %288 : vector<1x128xf32>
    %cst_137 = arith.constant 1.000000e+00 : f32
    %290 = vector.broadcast %cst_137 : f32 to vector<1x128xf32>
    %291 = arith.addf %290, %289 : vector<1x128xf32>
    %292 = arith.divf %290, %291 : vector<1x128xf32>
    %293 = vector.extract_strided_slice %279 {offsets = [0, 256], sizes = [1, 128], strides = [1, 1]} : vector<1x384xf32> to vector<1x128xf32>
    %294 = vector.extract_strided_slice %278 {offsets = [0, 256], sizes = [1, 128], strides = [1, 1]} : vector<1x384xf32> to vector<1x128xf32>
    %295 = arith.mulf %286, %294 : vector<1x128xf32>
    %296 = arith.addf %293, %295 : vector<1x128xf32>
    %297 = math.tanh %296 : vector<1x128xf32>
    %cst_138 = arith.constant 1.000000e+00 : f32
    %298 = vector.broadcast %cst_138 : f32 to vector<1x128xf32>
    %299 = arith.subf %298, %292 : vector<1x128xf32>
    %300 = arith.mulf %299, %297 : vector<1x128xf32>
    %301 = arith.mulf %292, %237 : vector<1x128xf32>
    %302 = arith.addf %300, %301 : vector<1x128xf32>
    %c1_139 = arith.constant 1 : index
    %c0_140 = arith.constant 0 : index
    %c0_141 = arith.constant 0 : index
    %303 = vector.load %arg2[%c1_139, %c0_140, %c0_141] : memref<2x128x384xf32, #tpu.memory_space<vmem>>, vector<1x128x384xf32>
    %304 = vector.shape_cast %303 : vector<1x128x384xf32> to vector<128x384xf32>
    %cst_142 = arith.constant dense<0.000000e+00> : vector<1x384xf32>
    %305 = tpu.matmul %302, %304, %cst_142 {dimension_numbers = #tpu.dot_dimension_numbers<[1], [0], [0], [1], [0, 0, 1, 1], [], []>} : vector<1x128xf32>, vector<128x384xf32>, vector<1x384xf32> -> vector<1x384xf32>
    %c1_143 = arith.constant 1 : index
    %c0_144 = arith.constant 0 : index
    %c0_145 = arith.constant 0 : index
    %306 = vector.load %arg4[%c1_143, %c0_144, %c0_145] : memref<2x1x384xf32, #tpu.memory_space<vmem>>, vector<1x1x384xf32>
    %307 = vector.shape_cast %306 : vector<1x1x384xf32> to vector<1x384xf32>
    %308 = arith.addf %305, %307 : vector<1x384xf32>
    %c1_146 = arith.constant 1 : index
    %c0_147 = arith.constant 0 : index
    %c0_148 = arith.constant 0 : index
    %309 = vector.load %arg3[%c1_146, %c0_147, %c0_148] : memref<2x128x384xf32, #tpu.memory_space<vmem>>, vector<1x128x384xf32>
    %310 = vector.shape_cast %309 : vector<1x128x384xf32> to vector<128x384xf32>
    %cst_149 = arith.constant dense<0.000000e+00> : vector<1x384xf32>
    %311 = tpu.matmul %272, %310, %cst_149 {dimension_numbers = #tpu.dot_dimension_numbers<[1], [0], [0], [1], [0, 0, 1, 1], [], []>} : vector<1x128xf32>, vector<128x384xf32>, vector<1x384xf32> -> vector<1x384xf32>
    %c1_150 = arith.constant 1 : index
    %c0_151 = arith.constant 0 : index
    %c0_152 = arith.constant 0 : index
    %312 = vector.load %arg5[%c1_150, %c0_151, %c0_152] : memref<2x1x384xf32, #tpu.memory_space<vmem>>, vector<1x1x384xf32>
    %313 = vector.shape_cast %312 : vector<1x1x384xf32> to vector<1x384xf32>
    %314 = arith.addf %311, %313 : vector<1x384xf32>
    %315 = arith.addf %308, %314 : vector<1x384xf32>
    %316 = vector.extract_strided_slice %315 {offsets = [0, 0], sizes = [1, 128], strides = [1, 1]} : vector<1x384xf32> to vector<1x128xf32>
    %317 = arith.negf %316 : vector<1x128xf32>
    %318 = math.exp %317 : vector<1x128xf32>
    %cst_153 = arith.constant 1.000000e+00 : f32
    %319 = vector.broadcast %cst_153 : f32 to vector<1x128xf32>
    %320 = arith.addf %319, %318 : vector<1x128xf32>
    %321 = arith.divf %319, %320 : vector<1x128xf32>
    %322 = vector.extract_strided_slice %315 {offsets = [0, 128], sizes = [1, 128], strides = [1, 1]} : vector<1x384xf32> to vector<1x128xf32>
    %323 = arith.negf %322 : vector<1x128xf32>
    %324 = math.exp %323 : vector<1x128xf32>
    %cst_154 = arith.constant 1.000000e+00 : f32
    %325 = vector.broadcast %cst_154 : f32 to vector<1x128xf32>
    %326 = arith.addf %325, %324 : vector<1x128xf32>
    %327 = arith.divf %325, %326 : vector<1x128xf32>
    %328 = vector.extract_strided_slice %308 {offsets = [0, 256], sizes = [1, 128], strides = [1, 1]} : vector<1x384xf32> to vector<1x128xf32>
    %329 = vector.extract_strided_slice %314 {offsets = [0, 256], sizes = [1, 128], strides = [1, 1]} : vector<1x384xf32> to vector<1x128xf32>
    %330 = arith.mulf %321, %329 : vector<1x128xf32>
    %331 = arith.addf %328, %330 : vector<1x128xf32>
    %332 = math.tanh %331 : vector<1x128xf32>
    %cst_155 = arith.constant 1.000000e+00 : f32
    %333 = vector.broadcast %cst_155 : f32 to vector<1x128xf32>
    %334 = arith.subf %333, %327 : vector<1x128xf32>
    %335 = arith.mulf %334, %332 : vector<1x128xf32>
    %336 = arith.mulf %327, %272 : vector<1x128xf32>
    %337 = arith.addf %335, %336 : vector<1x128xf32>
    %c0_156 = arith.constant 0 : index
    %c0_157 = arith.constant 0 : index
    %c0_158 = arith.constant 0 : index
    %338 = vector.load %arg3[%c0_156, %c0_157, %c0_158] : memref<2x128x384xf32, #tpu.memory_space<vmem>>, vector<1x128x384xf32>
    %339 = vector.shape_cast %338 : vector<1x128x384xf32> to vector<128x384xf32>
    %cst_159 = arith.constant dense<0.000000e+00> : vector<1x384xf32>
    %340 = tpu.matmul %302, %339, %cst_159 {dimension_numbers = #tpu.dot_dimension_numbers<[1], [0], [0], [1], [0, 0, 1, 1], [], []>} : vector<1x128xf32>, vector<128x384xf32>, vector<1x384xf32> -> vector<1x384xf32>
    %c0_160 = arith.constant 0 : index
    %c0_161 = arith.constant 0 : index
    %c0_162 = arith.constant 0 : index
    %341 = vector.load %arg5[%c0_160, %c0_161, %c0_162] : memref<2x1x384xf32, #tpu.memory_space<vmem>>, vector<1x1x384xf32>
    %342 = vector.shape_cast %341 : vector<1x1x384xf32> to vector<1x384xf32>
    %343 = arith.addf %340, %342 : vector<1x384xf32>
    %c5 = arith.constant 5 : index
    %c0_163 = arith.constant 0 : index
    %344 = vector.load %arg10[%c5, %c0_163] : memref<8x384xf32, #tpu.memory_space<vmem>>, vector<1x384xf32>
    %345 = arith.addf %344, %343 : vector<1x384xf32>
    %346 = vector.extract_strided_slice %345 {offsets = [0, 0], sizes = [1, 128], strides = [1, 1]} : vector<1x384xf32> to vector<1x128xf32>
    %347 = arith.negf %346 : vector<1x128xf32>
    %348 = math.exp %347 : vector<1x128xf32>
    %cst_164 = arith.constant 1.000000e+00 : f32
    %349 = vector.broadcast %cst_164 : f32 to vector<1x128xf32>
    %350 = arith.addf %349, %348 : vector<1x128xf32>
    %351 = arith.divf %349, %350 : vector<1x128xf32>
    %352 = vector.extract_strided_slice %345 {offsets = [0, 128], sizes = [1, 128], strides = [1, 1]} : vector<1x384xf32> to vector<1x128xf32>
    %353 = arith.negf %352 : vector<1x128xf32>
    %354 = math.exp %353 : vector<1x128xf32>
    %cst_165 = arith.constant 1.000000e+00 : f32
    %355 = vector.broadcast %cst_165 : f32 to vector<1x128xf32>
    %356 = arith.addf %355, %354 : vector<1x128xf32>
    %357 = arith.divf %355, %356 : vector<1x128xf32>
    %358 = vector.extract_strided_slice %344 {offsets = [0, 256], sizes = [1, 128], strides = [1, 1]} : vector<1x384xf32> to vector<1x128xf32>
    %359 = vector.extract_strided_slice %343 {offsets = [0, 256], sizes = [1, 128], strides = [1, 1]} : vector<1x384xf32> to vector<1x128xf32>
    %360 = arith.mulf %351, %359 : vector<1x128xf32>
    %361 = arith.addf %358, %360 : vector<1x128xf32>
    %362 = math.tanh %361 : vector<1x128xf32>
    %cst_166 = arith.constant 1.000000e+00 : f32
    %363 = vector.broadcast %cst_166 : f32 to vector<1x128xf32>
    %364 = arith.subf %363, %357 : vector<1x128xf32>
    %365 = arith.mulf %364, %362 : vector<1x128xf32>
    %366 = arith.mulf %357, %302 : vector<1x128xf32>
    %367 = arith.addf %365, %366 : vector<1x128xf32>
    %c1_167 = arith.constant 1 : index
    %c0_168 = arith.constant 0 : index
    %c0_169 = arith.constant 0 : index
    %368 = vector.load %arg2[%c1_167, %c0_168, %c0_169] : memref<2x128x384xf32, #tpu.memory_space<vmem>>, vector<1x128x384xf32>
    %369 = vector.shape_cast %368 : vector<1x128x384xf32> to vector<128x384xf32>
    %cst_170 = arith.constant dense<0.000000e+00> : vector<1x384xf32>
    %370 = tpu.matmul %367, %369, %cst_170 {dimension_numbers = #tpu.dot_dimension_numbers<[1], [0], [0], [1], [0, 0, 1, 1], [], []>} : vector<1x128xf32>, vector<128x384xf32>, vector<1x384xf32> -> vector<1x384xf32>
    %c1_171 = arith.constant 1 : index
    %c0_172 = arith.constant 0 : index
    %c0_173 = arith.constant 0 : index
    %371 = vector.load %arg4[%c1_171, %c0_172, %c0_173] : memref<2x1x384xf32, #tpu.memory_space<vmem>>, vector<1x1x384xf32>
    %372 = vector.shape_cast %371 : vector<1x1x384xf32> to vector<1x384xf32>
    %373 = arith.addf %370, %372 : vector<1x384xf32>
    %c1_174 = arith.constant 1 : index
    %c0_175 = arith.constant 0 : index
    %c0_176 = arith.constant 0 : index
    %374 = vector.load %arg3[%c1_174, %c0_175, %c0_176] : memref<2x128x384xf32, #tpu.memory_space<vmem>>, vector<1x128x384xf32>
    %375 = vector.shape_cast %374 : vector<1x128x384xf32> to vector<128x384xf32>
    %cst_177 = arith.constant dense<0.000000e+00> : vector<1x384xf32>
    %376 = tpu.matmul %337, %375, %cst_177 {dimension_numbers = #tpu.dot_dimension_numbers<[1], [0], [0], [1], [0, 0, 1, 1], [], []>} : vector<1x128xf32>, vector<128x384xf32>, vector<1x384xf32> -> vector<1x384xf32>
    %c1_178 = arith.constant 1 : index
    %c0_179 = arith.constant 0 : index
    %c0_180 = arith.constant 0 : index
    %377 = vector.load %arg5[%c1_178, %c0_179, %c0_180] : memref<2x1x384xf32, #tpu.memory_space<vmem>>, vector<1x1x384xf32>
    %378 = vector.shape_cast %377 : vector<1x1x384xf32> to vector<1x384xf32>
    %379 = arith.addf %376, %378 : vector<1x384xf32>
    %380 = arith.addf %373, %379 : vector<1x384xf32>
    %381 = vector.extract_strided_slice %380 {offsets = [0, 0], sizes = [1, 128], strides = [1, 1]} : vector<1x384xf32> to vector<1x128xf32>
    %382 = arith.negf %381 : vector<1x128xf32>
    %383 = math.exp %382 : vector<1x128xf32>
    %cst_181 = arith.constant 1.000000e+00 : f32
    %384 = vector.broadcast %cst_181 : f32 to vector<1x128xf32>
    %385 = arith.addf %384, %383 : vector<1x128xf32>
    %386 = arith.divf %384, %385 : vector<1x128xf32>
    %387 = vector.extract_strided_slice %380 {offsets = [0, 128], sizes = [1, 128], strides = [1, 1]} : vector<1x384xf32> to vector<1x128xf32>
    %388 = arith.negf %387 : vector<1x128xf32>
    %389 = math.exp %388 : vector<1x128xf32>
    %cst_182 = arith.constant 1.000000e+00 : f32
    %390 = vector.broadcast %cst_182 : f32 to vector<1x128xf32>
    %391 = arith.addf %390, %389 : vector<1x128xf32>
    %392 = arith.divf %390, %391 : vector<1x128xf32>
    %393 = vector.extract_strided_slice %373 {offsets = [0, 256], sizes = [1, 128], strides = [1, 1]} : vector<1x384xf32> to vector<1x128xf32>
    %394 = vector.extract_strided_slice %379 {offsets = [0, 256], sizes = [1, 128], strides = [1, 1]} : vector<1x384xf32> to vector<1x128xf32>
    %395 = arith.mulf %386, %394 : vector<1x128xf32>
    %396 = arith.addf %393, %395 : vector<1x128xf32>
    %397 = math.tanh %396 : vector<1x128xf32>
    %cst_183 = arith.constant 1.000000e+00 : f32
    %398 = vector.broadcast %cst_183 : f32 to vector<1x128xf32>
    %399 = arith.subf %398, %392 : vector<1x128xf32>
    %400 = arith.mulf %399, %397 : vector<1x128xf32>
    %401 = arith.mulf %392, %337 : vector<1x128xf32>
    %402 = arith.addf %400, %401 : vector<1x128xf32>
    %c0_184 = arith.constant 0 : index
    %c0_185 = arith.constant 0 : index
    %c0_186 = arith.constant 0 : index
    %403 = vector.load %arg3[%c0_184, %c0_185, %c0_186] : memref<2x128x384xf32, #tpu.memory_space<vmem>>, vector<1x128x384xf32>
    %404 = vector.shape_cast %403 : vector<1x128x384xf32> to vector<128x384xf32>
    %cst_187 = arith.constant dense<0.000000e+00> : vector<1x384xf32>
    %405 = tpu.matmul %367, %404, %cst_187 {dimension_numbers = #tpu.dot_dimension_numbers<[1], [0], [0], [1], [0, 0, 1, 1], [], []>} : vector<1x128xf32>, vector<128x384xf32>, vector<1x384xf32> -> vector<1x384xf32>
    %c0_188 = arith.constant 0 : index
    %c0_189 = arith.constant 0 : index
    %c0_190 = arith.constant 0 : index
    %406 = vector.load %arg5[%c0_188, %c0_189, %c0_190] : memref<2x1x384xf32, #tpu.memory_space<vmem>>, vector<1x1x384xf32>
    %407 = vector.shape_cast %406 : vector<1x1x384xf32> to vector<1x384xf32>
    %408 = arith.addf %405, %407 : vector<1x384xf32>
    %c6 = arith.constant 6 : index
    %c0_191 = arith.constant 0 : index
    %409 = vector.load %arg10[%c6, %c0_191] : memref<8x384xf32, #tpu.memory_space<vmem>>, vector<1x384xf32>
    %410 = arith.addf %409, %408 : vector<1x384xf32>
    %411 = vector.extract_strided_slice %410 {offsets = [0, 0], sizes = [1, 128], strides = [1, 1]} : vector<1x384xf32> to vector<1x128xf32>
    %412 = arith.negf %411 : vector<1x128xf32>
    %413 = math.exp %412 : vector<1x128xf32>
    %cst_192 = arith.constant 1.000000e+00 : f32
    %414 = vector.broadcast %cst_192 : f32 to vector<1x128xf32>
    %415 = arith.addf %414, %413 : vector<1x128xf32>
    %416 = arith.divf %414, %415 : vector<1x128xf32>
    %417 = vector.extract_strided_slice %410 {offsets = [0, 128], sizes = [1, 128], strides = [1, 1]} : vector<1x384xf32> to vector<1x128xf32>
    %418 = arith.negf %417 : vector<1x128xf32>
    %419 = math.exp %418 : vector<1x128xf32>
    %cst_193 = arith.constant 1.000000e+00 : f32
    %420 = vector.broadcast %cst_193 : f32 to vector<1x128xf32>
    %421 = arith.addf %420, %419 : vector<1x128xf32>
    %422 = arith.divf %420, %421 : vector<1x128xf32>
    %423 = vector.extract_strided_slice %409 {offsets = [0, 256], sizes = [1, 128], strides = [1, 1]} : vector<1x384xf32> to vector<1x128xf32>
    %424 = vector.extract_strided_slice %408 {offsets = [0, 256], sizes = [1, 128], strides = [1, 1]} : vector<1x384xf32> to vector<1x128xf32>
    %425 = arith.mulf %416, %424 : vector<1x128xf32>
    %426 = arith.addf %423, %425 : vector<1x128xf32>
    %427 = math.tanh %426 : vector<1x128xf32>
    %cst_194 = arith.constant 1.000000e+00 : f32
    %428 = vector.broadcast %cst_194 : f32 to vector<1x128xf32>
    %429 = arith.subf %428, %422 : vector<1x128xf32>
    %430 = arith.mulf %429, %427 : vector<1x128xf32>
    %431 = arith.mulf %422, %367 : vector<1x128xf32>
    %432 = arith.addf %430, %431 : vector<1x128xf32>
    %c1_195 = arith.constant 1 : index
    %c0_196 = arith.constant 0 : index
    %c0_197 = arith.constant 0 : index
    %433 = vector.load %arg2[%c1_195, %c0_196, %c0_197] : memref<2x128x384xf32, #tpu.memory_space<vmem>>, vector<1x128x384xf32>
    %434 = vector.shape_cast %433 : vector<1x128x384xf32> to vector<128x384xf32>
    %cst_198 = arith.constant dense<0.000000e+00> : vector<1x384xf32>
    %435 = tpu.matmul %432, %434, %cst_198 {dimension_numbers = #tpu.dot_dimension_numbers<[1], [0], [0], [1], [0, 0, 1, 1], [], []>} : vector<1x128xf32>, vector<128x384xf32>, vector<1x384xf32> -> vector<1x384xf32>
    %c1_199 = arith.constant 1 : index
    %c0_200 = arith.constant 0 : index
    %c0_201 = arith.constant 0 : index
    %436 = vector.load %arg4[%c1_199, %c0_200, %c0_201] : memref<2x1x384xf32, #tpu.memory_space<vmem>>, vector<1x1x384xf32>
    %437 = vector.shape_cast %436 : vector<1x1x384xf32> to vector<1x384xf32>
    %438 = arith.addf %435, %437 : vector<1x384xf32>
    %c1_202 = arith.constant 1 : index
    %c0_203 = arith.constant 0 : index
    %c0_204 = arith.constant 0 : index
    %439 = vector.load %arg3[%c1_202, %c0_203, %c0_204] : memref<2x128x384xf32, #tpu.memory_space<vmem>>, vector<1x128x384xf32>
    %440 = vector.shape_cast %439 : vector<1x128x384xf32> to vector<128x384xf32>
    %cst_205 = arith.constant dense<0.000000e+00> : vector<1x384xf32>
    %441 = tpu.matmul %402, %440, %cst_205 {dimension_numbers = #tpu.dot_dimension_numbers<[1], [0], [0], [1], [0, 0, 1, 1], [], []>} : vector<1x128xf32>, vector<128x384xf32>, vector<1x384xf32> -> vector<1x384xf32>
    %c1_206 = arith.constant 1 : index
    %c0_207 = arith.constant 0 : index
    %c0_208 = arith.constant 0 : index
    %442 = vector.load %arg5[%c1_206, %c0_207, %c0_208] : memref<2x1x384xf32, #tpu.memory_space<vmem>>, vector<1x1x384xf32>
    %443 = vector.shape_cast %442 : vector<1x1x384xf32> to vector<1x384xf32>
    %444 = arith.addf %441, %443 : vector<1x384xf32>
    %445 = arith.addf %438, %444 : vector<1x384xf32>
    %446 = vector.extract_strided_slice %445 {offsets = [0, 0], sizes = [1, 128], strides = [1, 1]} : vector<1x384xf32> to vector<1x128xf32>
    %447 = arith.negf %446 : vector<1x128xf32>
    %448 = math.exp %447 : vector<1x128xf32>
    %cst_209 = arith.constant 1.000000e+00 : f32
    %449 = vector.broadcast %cst_209 : f32 to vector<1x128xf32>
    %450 = arith.addf %449, %448 : vector<1x128xf32>
    %451 = arith.divf %449, %450 : vector<1x128xf32>
    %452 = vector.extract_strided_slice %445 {offsets = [0, 128], sizes = [1, 128], strides = [1, 1]} : vector<1x384xf32> to vector<1x128xf32>
    %453 = arith.negf %452 : vector<1x128xf32>
    %454 = math.exp %453 : vector<1x128xf32>
    %cst_210 = arith.constant 1.000000e+00 : f32
    %455 = vector.broadcast %cst_210 : f32 to vector<1x128xf32>
    %456 = arith.addf %455, %454 : vector<1x128xf32>
    %457 = arith.divf %455, %456 : vector<1x128xf32>
    %458 = vector.extract_strided_slice %438 {offsets = [0, 256], sizes = [1, 128], strides = [1, 1]} : vector<1x384xf32> to vector<1x128xf32>
    %459 = vector.extract_strided_slice %444 {offsets = [0, 256], sizes = [1, 128], strides = [1, 1]} : vector<1x384xf32> to vector<1x128xf32>
    %460 = arith.mulf %451, %459 : vector<1x128xf32>
    %461 = arith.addf %458, %460 : vector<1x128xf32>
    %462 = math.tanh %461 : vector<1x128xf32>
    %cst_211 = arith.constant 1.000000e+00 : f32
    %463 = vector.broadcast %cst_211 : f32 to vector<1x128xf32>
    %464 = arith.subf %463, %457 : vector<1x128xf32>
    %465 = arith.mulf %464, %462 : vector<1x128xf32>
    %466 = arith.mulf %457, %402 : vector<1x128xf32>
    %467 = arith.addf %465, %466 : vector<1x128xf32>
    %c0_212 = arith.constant 0 : index
    %c0_213 = arith.constant 0 : index
    %c0_214 = arith.constant 0 : index
    %468 = vector.load %arg3[%c0_212, %c0_213, %c0_214] : memref<2x128x384xf32, #tpu.memory_space<vmem>>, vector<1x128x384xf32>
    %469 = vector.shape_cast %468 : vector<1x128x384xf32> to vector<128x384xf32>
    %cst_215 = arith.constant dense<0.000000e+00> : vector<1x384xf32>
    %470 = tpu.matmul %432, %469, %cst_215 {dimension_numbers = #tpu.dot_dimension_numbers<[1], [0], [0], [1], [0, 0, 1, 1], [], []>} : vector<1x128xf32>, vector<128x384xf32>, vector<1x384xf32> -> vector<1x384xf32>
    %c0_216 = arith.constant 0 : index
    %c0_217 = arith.constant 0 : index
    %c0_218 = arith.constant 0 : index
    %471 = vector.load %arg5[%c0_216, %c0_217, %c0_218] : memref<2x1x384xf32, #tpu.memory_space<vmem>>, vector<1x1x384xf32>
    %472 = vector.shape_cast %471 : vector<1x1x384xf32> to vector<1x384xf32>
    %473 = arith.addf %470, %472 : vector<1x384xf32>
    %c7 = arith.constant 7 : index
    %c0_219 = arith.constant 0 : index
    %474 = vector.load %arg10[%c7, %c0_219] : memref<8x384xf32, #tpu.memory_space<vmem>>, vector<1x384xf32>
    %475 = arith.addf %474, %473 : vector<1x384xf32>
    %476 = vector.extract_strided_slice %475 {offsets = [0, 0], sizes = [1, 128], strides = [1, 1]} : vector<1x384xf32> to vector<1x128xf32>
    %477 = arith.negf %476 : vector<1x128xf32>
    %478 = math.exp %477 : vector<1x128xf32>
    %cst_220 = arith.constant 1.000000e+00 : f32
    %479 = vector.broadcast %cst_220 : f32 to vector<1x128xf32>
    %480 = arith.addf %479, %478 : vector<1x128xf32>
    %481 = arith.divf %479, %480 : vector<1x128xf32>
    %482 = vector.extract_strided_slice %475 {offsets = [0, 128], sizes = [1, 128], strides = [1, 1]} : vector<1x384xf32> to vector<1x128xf32>
    %483 = arith.negf %482 : vector<1x128xf32>
    %484 = math.exp %483 : vector<1x128xf32>
    %cst_221 = arith.constant 1.000000e+00 : f32
    %485 = vector.broadcast %cst_221 : f32 to vector<1x128xf32>
    %486 = arith.addf %485, %484 : vector<1x128xf32>
    %487 = arith.divf %485, %486 : vector<1x128xf32>
    %488 = vector.extract_strided_slice %474 {offsets = [0, 256], sizes = [1, 128], strides = [1, 1]} : vector<1x384xf32> to vector<1x128xf32>
    %489 = vector.extract_strided_slice %473 {offsets = [0, 256], sizes = [1, 128], strides = [1, 1]} : vector<1x384xf32> to vector<1x128xf32>
    %490 = arith.mulf %481, %489 : vector<1x128xf32>
    %491 = arith.addf %488, %490 : vector<1x128xf32>
    %492 = math.tanh %491 : vector<1x128xf32>
    %cst_222 = arith.constant 1.000000e+00 : f32
    %493 = vector.broadcast %cst_222 : f32 to vector<1x128xf32>
    %494 = arith.subf %493, %487 : vector<1x128xf32>
    %495 = arith.mulf %494, %492 : vector<1x128xf32>
    %496 = arith.mulf %487, %432 : vector<1x128xf32>
    %497 = arith.addf %495, %496 : vector<1x128xf32>
    %c1_223 = arith.constant 1 : index
    %c0_224 = arith.constant 0 : index
    %c0_225 = arith.constant 0 : index
    %498 = vector.load %arg2[%c1_223, %c0_224, %c0_225] : memref<2x128x384xf32, #tpu.memory_space<vmem>>, vector<1x128x384xf32>
    %499 = vector.shape_cast %498 : vector<1x128x384xf32> to vector<128x384xf32>
    %cst_226 = arith.constant dense<0.000000e+00> : vector<1x384xf32>
    %500 = tpu.matmul %497, %499, %cst_226 {dimension_numbers = #tpu.dot_dimension_numbers<[1], [0], [0], [1], [0, 0, 1, 1], [], []>} : vector<1x128xf32>, vector<128x384xf32>, vector<1x384xf32> -> vector<1x384xf32>
    %c1_227 = arith.constant 1 : index
    %c0_228 = arith.constant 0 : index
    %c0_229 = arith.constant 0 : index
    %501 = vector.load %arg4[%c1_227, %c0_228, %c0_229] : memref<2x1x384xf32, #tpu.memory_space<vmem>>, vector<1x1x384xf32>
    %502 = vector.shape_cast %501 : vector<1x1x384xf32> to vector<1x384xf32>
    %503 = arith.addf %500, %502 : vector<1x384xf32>
    %c1_230 = arith.constant 1 : index
    %c0_231 = arith.constant 0 : index
    %c0_232 = arith.constant 0 : index
    %504 = vector.load %arg3[%c1_230, %c0_231, %c0_232] : memref<2x128x384xf32, #tpu.memory_space<vmem>>, vector<1x128x384xf32>
    %505 = vector.shape_cast %504 : vector<1x128x384xf32> to vector<128x384xf32>
    %cst_233 = arith.constant dense<0.000000e+00> : vector<1x384xf32>
    %506 = tpu.matmul %467, %505, %cst_233 {dimension_numbers = #tpu.dot_dimension_numbers<[1], [0], [0], [1], [0, 0, 1, 1], [], []>} : vector<1x128xf32>, vector<128x384xf32>, vector<1x384xf32> -> vector<1x384xf32>
    %c1_234 = arith.constant 1 : index
    %c0_235 = arith.constant 0 : index
    %c0_236 = arith.constant 0 : index
    %507 = vector.load %arg5[%c1_234, %c0_235, %c0_236] : memref<2x1x384xf32, #tpu.memory_space<vmem>>, vector<1x1x384xf32>
    %508 = vector.shape_cast %507 : vector<1x1x384xf32> to vector<1x384xf32>
    %509 = arith.addf %506, %508 : vector<1x384xf32>
    %510 = arith.addf %503, %509 : vector<1x384xf32>
    %511 = vector.extract_strided_slice %510 {offsets = [0, 0], sizes = [1, 128], strides = [1, 1]} : vector<1x384xf32> to vector<1x128xf32>
    %512 = arith.negf %511 : vector<1x128xf32>
    %513 = math.exp %512 : vector<1x128xf32>
    %cst_237 = arith.constant 1.000000e+00 : f32
    %514 = vector.broadcast %cst_237 : f32 to vector<1x128xf32>
    %515 = arith.addf %514, %513 : vector<1x128xf32>
    %516 = arith.divf %514, %515 : vector<1x128xf32>
    %517 = vector.extract_strided_slice %510 {offsets = [0, 128], sizes = [1, 128], strides = [1, 1]} : vector<1x384xf32> to vector<1x128xf32>
    %518 = arith.negf %517 : vector<1x128xf32>
    %519 = math.exp %518 : vector<1x128xf32>
    %cst_238 = arith.constant 1.000000e+00 : f32
    %520 = vector.broadcast %cst_238 : f32 to vector<1x128xf32>
    %521 = arith.addf %520, %519 : vector<1x128xf32>
    %522 = arith.divf %520, %521 : vector<1x128xf32>
    %523 = vector.extract_strided_slice %503 {offsets = [0, 256], sizes = [1, 128], strides = [1, 1]} : vector<1x384xf32> to vector<1x128xf32>
    %524 = vector.extract_strided_slice %509 {offsets = [0, 256], sizes = [1, 128], strides = [1, 1]} : vector<1x384xf32> to vector<1x128xf32>
    %525 = arith.mulf %516, %524 : vector<1x128xf32>
    %526 = arith.addf %523, %525 : vector<1x128xf32>
    %527 = math.tanh %526 : vector<1x128xf32>
    %cst_239 = arith.constant 1.000000e+00 : f32
    %528 = vector.broadcast %cst_239 : f32 to vector<1x128xf32>
    %529 = arith.subf %528, %522 : vector<1x128xf32>
    %530 = arith.mulf %529, %527 : vector<1x128xf32>
    %531 = arith.mulf %522, %467 : vector<1x128xf32>
    %532 = arith.addf %530, %531 : vector<1x128xf32>
    %c0_240 = arith.constant 0 : index
    %c0_241 = arith.constant 0 : index
    %c0_242 = arith.constant 0 : index
    %533 = vector.load %arg9[%c0_240, %c0_241, %c0_242] : memref<2x1x128xf32, #tpu.memory_space<vmem>>, vector<1x1x128xf32>
    %534 = vector.shape_cast %533 : vector<1x1x128xf32> to vector<1x128xf32>
    %535 = vector.shape_cast %497 : vector<1x128xf32> to vector<1x1x128xf32>
    tpu.vector_store %arg9[%c0_240, %c0_241, %c0_242], %535 {strides = array<i32>} : memref<2x1x128xf32, #tpu.memory_space<vmem>>, vector<1x1x128xf32>,
    %c1_243 = arith.constant 1 : index
    %c0_244 = arith.constant 0 : index
    %c0_245 = arith.constant 0 : index
    %536 = vector.load %arg9[%c1_243, %c0_244, %c0_245] : memref<2x1x128xf32, #tpu.memory_space<vmem>>, vector<1x1x128xf32>
    %537 = vector.shape_cast %536 : vector<1x1x128xf32> to vector<1x128xf32>
    %538 = vector.shape_cast %532 : vector<1x128xf32> to vector<1x1x128xf32>
    tpu.vector_store %arg9[%c1_243, %c0_244, %c0_245], %538 {strides = array<i32>} : memref<2x1x128xf32, #tpu.memory_space<vmem>>, vector<1x1x128xf32>,
    %cst_246 = arith.constant 0.000000e+00 : f32
    %539 = vector.broadcast %cst_246 : f32 to vector<1x128xf32>
    %540 = arith.maximumf %532, %539 : vector<1x128xf32>
    %c0_247 = arith.constant 0 : index
    %c0_248 = arith.constant 0 : index
    %541 = vector.load %arg6[%c0_247, %c0_248] : memref<128x128xf32, #tpu.memory_space<vmem>>, vector<128x128xf32>
    %cst_249 = arith.constant dense<0.000000e+00> : vector<1x128xf32>
    %542 = tpu.matmul %540, %541, %cst_249 {dimension_numbers = #tpu.dot_dimension_numbers<[1], [0], [0], [1], [0, 0, 1, 1], [], []>} : vector<1x128xf32>, vector<128x128xf32>, vector<1x128xf32> -> vector<1x128xf32>
    %c0_250 = arith.constant 0 : index
    %c0_251 = arith.constant 0 : index
    %543 = vector.load %arg7[%c0_250, %c0_251] : memref<1x128xf32, #tpu.memory_space<vmem>>, vector<1x128xf32>
    %544 = arith.addf %542, %543 : vector<1x128xf32>
    %c0_252 = arith.constant 0 : index
    %c0_253 = arith.constant 0 : index
    %545 = vector.load %arg8[%c0_252, %c0_253] : memref<1x128xf32, #tpu.memory_space<vmem>>, vector<1x128xf32>
    tpu.vector_store %arg8[%c0_252, %c0_253], %544 {strides = array<i32>} : memref<1x128xf32, #tpu.memory_space<vmem>>, vector<1x128xf32>,
    return
  }
}

</mosaic_0001>

<bundles_post_ra>
// kernel: tpu_custom_call.1
= control target key start
LH: loop header
LB: loop body
LE: loop exit
PB: predicated region body
PF: predicated region fallthrough
CT: control target
= control target key end

     0   :  { %15 = vsyncpa [#allocation4], 0  ;;  %s9169_s0 = inlined_call_operand.hbm [shape: f32[8,128], index: 0, kind: input, shape index: {}]   ;;  %s9170_s1 = inlined_call_operand.vmem [shape: f32[2,1,128], index: 1, kind: input, shape index: {}]   ;;  %s9171_s2 = inlined_call_operand.hbm [shape: f32[2,128,384], index: 2, kind: input, shape index: {}]   ;;  %s9172_s3 = inlined_call_operand.hbm [shape: f32[2,128,384], index: 3, kind: input, shape index: {}]   ;;  %s9173_s4 = inlined_call_operand.vmem [shape: f32[2,1,384], index: 4, kind: input, shape index: {}]   ;;  %s9174_s5 = inlined_call_operand.vmem [shape: f32[2,1,384], index: 5, kind: input, shape index: {}]   ;;  %s9175_s6 = inlined_call_operand.hbm [shape: f32[128,128], index: 6, kind: input, shape index: {}]   ;;  %s9176_s7 = inlined_call_operand.vmem [shape: f32[1,128], index: 7, kind: input, shape index: {}]   ;;  %s9177_s8 = inlined_call_operand.hbm [shape: f32[1,128], index: 8, kind: output, shape index: {0}]   ;;  %s9178_s9 = inlined_call_operand.hbm [shape: f32[2,1,128], index: 9, kind: output, shape index: {1}]  }
   0x1   :  { %16 = vsyncpa [#allocation7], 0 }
   0x2   :  { %17 = vsyncpa [#allocation10], 0 }
   0x3   :  { %18 = vsyncpa [#allocation5], 0 }
   0x4   :  { %19 = vsyncpa [#allocation13], 0  ;;  %s7791_s30 = smov [#allocation6]   ;;  %s7649_s13 = scalar_lea.hbm %s9171_s2, 12288 }
   0x5   :  { %s37_s10 = sshll.u32 %s7791_s30, 4  ;;  %p7650_p0 = scmp.ne.s32.totalorder %s9171_s2, %s7649_s13  ;;  %s38_s10 = int_to_ptr.vmem [resolvable:$true] %s37_s10 }
   0x6   :  { %p7653_p1 = scmp.lt.u32.totalorder %s7649_s13, %s9171_s2 }
   0x8   :  { %p7655_p2 = pnand %p7653_p1, %p7650_p0 }
   0xa   :  { %7658 = shalt.err (!%p7655_p2)
}
   0xb   :  { %s7659_s18 = scalar_lea.vmem %s38_s10, 12288  ;;  %p7664_p4 = scmp.lt.s32.totalorder %s38_s10, %s38_s10 }
   0xc   :  { %p7660_p3 = scmp.ne.s32.totalorder %s38_s10, %s7659_s18  ;;  %p7665_p5 = scmp.lt.s32.totalorder %s7659_s18, %s7659_s18 }
   0xe   :  { %p7666_p6 = por %p7665_p5, %p7664_p4 }
  0x10   :  { %p7667_p7 = pnand %p7666_p6, %p7660_p3 }
  0x12   :  { %7670 = shalt.err (!%p7667_p7)
}
  0x13   :  { %s7792_s19 = smov 384   ;;  %s7793_s20 = smov 24  }
  0x14   :  { %43 = dma.hbm_to_vmem [thread:$0]  %s9171_s2, 12288, %s38_s10, [#allocation7], %s7792_s19, %s7792_s19, %s7793_s20  }
  0x15   :  { %s7794_s23 = smov [#allocation3]   ;;  %s7795_s25 = smov [#allocation8]  }
  0x16   :  { %s26_s24 = sshll.u32 %s7794_s23, 4  ;;  %s49_s26 = sshll.u32 %s7795_s25, 4  ;;  %s27_s24 = int_to_ptr.vmem [resolvable:$true] %s26_s24  ;;  %s50_s26 = int_to_ptr.vmem [resolvable:$true] %s49_s26 }
  0x17   :  { %s7671_s29 = scalar_lea.hbm %s9169_s0, 128 }
  0x18   :  { %p7672_p8 = scmp.ne.s32.totalorder %s9169_s0, %s7671_s29  ;;  %p7675_p9 = scmp.lt.u32.totalorder %s7671_s29, %s9169_s0 }
  0x1a   :  { %p7677_p10 = pnand %p7675_p9, %p7672_p8 }
  0x1c   :  { %7680 = shalt.err (!%p7677_p10)
}
  0x1d   :  { %s7681_s2 = scalar_lea.vmem %s27_s24, 128  ;;  %p7686_p12 = scmp.lt.s32.totalorder %s27_s24, %s27_s24 }
  0x1e   :  { %p7682_p11 = scmp.ne.s32.totalorder %s27_s24, %s7681_s2  ;;  %p7687_p13 = scmp.lt.s32.totalorder %s7681_s2, %s7681_s2 }
  0x20   :  { %p7688_p0 = por %p7687_p13, %p7686_p12 }
  0x22   :  { %p7689_p1 = pnand %p7688_p0, %p7682_p11 }
  0x24   :  { %7692 = shalt.err (!%p7689_p1)
}
  0x25   :  { %29 = dma.hbm_to_vmem [thread:$0]  %s9169_s0, 128, %s27_s24, [#allocation4]  }
  0x26   :  { %s7693_s17 = scalar_lea.hbm %s9172_s3, 12288 }
  0x27   :  { %p7694_p2 = scmp.ne.s32.totalorder %s9172_s3, %s7693_s17  ;;  %p7697_p3 = scmp.lt.u32.totalorder %s7693_s17, %s9172_s3 }
  0x29   :  { %p7699_p4 = pnand %p7697_p3, %p7694_p2 }
  0x2b   :  { %7702 = shalt.err (!%p7699_p4)
}
  0x2c   :  { %s7703_s25 = scalar_lea.vmem %s50_s26, 12288  ;;  %p7708_p6 = scmp.lt.s32.totalorder %s50_s26, %s50_s26 }
  0x2d   :  { %p7704_p5 = scmp.ne.s32.totalorder %s50_s26, %s7703_s25  ;;  %p7709_p7 = scmp.lt.s32.totalorder %s7703_s25, %s7703_s25 }
  0x2f   :  { %p7710_p8 = por %p7709_p7, %p7708_p6 }
  0x31   :  { %p7711_p9 = pnand %p7710_p8, %p7704_p5 }
  0x33   :  { %7714 = shalt.err (!%p7711_p9)
}
  0x34   :  { %55 = dma.hbm_to_vmem [thread:$0]  %s9172_s3, 12288, %s50_s26, [#allocation7], %s7792_s19, %s7792_s19, %s7793_s20  }
  0x35   :  { %s7796_s27 = smov [#allocation9]   ;;  %s7715_s11 = scalar_lea.hbm %s9175_s6, 2048 }
  0x36   :  { %s65_s28 = sshll.u32 %s7796_s27, 4  ;;  %p7716_p10 = scmp.ne.s32.totalorder %s9175_s6, %s7715_s11  ;;  %s66_s28 = int_to_ptr.vmem [resolvable:$true] %s65_s28 }
  0x37   :  { %p7719_p11 = scmp.lt.u32.totalorder %s7715_s11, %s9175_s6 }
  0x39   :  { %p7721_p12 = pnand %p7719_p11, %p7716_p10 }
  0x3b   :  { %7724 = shalt.err (!%p7721_p12)
}
  0x3c   :  { %s7725_s14 = scalar_lea.vmem %s66_s28, 2048  ;;  %p7730_p0 = scmp.lt.s32.totalorder %s66_s28, %s66_s28 }
  0x3d   :  { %p7726_p13 = scmp.ne.s32.totalorder %s66_s28, %s7725_s14  ;;  %p7731_p1 = scmp.lt.s32.totalorder %s7725_s14, %s7725_s14 }
  0x3f   :  { %p7732_p2 = por %p7731_p1, %p7730_p0 }
  0x41   :  { %p7733_p3 = pnand %p7732_p2, %p7726_p13 }
  0x43   :  { %7736 = shalt.err (!%p7733_p3)
}
  0x44   :  { %s7797_s3 = smov 128   ;;  %s7798_s19 = smov 8  }
  0x45   :  { %71 = dma.hbm_to_vmem [thread:$0]  %s9175_s6, 2048, %s66_s28, [#allocation10], %s7797_s3, %s7797_s3, %s7798_s19  }
  0x46   :  { %7781 = dma.done.wait [#allocation4], 128  }
  0x47   :  { %7782 = vsyncadd [#allocation4], 4294967168 }
  0x48   :  { %7783 = dma.done.wait [#allocation7], 24576  }
  0x49   :  { %7784 = vsyncadd [#allocation7], 4294942720 }
  0x4a   :  { %7785 = dma.done.wait [#allocation10], 2048  }
  0x4b   :  { %7786 = vsyncadd [#allocation10], 4294965248  ;;  %v9181_v0 = vmov 0.0|0.0   ;;  %v9179_v1 = vmov 0.0   ;;  %vm7801_vm0 = vmmov 0   ;;  %v88_v2 = vld [vmem:[#allocation6 + $0x8] sm:$0xff] }
  0x4c   :  { %6033 = vmatprep.subr.bf16.mxu1 %v9181_v0  ;;  %216 = vmatprep.mubr.f32.mxu0 %v9179_v1  ;;  %v91_v3 = vld [vmem:[#allocation6 + $0x20] sm:$0xff]  ;;  %v90_v6 = vld [vmem:[#allocation6 + $0x18] sm:$0xff]  ;;  %v89_v7 = vld [vmem:[#allocation6 + $0x10] sm:$0xff] }
  0x4d   :  { %5123 = vmatprep.mubr.msk.f32.mxu1 %vm7801_vm0, %v9179_v1  ;;  %v87_v4 = vld [vmem:[#allocation6] sm:$0xff]  ;;  %v6001_v5 = vpack.c.bf16 %v91_v3, %v88_v2  ;;  %v92_v8 = vld [vmem:[#allocation6 + $0x28] sm:$0xff]  ;;  %v94_v11 = vld [vmem:[#allocation6 + $0x38] sm:$0xff] }
  0x4e   :  { %v6003_v9 = vpack.c.bf16 %v90_v6, %v87_v4  ;;  %v6034_v10 = vpack.c.bf16 %v92_v8, %v89_v7  ;;  %v97_v12 = vld [vmem:[#allocation6 + $0x50] sm:$0xff]  ;;  %v96_v15 = vld [vmem:[#allocation6 + $0x48] sm:$0xff]  ;;  %v95_v16 = vld [vmem:[#allocation6 + $0x40] sm:$0xff] }
  0x4f   :  { %v93_v13 = vld [vmem:[#allocation6 + $0x30] sm:$0xff]  ;;  %6002 = vmatprep.subr.bf16.mxu0 %v6001_v5  ;;  %v6005_v14 = vpack.c.bf16 %v97_v12, %v94_v11  ;;  %v98_v17 = vld [vmem:[#allocation6 + $0x58] sm:$0xff]  ;;  %v100_v20 = vld [vmem:[#allocation6 + $0x68] sm:$0xff] }
  0x50   :  { %6004 = vmatpush1.bf16.msra.mxu0 %v6003_v9  ;;  %6035 = vmatpush3.bf16.msra.mxu1 %v6034_v10  ;;  %v6007_v18 = vpack.c.bf16 %v96_v15, %v93_v13  ;;  %v6037_v19 = vpack.c.bf16 %v98_v17, %v95_v16  ;;  %v103_v21 = vld [vmem:[#allocation6 + $0x80] sm:$0xff]  ;;  %v102_v24 = vld [vmem:[#allocation6 + $0x78] sm:$0xff]  ;;  %v101_v25 = vld [vmem:[#allocation6 + $0x70] sm:$0xff] }
  0x51   :  { %v99_v22 = vld [vmem:[#allocation6 + $0x60] sm:$0xff]  ;;  %6006 = vmatprep.subr.bf16.mxu0 %v6005_v14  ;;  %6036 = vmatprep.subr.bf16.mxu1 %v9181_v0  ;;  %v6009_v23 = vpack.c.bf16 %v103_v21, %v100_v20  ;;  %v104_v26 = vld [vmem:[#allocation6 + $0x88] sm:$0xff]  ;;  %v106_v27 = vld [vmem:[#allocation6 + $0x98] sm:$0xff] }
  0x52   :  { %v109_v28 = vld [vmem:[#allocation6 + $0xb0] sm:$0xff]  ;;  %v6011_v29 = vpack.c.bf16 %v102_v24, %v99_v22  ;;  %v6040_v30 = vpack.c.bf16 %v104_v26, %v101_v25  ;;  %v108_v33 = vld [vmem:[#allocation6 + $0xa8] sm:$0xff]  ;;  %v107_v34 = vld [vmem:[#allocation6 + $0xa0] sm:$0xff] }
  0x53   :  { %v105_v31 = vld [vmem:[#allocation6 + $0x90] sm:$0xff]  ;;  %v6013_v32 = vpack.c.bf16 %v109_v28, %v106_v27  ;;  %v110_v35 = vld [vmem:[#allocation6 + $0xb8] sm:$0xff]  ;;  %v112_v36 = vld [vmem:[#allocation6 + $0xc8] sm:$0xff] }
  0x54   :  { %6008 = vmatpush1.bf16.msra.mxu0 %v6007_v18  ;;  %6038 = vmatpush3.bf16.msra.mxu1 %v6037_v19  ;;  %v115_v37 = vld [vmem:[#allocation6 + $0xe0] sm:$0xff]  ;;  %v6015_v38 = vpack.c.bf16 %v108_v33, %v105_v31  ;;  %v6043_v39 = vpack.c.bf16 %v110_v35, %v107_v34  ;;  %v114_v42 = vld [vmem:[#allocation6 + $0xd8] sm:$0xff]  ;;  %v113_v43 = vld [vmem:[#allocation6 + $0xd0] sm:$0xff] }
  0x55   :  { %6010 = vmatprep.subr.bf16.mxu0 %v6009_v23  ;;  %6039 = vmatprep.subr.bf16.mxu1 %v9181_v0  ;;  %v111_v40 = vld [vmem:[#allocation6 + $0xc0] sm:$0xff]  ;;  %v6017_v41 = vpack.c.bf16 %v115_v37, %v112_v36  ;;  %v116_v44 = vld [vmem:[#allocation6 + $0xe8] sm:$0xff]  ;;  %v118_v45 = vld [vmem:[#allocation6 + $0xf8] sm:$0xff] }
  0x56   :  { %v121_v46 = vld [vmem:[#allocation6 + $0x110] sm:$0xff]  ;;  %v6019_v47 = vpack.c.bf16 %v114_v42, %v111_v40  ;;  %v6046_v48 = vpack.c.bf16 %v116_v44, %v113_v43  ;;  %v120_v51 = vld [vmem:[#allocation6 + $0x108] sm:$0xff]  ;;  %v119_v52 = vld [vmem:[#allocation6 + $0x100] sm:$0xff] }
  0x57   :  { %v117_v49 = vld [vmem:[#allocation6 + $0xf0] sm:$0xff]  ;;  %v6021_v50 = vpack.c.bf16 %v121_v46, %v118_v45  ;;  %v122_v53 = vld [vmem:[#allocation6 + $0x118] sm:$0xff]  ;;  %v124_v54 = vld [vmem:[#allocation6 + $0x128] sm:$0xff] }
  0x58   :  { %6012 = vmatpush1.bf16.msra.mxu0 %v6011_v29  ;;  %6041 = vmatpush3.bf16.msra.mxu1 %v6040_v30  ;;  %v127_v55 = vld [vmem:[#allocation6 + $0x140] sm:$0xff]  ;;  %v6023_v56 = vpack.c.bf16 %v120_v51, %v117_v49  ;;  %v6049_v57 = vpack.c.bf16 %v122_v53, %v119_v52  ;;  %v126_v60 = vld [vmem:[#allocation6 + $0x138] sm:$0xff]  ;;  %v125_v61 = vld [vmem:[#allocation6 + $0x130] sm:$0xff] }
  0x59   :  { %6014 = vmatprep.subr.bf16.mxu0 %v6013_v32  ;;  %6042 = vmatprep.subr.bf16.mxu1 %v9181_v0  ;;  %v123_v58 = vld [vmem:[#allocation6 + $0x120] sm:$0xff]  ;;  %v6025_v59 = vpack.c.bf16 %v127_v55, %v124_v54  ;;  %v128_v62 = vld [vmem:[#allocation6 + $0x148] sm:$0xff]  ;;  %v130_v63 = vld [vmem:[#allocation6 + $0x158] sm:$0xff] }
  0x5a   :  { %v133_v2 = vld [vmem:[#allocation6 + $0x170] sm:$0xff]  ;;  %v6027_v3 = vpack.c.bf16 %v126_v60, %v123_v58  ;;  %v6052_v4 = vpack.c.bf16 %v128_v62, %v125_v61  ;;  %v132_v7 = vld [vmem:[#allocation6 + $0x168] sm:$0xff]  ;;  %v131_v8 = vld [vmem:[#allocation6 + $0x160] sm:$0xff] }
  0x5b   :  { %v129_v5 = vld [vmem:[#allocation6 + $0x150] sm:$0xff]  ;;  %v6029_v6 = vpack.c.bf16 %v133_v2, %v130_v63  ;;  %v134_v9 = vld [vmem:[#allocation6 + $0x178] sm:$0xff]  ;;  %v300_v10 = vld [vmem:[#allocation8 + $0x8] sm:$0xff] }
  0x5c   :  { %6016 = vmatpush1.bf16.msra.mxu0 %v6015_v38  ;;  %6044 = vmatpush3.bf16.msra.mxu1 %v6043_v39  ;;  %v303_v11 = vld [vmem:[#allocation8 + $0x20] sm:$0xff]  ;;  %v6031_v12 = vpack.c.bf16 %v132_v7, %v129_v5  ;;  %v6055_v13 = vpack.c.bf16 %v134_v9, %v131_v8  ;;  %v302_v16 = vld [vmem:[#allocation8 + $0x18] sm:$0xff]  ;;  %v301_v17 = vld [vmem:[#allocation8 + $0x10] sm:$0xff] }
  0x5d   :  { %6018 = vmatprep.subr.bf16.mxu0 %v6017_v41  ;;  %6045 = vmatprep.subr.bf16.mxu1 %v9181_v0  ;;  %v299_v14 = vld [vmem:[#allocation8] sm:$0xff]  ;;  %v7922_v15 = vpack.c.bf16 %v303_v11, %v300_v10  ;;  %v304_v18 = vld [vmem:[#allocation8 + $0x28] sm:$0xff]  ;;  %v306_v19 = vld [vmem:[#allocation8 + $0x38] sm:$0xff] }
  0x5e   :  { %v309_v20 = vld [vmem:[#allocation8 + $0x50] sm:$0xff]  ;;  %v86_v21 = vld [vmem:[#allocation3] sm:$0xff]  ;;  %v7924_v22 = vpack.c.bf16 %v302_v16, %v299_v14  ;;  %v7926_v23 = vpack.c.bf16 %v304_v18, %v301_v17  ;;  %v308_v26 = vld [vmem:[#allocation8 + $0x48] sm:$0xff] }
  0x5f   :  { %v305_v24 = vld [vmem:[#allocation8 + $0x30] sm:$0xff]  ;;  %v7930_v25 = vpack.c.bf16 %v309_v20, %v306_v19  ;;  %v307_v27 = vld [vmem:[#allocation8 + $0x40] sm:$0xff]  ;;  %v310_v28 = vld [vmem:[#allocation8 + $0x58] sm:$0xff] }
  0x60   :  { %6020 = vmatpush1.bf16.msra.mxu0 %v6019_v47  ;;  %6047 = vmatpush3.bf16.msra.mxu1 %v6046_v48  ;;  %v312_v29 = vld [vmem:[#allocation8 + $0x68] sm:$0xff]  ;;  %v315_v30 = vld [vmem:[#allocation8 + $0x80] sm:$0xff]  ;;  %v7934_v31 = vpack.c.bf16 %v308_v26, %v305_v24  ;;  %v7936_v32 = vpack.c.bf16 %v310_v28, %v307_v27  ;;  %v314_v35 = vld [vmem:[#allocation8 + $0x78] sm:$0xff] }
  0x61   :  { %6022 = vmatprep.subr.bf16.mxu0 %v6021_v50  ;;  %6048 = vmatprep.subr.bf16.mxu1 %v9181_v0  ;;  %v311_v33 = vld [vmem:[#allocation8 + $0x60] sm:$0xff]  ;;  %v7940_v34 = vpack.c.bf16 %v315_v30, %v312_v29  ;;  %v313_v36 = vld [vmem:[#allocation8 + $0x70] sm:$0xff]  ;;  %v316_v37 = vld [vmem:[#allocation8 + $0x88] sm:$0xff] }
  0x62   :  { %v318_v38 = vld [vmem:[#allocation8 + $0x98] sm:$0xff]  ;;  %v321_v39 = vld [vmem:[#allocation8 + $0xb0] sm:$0xff]  ;;  %v7947_v40 = vpack.c.bf16 %v314_v35, %v311_v33  ;;  %v7949_v41 = vpack.c.bf16 %v316_v37, %v313_v36  ;;  %v320_v44 = vld [vmem:[#allocation8 + $0xa8] sm:$0xff] }
  0x63   :  { %v317_v42 = vld [vmem:[#allocation8 + $0x90] sm:$0xff]  ;;  %v7953_v43 = vpack.c.bf16 %v321_v39, %v318_v38  ;;  %v319_v45 = vld [vmem:[#allocation8 + $0xa0] sm:$0xff]  ;;  %v322_v46 = vld [vmem:[#allocation8 + $0xb8] sm:$0xff] }
  0x64   :  { %6024 = vmatpush1.bf16.msra.mxu0 %v6023_v56  ;;  %6050 = vmatpush3.bf16.msra.mxu1 %v6049_v57  ;;  %v324_v47 = vld [vmem:[#allocation8 + $0xc8] sm:$0xff]  ;;  %v327_v48 = vld [vmem:[#allocation8 + $0xe0] sm:$0xff]  ;;  %v7957_v49 = vpack.c.bf16 %v320_v44, %v317_v42  ;;  %v7959_v50 = vpack.c.bf16 %v322_v46, %v319_v45  ;;  %v326_v53 = vld [vmem:[#allocation8 + $0xd8] sm:$0xff] }
  0x65   :  { %6026 = vmatprep.subr.bf16.mxu0 %v6025_v59  ;;  %6051 = vmatprep.subr.bf16.mxu1 %v9181_v0  ;;  %v323_v51 = vld [vmem:[#allocation8 + $0xc0] sm:$0xff]  ;;  %v7963_v52 = vpack.c.bf16 %v327_v48, %v324_v47  ;;  %v325_v54 = vld [vmem:[#allocation8 + $0xd0] sm:$0xff]  ;;  %v328_v55 = vld [vmem:[#allocation8 + $0xe8] sm:$0xff] }
  0x66   :  { %v330_v56 = vld [vmem:[#allocation8 + $0xf8] sm:$0xff]  ;;  %v333_v57 = vld [vmem:[#allocation8 + $0x110] sm:$0xff]  ;;  %v7967_v58 = vpack.c.bf16 %v326_v53, %v323_v51  ;;  %v7969_v59 = vpack.c.bf16 %v328_v55, %v325_v54  ;;  %v332_v62 = vld [vmem:[#allocation8 + $0x108] sm:$0xff] }
  0x67   :  { %v329_v60 = vld [vmem:[#allocation8 + $0xf0] sm:$0xff]  ;;  %v7973_v61 = vpack.c.bf16 %v333_v57, %v330_v56  ;;  %v331_v63 = vld [vmem:[#allocation8 + $0x100] sm:$0xff]  ;;  %v334_v2 = vld [vmem:[#allocation8 + $0x118] sm:$0xff] }
  0x68   :  { %6028 = vmatpush1.bf16.msra.mxu0 %v6027_v3  ;;  %6053 = vmatpush3.bf16.msra.mxu1 %v6052_v4  ;;  %v336_v3 = vld [vmem:[#allocation8 + $0x128] sm:$0xff]  ;;  %v339_v4 = vld [vmem:[#allocation8 + $0x140] sm:$0xff]  ;;  %v7977_v5 = vpack.c.bf16 %v332_v62, %v329_v60  ;;  %v338_v9 = vld [vmem:[#allocation8 + $0x138] sm:$0xff] }
  0x69   :  { %6030 = vmatprep.subr.bf16.mxu0 %v6029_v6  ;;  %6054 = vmatprep.subr.bf16.mxu1 %v9181_v0  ;;  %9303 = vst [vmem:[#allocation19_spill] sm:$0xff] %v7973_v61  ;;  %v7979_v6 = vpack.c.bf16 %v334_v2, %v331_v63  ;;  %v335_v7 = vld [vmem:[#allocation8 + $0x120] sm:$0xff]  ;;  %v7983_v8 = vpack.c.bf16 %v339_v4, %v336_v3  ;;  %v337_v10 = vld [vmem:[#allocation8 + $0x130] sm:$0xff]  ;;  %v340_v11 = vld [vmem:[#allocation8 + $0x148] sm:$0xff] }
  0x6a   :  { %9304 = vst [vmem:[#allocation20_spill] sm:$0xff] %v7977_v5  ;;  %v7987_v14 = vpack.c.bf16 %v338_v9, %v335_v7  ;;  %v7989_v16 = vpack.c.bf16 %v340_v11, %v337_v10  ;;  %v341_v17 = vld [vmem:[#allocation8 + $0x150] sm:$0xff]  ;;  %v344_v19 = vld [vmem:[#allocation8 + $0x168] sm:$0xff]  ;;  %v343_v20 = vld [vmem:[#allocation8 + $0x160] sm:$0xff] }
  0x6b   :  { %9305 = vst [vmem:[#allocation21_spill] sm:$0xff] %v7979_v6  ;;  %9306 = vst [vmem:[#allocation22_spill] sm:$0xff] %v7983_v8  ;;  %v7997_v24 = vpack.c.bf16 %v344_v19, %v341_v17  ;;  %v8008_v27 = vld [vmem:[%s9170_s1] sm:$0x1]  ;;  %v561_v28 = vld [vmem:[#allocation6 + $0x188] sm:$0xff] }
  0x6c   :  { %6032 = vmatpush1.bf16.msra.mxu0 %v6031_v12  ;;  %6056 = vmatpush3.bf16.msra.mxu1 %v6055_v13  ;;  %v342_v12 = vld [vmem:[#allocation8 + $0x158] sm:$0xff]  ;;  %v345_v13 = vld [vmem:[#allocation8 + $0x170] sm:$0xff]  ;;  %9307 = vst [vmem:[#allocation23_spill] sm:$0xff] %v7987_v14  ;;  %9308 = vst [vmem:[#allocation24_spill] sm:$0xff] %v7989_v16 }
  0x6d   :  { %6058 = vmatprep.subr.bf16.mxu0 %v7922_v15  ;;  %6089 = vmatprep.subr.bf16.mxu1 %v9181_v0  ;;  %v7993_v18 = vpack.c.bf16 %v345_v13, %v342_v12  ;;  %9310 = vst [vmem:[#allocation26_spill] sm:$0xff] %v7997_v24  ;;  %v564_v29 = vld [vmem:[#allocation6 + $0x1a0] sm:$0xff]  ;;  %v563_v35 = vld [vmem:[#allocation6 + $0x198] sm:$0xff]  ;;  %v562_v36 = vld [vmem:[#allocation6 + $0x190] sm:$0xff] }
  0x6e   :  { %v8016_v30 = vpack.c.bf16 %v564_v29, %v561_v28  ;;  %v560_v33 = vld [vmem:[#allocation6 + $0x180] sm:$0xff]  ;;  %v565_v38 = vld [vmem:[#allocation6 + $0x1a8] sm:$0xff]  ;;  %v567_v42 = vld [vmem:[#allocation6 + $0x1b8] sm:$0xff] }
  0x6f   :  { %217 = vmatmul.mubr.f32.vlgmr.msra.gmra.mrb[0].mxu0 %v86_v21  ;;  %5124 = vmatmul.mubr.f32.vlgmr.msra.gmra.mrb[0].mxu1 %v86_v21  ;;  %9309 = vst [vmem:[#allocation25_spill] sm:$0xff] %v7993_v18  ;;  %v346_v21 = vld [vmem:[#allocation8 + $0x178] sm:$0xff]  ;;  %v8018_v37 = vpack.c.bf16 %v563_v35, %v560_v33  ;;  %v8021_v39 = vpack.c.bf16 %v565_v38, %v562_v36  ;;  %v570_v44 = vld [vmem:[#allocation6 + $0x1d0] sm:$0xff]  ;;  %v569_v47 = vld [vmem:[#allocation6 + $0x1c8] sm:$0xff] }
  0x70   :  { %6060 = vmatpush1.bf16.msra.mxu0 %v7924_v22  ;;  %6091 = vmatpush3.bf16.msra.mxu1 %v7926_v23  ;;  %v7999_v26 = vpack.c.bf16 %v346_v21, %v343_v20  ;;  %9312 = vst [vmem:[#allocation28_spill] sm:$0xff] %v8016_v30  ;;  %v8025_v45 = vpack.c.bf16 %v570_v44, %v567_v42  ;;  %v566_v46 = vld [vmem:[#allocation6 + $0x1b0] sm:$0xff]  ;;  %v568_v48 = vld [vmem:[#allocation6 + $0x1c0] sm:$0xff]  ;;  %v571_v53 = vld [vmem:[#allocation6 + $0x1d8] sm:$0xff] }
  0x71   :  { %6062 = vmatprep.subr.bf16.mxu0 %v7930_v25  ;;  %6092 = vmatprep.subr.bf16.mxu1 %v9181_v0  ;;  %9313 = vst [vmem:[#allocation29_spill] sm:$0xff] %v8018_v37  ;;  %9314 = vst [vmem:[#allocation30_spill] sm:$0xff] %v8021_v39  ;;  %v8028_v51 = vpack.c.bf16 %v569_v47, %v566_v46  ;;  %v8031_v54 = vpack.c.bf16 %v571_v53, %v568_v48  ;;  %v573_v55 = vld [vmem:[#allocation6 + $0x1e8] sm:$0xff]  ;;  %v576_v56 = vld [vmem:[#allocation6 + $0x200] sm:$0xff] }
  0x72   :  { %428 = vmatprep.mubr.f32.mxu0 %v9179_v1  ;;  %5158 = vmatprep.mubr.msk.f32.mxu1 %vm7801_vm0, %v9179_v1  ;;  %9311 = vst [vmem:[#allocation27_spill] sm:$0xff] %v7999_v26  ;;  %9315 = vst [vmem:[#allocation31_spill] sm:$0xff] %v8025_v45  ;;  %v8035_v57 = vpack.c.bf16 %v576_v56, %v573_v55  ;;  %v572_v60 = vld [vmem:[#allocation6 + $0x1e0] sm:$0xff]  ;;  %v575_v62 = vld [vmem:[#allocation6 + $0x1f8] sm:$0xff] }
  0x73   :  { %9316 = vst [vmem:[#allocation32_spill] sm:$0xff] %v8028_v51  ;;  %9317 = vst [vmem:[#allocation33_spill] sm:$0xff] %v8031_v54  ;;  %v574_v63 = vld [vmem:[#allocation6 + $0x1f0] sm:$0xff]  ;;  %v8038_v2 = vpack.c.bf16 %v575_v62, %v572_v60  ;;  %v577_v3 = vld [vmem:[#allocation6 + $0x208] sm:$0xff] }
  0x74   :  { %6064 = vmatpush1.bf16.msra.mxu0 %v7934_v31  ;;  %6094 = vmatpush3.bf16.msra.mxu1 %v7936_v32  ;;  %9318 = vst [vmem:[#allocation34_spill] sm:$0xff] %v8035_v57  ;;  %v8041_v4 = vpack.c.bf16 %v577_v3, %v574_v63  ;;  %v579_v7 = vld [vmem:[#allocation6 + $0x218] sm:$0xff]  ;;  %v582_v9 = vld [vmem:[#allocation6 + $0x230] sm:$0xff]  ;;  %v581_v12 = vld [vmem:[#allocation6 + $0x228] sm:$0xff] }
  0x75   :  { %6066 = vmatprep.subr.bf16.mxu0 %v7940_v34  ;;  %6095 = vmatprep.subr.bf16.mxu1 %v9181_v0  ;;  %9319 = vst [vmem:[#allocation35_spill] sm:$0xff] %v8038_v2  ;;  %v8045_v10 = vpack.c.bf16 %v582_v9, %v579_v7  ;;  %v578_v11 = vld [vmem:[#allocation6 + $0x210] sm:$0xff]  ;;  %v580_v13 = vld [vmem:[#allocation6 + $0x220] sm:$0xff]  ;;  %v583_v19 = vld [vmem:[#allocation6 + $0x238] sm:$0xff] }
  0x76   :  { %9320 = vst [vmem:[#allocation36_spill] sm:$0xff] %v8041_v4  ;;  %v8048_v17 = vpack.c.bf16 %v581_v12, %v578_v11  ;;  %v8051_v20 = vpack.c.bf16 %v583_v19, %v580_v13  ;;  %v585_v21 = vld [vmem:[#allocation6 + $0x248] sm:$0xff]  ;;  %v588_v28 = vld [vmem:[#allocation6 + $0x260] sm:$0xff]  ;;  %v587_v35 = vld [vmem:[#allocation6 + $0x258] sm:$0xff] }
  0x77   :  { %9321 = vst [vmem:[#allocation37_spill] sm:$0xff] %v8045_v10  ;;  %v8055_v29 = vpack.c.bf16 %v588_v28, %v585_v21  ;;  %v584_v33 = vld [vmem:[#allocation6 + $0x240] sm:$0xff]  ;;  %v586_v36 = vld [vmem:[#allocation6 + $0x250] sm:$0xff]  ;;  %v589_v42 = vld [vmem:[#allocation6 + $0x268] sm:$0xff] }
  0x78   :  { %6068 = vmatpush1.bf16.msra.mxu0 %v7947_v40  ;;  %6097 = vmatpush3.bf16.msra.mxu1 %v7949_v41  ;;  %9322 = vst [vmem:[#allocation38_spill] sm:$0xff] %v8048_v17  ;;  %9323 = vst [vmem:[#allocation39_spill] sm:$0xff] %v8051_v20  ;;  %v8058_v38 = vpack.c.bf16 %v587_v35, %v584_v33  ;;  %v8061_v44 = vpack.c.bf16 %v589_v42, %v586_v36  ;;  %v591_v46 = vld [vmem:[#allocation6 + $0x278] sm:$0xff]  ;;  %v594_v47 = vld [vmem:[#allocation6 + $0x290] sm:$0xff] }
  0x79   :  { %6070 = vmatprep.subr.bf16.mxu0 %v7953_v43  ;;  %6098 = vmatprep.subr.bf16.mxu1 %v9181_v0  ;;  %9324 = vst [vmem:[#allocation40_spill] sm:$0xff] %v8055_v29  ;;  %v8065_v48 = vpack.c.bf16 %v594_v47, %v591_v46  ;;  %v590_v53 = vld [vmem:[#allocation6 + $0x270] sm:$0xff]  ;;  %v593_v55 = vld [vmem:[#allocation6 + $0x288] sm:$0xff]  ;;  %v592_v56 = vld [vmem:[#allocation6 + $0x280] sm:$0xff] }
  0x7a   :  { %9325 = vst [vmem:[#allocation41_spill] sm:$0xff] %v8058_v38  ;;  %9326 = vst [vmem:[#allocation42_spill] sm:$0xff] %v8061_v44  ;;  %v8068_v60 = vpack.c.bf16 %v593_v55, %v590_v53  ;;  %v595_v62 = vld [vmem:[#allocation6 + $0x298] sm:$0xff]  ;;  %v597_v63 = vld [vmem:[#allocation6 + $0x2a8] sm:$0xff] }
  0x7b   :  { %9327 = vst [vmem:[#allocation43_spill] sm:$0xff] %v8065_v48  ;;  %v600_v3 = vld [vmem:[#allocation6 + $0x2c0] sm:$0xff]  ;;  %v8071_v7 = vpack.c.bf16 %v595_v62, %v592_v56  ;;  %v599_v12 = vld [vmem:[#allocation6 + $0x2b8] sm:$0xff]  ;;  %v598_v13 = vld [vmem:[#allocation6 + $0x2b0] sm:$0xff] }
  0x7c   :  { %6072 = vmatpush1.bf16.msra.mxu0 %v7957_v49  ;;  %6100 = vmatpush3.bf16.msra.mxu1 %v7959_v50  ;;  %9328 = vst [vmem:[#allocation44_spill] sm:$0xff] %v8068_v60  ;;  %v8073_v9 = vpack.c.bf16 %v600_v3, %v597_v63  ;;  %v596_v11 = vld [vmem:[#allocation6 + $0x2a0] sm:$0xff]  ;;  %v601_v21 = vld [vmem:[#allocation6 + $0x2c8] sm:$0xff]  ;;  %v603_v28 = vld [vmem:[#allocation6 + $0x2d8] sm:$0xff] }
  0x7d   :  { %6074 = vmatprep.subr.bf16.mxu0 %v7963_v52  ;;  %6101 = vmatprep.subr.bf16.mxu1 %v9181_v0  ;;  %9329 = vst [vmem:[#allocation45_spill] sm:$0xff] %v8071_v7  ;;  %v8076_v19 = vpack.c.bf16 %v599_v12, %v596_v11  ;;  %v606_v33 = vld [vmem:[#allocation6 + $0x2f0] sm:$0xff]  ;;  %v8080_v35 = vpack.c.bf16 %v601_v21, %v598_v13  ;;  %v605_v46 = vld [vmem:[#allocation6 + $0x2e8] sm:$0xff]  ;;  %v604_v47 = vld [vmem:[#allocation6 + $0x2e0] sm:$0xff]  ;;  %v137_v11 = vlaneseq }
  0x7e   :  { %9330 = vst [vmem:[#allocation46_spill] sm:$0xff] %v8073_v9  ;;  %v8082_v36 = vpack.c.bf16 %v606_v33, %v603_v28  ;;  %v602_v42 = vld [vmem:[#allocation6 + $0x2d0] sm:$0xff]  ;;  %v607_v53 = vld [vmem:[#allocation6 + $0x2f8] sm:$0xff]  ;;  %v769_v55 = vld [vmem:[#allocation8 + $0x188] sm:$0xff] }
  0x7f   :  { %9331 = vst [vmem:[#allocation47_spill] sm:$0xff] %v8076_v19  ;;  %9332 = vst [vmem:[#allocation48_spill] sm:$0xff] %v8080_v35  ;;  %v772_v56 = vld [vmem:[#allocation8 + $0x1a0] sm:$0xff]  ;;  %v8086_v62 = vpack.c.bf16 %v605_v46, %v602_v42  ;;  %v8090_v63 = vpack.c.bf16 %v607_v53, %v604_v47  ;;  %v138_v12 = vshrl.u32 %v137_v11, 7 }
  0x80   :  { %6076 = vmatpush1.bf16.msra.mxu0 %v7967_v58  ;;  %6103 = vmatpush3.bf16.msra.mxu1 %v7969_v59  ;;  %9333 = vst [vmem:[#allocation49_spill] sm:$0xff] %v8082_v36  ;;  %v8092_v3 = vpack.c.bf16 %v772_v56, %v769_v55  ;;  %v135_v28 = vld [vmem:[%s9173_s4] sm:$0x7] }
  0x81   :  { %6078 = vmatprep.subr.bf16.mxu0 %v7973_v61  ;;  %6104 = vmatprep.subr.bf16.mxu1 %v9181_v0  ;;  %9334 = vst [vmem:[#allocation50_spill] sm:$0xff] %v8086_v62  ;;  %9335 = vst [vmem:[#allocation51_spill] sm:$0xff] %v8090_v63  ;;  %v8099_v13 = vsub.s32 0, %v138_v12  ;;  %v8101_v21 = vsub.s32 2, %v138_v12  ;;  %v8106_v33 = vsub.s32 1, %v138_v12 }
  0x82   :  { %9336 = vst [vmem:[#allocation52_spill] sm:$0xff] %v8092_v3 }
  0x83   :  { %9337 = vst [vmem:[#allocation53_spill] sm:$0xff] %v8099_v13  ;;  %9338 = vst [vmem:[#allocation54_spill] sm:$0xff] %v8101_v21  ;;  %v140_v42 = vrot.slane %v135_v28, %v8099_v13  ;;  %v148_v46 = vrot.slane %v135_v28, %v8101_v21  ;;  %v144_v47 = vrot.slane %v135_v28, %v8106_v33 }
  0x84   :  { %6080 = vmatpush1.bf16.msra.mxu0 %v7977_v5  ;;  %6106 = vmatpush3.bf16.msra.mxu1 %v7979_v6  ;;  %9339 = vst [vmem:[#allocation55_spill] sm:$0xff] %v8106_v33 }
  0x85   :  { %6082 = vmatprep.subr.bf16.mxu0 %v7983_v8  ;;  %6107 = vmatprep.subr.bf16.mxu1 %v9181_v0 }
  0x88   :  { %6084 = vmatpush1.bf16.msra.mxu0 %v7987_v14  ;;  %6109 = vmatpush3.bf16.msra.mxu1 %v7989_v16 }
  0x89   :  { %6086 = vmatprep.subr.bf16.mxu0 %v7993_v18  ;;  %6110 = vmatprep.subr.bf16.mxu1 %v9181_v0 }
  0x8c   :  { %6088 = vmatpush1.bf16.msra.mxu0 %v7997_v24  ;;  %6112 = vmatpush3.bf16.msra.mxu1 %v7999_v26 }
  0x8d   :  { %6145 = vmatprep.subr.bf16.mxu1 %v9181_v0  ;;  %6114 = vmatprep.subr.bf16.mxu0 %v8016_v30 }
  0x8f   :  { %429 = vmatmul.mubr.f32.vlgmr.msra.gmra.mrb[2].mxu0 %v8008_v27  ;;  %5159 = vmatmul.mubr.f32.vlgmr.msra.gmra.mrb[2].mxu1 %v8008_v27 }
  0x90   :  { %690 = vmatprep.mubr.f32.mxu0 %v9179_v1  ;;  %5193 = vmatprep.mubr.msk.f32.mxu1 %vm7801_vm0, %v9179_v1 }
  0x91   :  { %6116 = vmatpush1.bf16.msra.mxu0 %v8018_v37  ;;  %6147 = vmatpush3.bf16.msra.mxu1 %v8021_v39 }
  0x92   :  { %6148 = vmatprep.subr.bf16.mxu1 %v9181_v0  ;;  %6118 = vmatprep.subr.bf16.mxu0 %v8025_v45 }
  0x95   :  { %6120 = vmatpush1.bf16.msra.mxu0 %v8028_v51  ;;  %6150 = vmatpush3.bf16.msra.mxu1 %v8031_v54 }
  0x96   :  { %6151 = vmatprep.subr.bf16.mxu1 %v9181_v0  ;;  %6122 = vmatprep.subr.bf16.mxu0 %v8035_v57 }
  0x99   :  { %6124 = vmatpush1.bf16.msra.mxu0 %v8038_v2  ;;  %6153 = vmatpush3.bf16.msra.mxu1 %v8041_v4 }
  0x9a   :  { %6154 = vmatprep.subr.bf16.mxu1 %v9181_v0  ;;  %6126 = vmatprep.subr.bf16.mxu0 %v8045_v10 }
  0x9d   :  { %6128 = vmatpush1.bf16.msra.mxu0 %v8048_v17  ;;  %6156 = vmatpush3.bf16.msra.mxu1 %v8051_v20 }
  0x9e   :  { %6157 = vmatprep.subr.bf16.mxu1 %v9181_v0  ;;  %6130 = vmatprep.subr.bf16.mxu0 %v8055_v29 }
  0xa1   :  { %6132 = vmatpush1.bf16.msra.mxu0 %v8058_v38  ;;  %6159 = vmatpush3.bf16.msra.mxu1 %v8061_v44 }
  0xa2   :  { %6160 = vmatprep.subr.bf16.mxu1 %v9181_v0  ;;  %6134 = vmatprep.subr.bf16.mxu0 %v8065_v48 }
  0xa5   :  { %6136 = vmatpush1.bf16.msra.mxu0 %v8068_v60  ;;  %6162 = vmatpush3.bf16.msra.mxu1 %v8071_v7 }
  0xa6   :  { %6138 = vmatprep.subr.bf16.mxu0 %v8073_v9  ;;  %6163 = vmatprep.subr.bf16.mxu1 %v9181_v0  ;;  %v784_v9 = vld [vmem:[#allocation8 + $0x200] sm:$0xff] }
  0xa9   :  { %6140 = vmatpush1.bf16.msra.mxu0 %v8076_v19  ;;  %6165 = vmatpush3.bf16.msra.mxu1 %v8080_v35 }
  0xaa   :  { %6142 = vmatprep.subr.bf16.mxu0 %v8082_v36  ;;  %6166 = vmatprep.subr.bf16.mxu1 %v9181_v0  ;;  %v347_v36 = vld [vmem:[%s9174_s5] sm:$0x7] }
  0xab   :  { %v8115_v19 = vrot.slane %v347_v36, %v8099_v13  ;;  %v8118_v28 = vrot.slane %v347_v36, %v8101_v21 }
  0xad   :  { %6144 = vmatpush1.bf16.msra.mxu0 %v8086_v62  ;;  %6168 = vmatpush3.bf16.msra.mxu1 %v8090_v63  ;;  %v7802_v63 = vmov 1966171168   ;;  %9340 = vst [vmem:[#allocation56_spill] sm:$0xff] %v8115_v19  ;;  %9341 = vst [vmem:[#allocation57_spill] sm:$0xff] %v8118_v28 }
  0xae   :  { %6170 = vmatprep.subr.bf16.mxu0 %v8092_v3  ;;  %6201 = vmatprep.subr.bf16.mxu1 %v9181_v0  ;;  %v511_v62 = vunpack.c.l.s4 %v7802_v63 }
  0xb0   :  { %v512_v35 = vunpack.c.0.s8 %v511_v62 }
 0x142   :  { %v218_v53 = vpop.f32.mrb[0].mxu0  ;;  %v289_v55 = vpop.f32.mrb[0].mxu1 }
 0x143   :  { %v219_v56 = vadd.f32 %v218_v53, %v140_v42  ;;  %v220_v11 = vpop.f32.mrb[1].mxu0  ;;  %v290_v1 = vadd.f32 %v289_v55, %v148_v46  ;;  %v5125_v0 = vpop.f32.mrb[1].mxu1  ;;  %v8121_v42 = vrot.slane %v347_v36, %v8106_v33 }
 0x144   :  { %v221_v3 = vadd.f32 %v220_v11, %v144_v47  ;;  %v8123_v0 = vsub.s32 %v512_v35, %v138_v12 }
 0x145   :  { %293 = vst [vmem:[#allocation2] sm:$0xff] %v219_v56  ;;  %295 = vst [vmem:[#allocation2 + $0x10] sm:$0xff] %v290_v1 }
 0x146   :  { %294 = vst [vmem:[#allocation2 + $0x8] sm:$0xff] %v221_v3  ;;  %9342 = vst [vmem:[#allocation58_spill] sm:$0xff] %v8121_v42 }
 0x147   :  { %9343 = vst [vmem:[#allocation59_spill] sm:$0xff] %v8123_v0 }
 0x14d   :  { %v505_v35 = vld [vmem:[#allocation2] ss:$8 sm:$0x7] }
 0x162   :  { %v430_v1 = vpop.f32.mrb[2].mxu0  ;;  %v501_v3 = vpop.f32.mrb[2].mxu1 }
 0x163   :  { %v431_v63 = vadd.f32 %v430_v1, %v8115_v19  ;;  %v432_v46 = vpop.f32.mrb[3].mxu0  ;;  %v502_v47 = vadd.f32 %v501_v3, %v8118_v28  ;;  %v5160_v53 = vpop.f32.mrb[3].mxu1 }
 0x164   :  { %v433_v62 = vadd.f32 %v432_v46, %v8121_v42  ;;  %v551_v42 = vrot.slane %v505_v35, 2 }
 0x165   :  { %v523_v56 = vrot.slane %v502_v47, %v8123_v0 }
 0x166   :  { %v509_v55 = vcombine.low %v431_v63, %v433_v62 }
 0x168   :  { %v516_v11 = vrot.slane %v509_v55, %v8123_v0 }
 0x16a   :  { %v524_v21 = vcombine.low %v516_v11, %v523_v56 }
 0x16c   :  { %v531_v36 = vrot.slane %v524_v21, %v8123_v0  ;;  %v768_v21 = vld [vmem:[#allocation8 + $0x180] sm:$0xff]  ;;  %v770_v0 = vld [vmem:[#allocation8 + $0x190] sm:$0xff] }
 0x16e   :  { %v533_v12 = vadd.f32 %v531_v36, %v505_v35  ;;  %v771_v36 = vld [vmem:[#allocation8 + $0x198] sm:$0xff] }
 0x170   :  { %v4615_v33 = vmul.f32 -1.442695, %v533_v12  ;;  %v541_v13 = vrot.slane %v533_v12, 1  ;;  %v773_v12 = vld [vmem:[#allocation8 + $0x1a8] sm:$0xff] }
 0x172   :  { %7489 = vpow2.f32 %v4615_v33  ;;  %v4616_v1 = vmul.f32 -1.442695, %v541_v13  ;;  %v775_v13 = vld [vmem:[#allocation8 + $0x1b8] sm:$0xff] }
 0x174   :  { %7491 = vpow2.f32 %v4616_v1  ;;  %v778_v1 = vld [vmem:[#allocation8 + $0x1d0] sm:$0xff] }
 0x17c   :  { %v7490_v19 = vpop.eup %7489 }
 0x17d   :  { %v537_v3 = vadd.f32 1.0, %v7490_v19 }
 0x17e   :  { %v7492_v53 = vpop.eup %7491 }
 0x17f   :  { %7493 = vrcp.f32 %v537_v3  ;;  %v546_v46 = vadd.f32 1.0, %v7492_v53  ;;  %v8132_v3 = vpack.c.bf16 %v771_v36, %v768_v21  ;;  %v8134_v53 = vpack.c.bf16 %v773_v12, %v770_v0  ;;  %v782_v36 = vld [vmem:[#allocation8 + $0x1f0] sm:$0xff]  ;;  %v785_v12 = vld [vmem:[#allocation8 + $0x208] sm:$0xff] }
 0x181   :  { %7495 = vrcp.f32 %v546_v46  ;;  %9344 = vst [vmem:[#allocation60_spill] sm:$0xff] %v8134_v53  ;;  %v777_v46 = vld [vmem:[#allocation8 + $0x1c8] sm:$0xff] }
 0x189   :  { %v7494_v63 = vpop.eup %7493 }
 0x18a   :  { %v549_v62 = vmul.f32 %v7494_v63, %v502_v47  ;;  %v774_v47 = vld [vmem:[#allocation8 + $0x1b0] sm:$0xff]  ;;  %v776_v63 = vld [vmem:[#allocation8 + $0x1c0] sm:$0xff] }
 0x18b   :  { %v7496_v56 = vpop.eup %7495 }
 0x18c   :  { %v553_v55 = vadd.f32 %v551_v42, %v549_v62  ;;  %v555_v11 = vsub.f32 1.0, %v7496_v56  ;;  %v557_v19 = vmul.f32 %v7496_v56, %v8008_v27  ;;  %v8138_v42 = vpack.c.bf16 %v778_v1, %v775_v13  ;;  %v779_v62 = vld [vmem:[#allocation8 + $0x1d8] sm:$0xff]  ;;  %v790_v13 = vld [vmem:[#allocation8 + $0x230] sm:$0xff] }
 0x18d   :  { %v8144_v27 = vpack.c.bf16 %v777_v46, %v774_v47  ;;  %v8146_v0 = vpack.c.bf16 %v779_v62, %v776_v63  ;;  %v9348_v56 = vmov 0.0|0.0   ;;  %v9350_v1 = vmov 0.0   ;;  %v789_v63 = vld [vmem:[#allocation8 + $0x228] sm:$0xff]  ;;  %v788_v62 = vld [vmem:[#allocation8 + $0x220] sm:$0xff] }
 0x18e   :  { %7497 = vtanh.f32 %v553_v55  ;;  %9345 = vst [vmem:[#allocation61_spill] sm:$0xff] %v8138_v42  ;;  %v781_v55 = vld [vmem:[#allocation8 + $0x1e8] sm:$0xff]  ;;  %v8159_v47 = vpack.c.bf16 %v785_v12, %v782_v36  ;;  %v792_v36 = vld [vmem:[#allocation8 + $0x240] sm:$0xff] }
 0x18f   :  { %9346 = vst [vmem:[#allocation62_spill] sm:$0xff] %v8144_v27  ;;  %9347 = vst [vmem:[#allocation63_spill] sm:$0xff] %v8146_v0  ;;  %v8150_v21 = vpack.c.bf16 %v784_v9, %v781_v55  ;;  %v786_v9 = vld [vmem:[#allocation8 + $0x210] sm:$0xff]  ;;  %v791_v55 = vld [vmem:[#allocation8 + $0x238] sm:$0xff] }
 0x190   :  { %9352 = vst [vmem:[#allocation66_spill] sm:$0xff] %v8159_v47 }
 0x191   :  { %9349 = vst [vmem:[#allocation64_spill] sm:$0xff] %v8150_v21 }
 0x198   :  { %v7498_v33 = vpop.eup %7497 }
 0x199   :  { %v556_v28 = vmul.f32 %v7498_v33, %v555_v11  ;;  %v783_v11 = vld [vmem:[#allocation8 + $0x1f8] sm:$0xff] }
 0x19a   :  { %v787_v33 = vld [vmem:[#allocation8 + $0x218] sm:$0xff] }
 0x19b   :  { %v8136_v35 = vadd.f32 %v557_v19, %v556_v28  ;;  %v780_v28 = vld [vmem:[#allocation8 + $0x1e0] sm:$0xff]  ;;  %v8163_v46 = vpack.c.bf16 %v790_v13, %v787_v33  ;;  %v795_v33 = vld [vmem:[#allocation8 + $0x258] sm:$0xff]  ;;  %v794_v13 = vld [vmem:[#allocation8 + $0x250] sm:$0xff] }
 0x19c   :  { %v8157_v19 = vpack.c.bf16 %v783_v11, %v780_v28  ;;  %v8167_v28 = vpack.c.bf16 %v789_v63, %v786_v9  ;;  %v8169_v11 = vpack.c.bf16 %v791_v55, %v788_v62  ;;  %v8177_v9 = vpack.c.bf16 %v795_v33, %v792_v36  ;;  %v798_v62 = vld [vmem:[#allocation8 + $0x270] sm:$0xff]  ;;  %v800_v55 = vld [vmem:[#allocation8 + $0x280] sm:$0xff] }
 0x19d   :  { %691 = vmatmul.mubr.f32.vlgmr.msra.gmra.mrb[4].mxu0 %v8136_v35  ;;  %5194 = vmatmul.mubr.f32.vlgmr.msra.gmra.mrb[4].mxu1 %v8136_v35  ;;  %9353 = vst [vmem:[#allocation67_spill] sm:$0xff] %v8163_v46  ;;  %v804_v33 = vld [vmem:[#allocation8 + $0x2a0] sm:$0xff] }
 0x19e   :  { %6172 = vmatpush1.bf16.msra.mxu0 %v8132_v3  ;;  %6203 = vmatpush3.bf16.msra.mxu1 %v8134_v53  ;;  %9351 = vst [vmem:[#allocation65_spill] sm:$0xff] %v8157_v19  ;;  %v796_v53 = vld [vmem:[#allocation8 + $0x260] sm:$0xff]  ;;  %9354 = vst [vmem:[#allocation68_spill] sm:$0xff] %v8167_v28 }
 0x19f   :  { %6174 = vmatprep.subr.bf16.mxu0 %v8138_v42  ;;  %6204 = vmatprep.subr.bf16.mxu1 %v9348_v56  ;;  %v793_v42 = vld [vmem:[#allocation8 + $0x248] sm:$0xff]  ;;  %9355 = vst [vmem:[#allocation69_spill] sm:$0xff] %v8169_v11 }
 0x1a0   :  { %898 = vmatprep.mubr.f32.mxu0 %v9350_v1  ;;  %5228 = vmatprep.mubr.msk.f32.mxu1 %vm7801_vm0, %v9350_v1  ;;  %v8173_v12 = vpack.c.bf16 %v796_v53, %v793_v42  ;;  %v801_v42 = vld [vmem:[#allocation8 + $0x288] sm:$0xff] }
 0x1a1   :  { %v8187_v36 = vpack.c.bf16 %v801_v42, %v798_v62  ;;  %v810_v42 = vld [vmem:[#allocation8 + $0x2d0] sm:$0xff] }
 0x1a2   :  { %6176 = vmatpush1.bf16.msra.mxu0 %v8144_v27  ;;  %6206 = vmatpush3.bf16.msra.mxu1 %v8146_v0  ;;  %9356 = vst [vmem:[#allocation70_spill] sm:$0xff] %v8173_v12  ;;  %v799_v0 = vld [vmem:[#allocation8 + $0x278] sm:$0xff]  ;;  %v802_v27 = vld [vmem:[#allocation8 + $0x290] sm:$0xff] }
 0x1a3   :  { %6178 = vmatprep.subr.bf16.mxu0 %v8150_v21  ;;  %6207 = vmatprep.subr.bf16.mxu1 %v9348_v56  ;;  %v797_v21 = vld [vmem:[#allocation8 + $0x268] sm:$0xff]  ;;  %v8183_v53 = vpack.c.bf16 %v802_v27, %v799_v0  ;;  %9358 = vst [vmem:[#allocation72_spill] sm:$0xff] %v8187_v36  ;;  %v807_v0 = vld [vmem:[#allocation8 + $0x2b8] sm:$0xff] }
 0x1a4   :  { %v8179_v63 = vpack.c.bf16 %v797_v21, %v794_v13  ;;  %v806_v13 = vld [vmem:[#allocation8 + $0x2b0] sm:$0xff]  ;;  %v8197_v62 = vpack.c.bf16 %v807_v0, %v804_v33 }
 0x1a5   :  { %9357 = vst [vmem:[#allocation71_spill] sm:$0xff] %v8183_v53  ;;  %v9362_v0 = vld [vmem:[#allocation49_spill] sm:$0xff] }
 0x1a6   :  { %6180 = vmatpush1.bf16.msra.mxu0 %v8157_v19  ;;  %6209 = vmatpush3.bf16.msra.mxu1 %v8159_v47  ;;  %v805_v47 = vld [vmem:[#allocation8 + $0x2a8] sm:$0xff]  ;;  %v808_v19 = vld [vmem:[#allocation8 + $0x2c0] sm:$0xff] }
 0x1a7   :  { %6182 = vmatprep.subr.bf16.mxu0 %v8163_v46  ;;  %6210 = vmatprep.subr.bf16.mxu1 %v9348_v56  ;;  %v803_v46 = vld [vmem:[#allocation8 + $0x298] sm:$0xff]  ;;  %v8193_v27 = vpack.c.bf16 %v808_v19, %v805_v47  ;;  %v813_v47 = vld [vmem:[#allocation8 + $0x2e8] sm:$0xff] }
 0x1a8   :  { %v8189_v21 = vpack.c.bf16 %v803_v46, %v800_v55  ;;  %v812_v55 = vld [vmem:[#allocation8 + $0x2e0] sm:$0xff] }
 0x1aa   :  { %6184 = vmatpush1.bf16.msra.mxu0 %v8167_v28  ;;  %6212 = vmatpush3.bf16.msra.mxu1 %v8169_v11  ;;  %v811_v11 = vld [vmem:[#allocation8 + $0x2d8] sm:$0xff]  ;;  %v814_v28 = vld [vmem:[#allocation8 + $0x2f0] sm:$0xff] }
 0x1ab   :  { %6186 = vmatprep.subr.bf16.mxu0 %v8173_v12  ;;  %6213 = vmatprep.subr.bf16.mxu1 %v9348_v56  ;;  %v809_v12 = vld [vmem:[#allocation8 + $0x2c8] sm:$0xff]  ;;  %v8203_v19 = vpack.c.bf16 %v814_v28, %v811_v11  ;;  %v8218_v28 = vld [vmem:[%s9170_s1 + $0x1] sm:$0x1] }
 0x1ac   :  { %v8199_v46 = vpack.c.bf16 %v809_v12, %v806_v13  ;;  %v9359_v11 = vld [vmem:[#allocation46_spill] sm:$0xff]  ;;  %v9360_v12 = vld [vmem:[#allocation47_spill] sm:$0xff] }
 0x1ad   :  { %v9363_v13 = vld [vmem:[#allocation50_spill] sm:$0xff] }
 0x1ae   :  { %6188 = vmatpush1.bf16.msra.mxu0 %v8177_v9  ;;  %6215 = vmatpush3.bf16.msra.mxu1 %v8179_v63 }
 0x1af   :  { %6190 = vmatprep.subr.bf16.mxu0 %v8183_v53  ;;  %6216 = vmatprep.subr.bf16.mxu1 %v9348_v56  ;;  %v815_v53 = vld [vmem:[#allocation8 + $0x2f8] sm:$0xff] }
 0x1b0   :  { %v8209_v33 = vpack.c.bf16 %v815_v53, %v812_v55  ;;  %v9361_v53 = vld [vmem:[#allocation48_spill] sm:$0xff] }
 0x1b2   :  { %6192 = vmatpush1.bf16.msra.mxu0 %v8187_v36  ;;  %6218 = vmatpush3.bf16.msra.mxu1 %v8189_v21  ;;  %v8207_v36 = vpack.c.bf16 %v813_v47, %v810_v42  ;;  %v9364_v42 = vld [vmem:[#allocation51_spill] sm:$0xff]  ;;  %v9365_v47 = vld [vmem:[#allocation52_spill] sm:$0xff] }
 0x1b3   :  { %6194 = vmatprep.subr.bf16.mxu0 %v8193_v27  ;;  %6219 = vmatprep.subr.bf16.mxu1 %v9348_v56 }
 0x1b6   :  { %6196 = vmatpush1.bf16.msra.mxu0 %v8197_v62  ;;  %6221 = vmatpush3.bf16.msra.mxu1 %v8199_v46 }
 0x1b7   :  { %6198 = vmatprep.subr.bf16.mxu0 %v8203_v19  ;;  %6222 = vmatprep.subr.bf16.mxu1 %v9348_v56 }
 0x1ba   :  { %6200 = vmatpush1.bf16.msra.mxu0 %v8207_v36  ;;  %6224 = vmatpush3.bf16.msra.mxu1 %v8209_v33 }
 0x1bb   :  { %6226 = vmatprep.subr.bf16.mxu0 %v7922_v15  ;;  %6257 = vmatprep.subr.bf16.mxu1 %v9348_v56 }
 0x1bd   :  { %899 = vmatmul.mubr.f32.vlgmr.msra.gmra.mrb[4].mxu0 %v8218_v28  ;;  %5229 = vmatmul.mubr.f32.vlgmr.msra.gmra.mrb[6].mxu1 %v8218_v28 }
 0x1be   :  { %6228 = vmatpush1.bf16.msra.mxu0 %v7924_v22  ;;  %6259 = vmatpush3.bf16.msra.mxu1 %v7926_v23 }
 0x1bf   :  { %6230 = vmatprep.subr.bf16.mxu0 %v7930_v25  ;;  %6260 = vmatprep.subr.bf16.mxu1 %v9348_v56 }
 0x1c0   :  { %1060 = vmatprep.mubr.f32.mxu0 %v9350_v1  ;;  %5263 = vmatprep.mubr.msk.f32.mxu1 %vm7801_vm0, %v9350_v1 }
 0x1c2   :  { %6232 = vmatpush1.bf16.msra.mxu0 %v7934_v31  ;;  %6262 = vmatpush3.bf16.msra.mxu1 %v7936_v32 }
 0x1c3   :  { %6234 = vmatprep.subr.bf16.mxu0 %v7940_v34  ;;  %6263 = vmatprep.subr.bf16.mxu1 %v9348_v56 }
 0x1c6   :  { %6236 = vmatpush1.bf16.msra.mxu0 %v7947_v40  ;;  %6265 = vmatpush3.bf16.msra.mxu1 %v7949_v41 }
 0x1c7   :  { %6238 = vmatprep.subr.bf16.mxu0 %v7953_v43  ;;  %6266 = vmatprep.subr.bf16.mxu1 %v9348_v56 }
 0x1ca   :  { %6240 = vmatpush1.bf16.msra.mxu0 %v7957_v49  ;;  %6268 = vmatpush3.bf16.msra.mxu1 %v7959_v50 }
 0x1cb   :  { %6242 = vmatprep.subr.bf16.mxu0 %v7963_v52  ;;  %6269 = vmatprep.subr.bf16.mxu1 %v9348_v56 }
 0x1ce   :  { %6244 = vmatpush1.bf16.msra.mxu0 %v7967_v58  ;;  %6271 = vmatpush3.bf16.msra.mxu1 %v7969_v59 }
 0x1cf   :  { %6246 = vmatprep.subr.bf16.mxu0 %v7973_v61  ;;  %6272 = vmatprep.subr.bf16.mxu1 %v9348_v56 }
 0x1d2   :  { %6248 = vmatpush1.bf16.msra.mxu0 %v7977_v5  ;;  %6274 = vmatpush3.bf16.msra.mxu1 %v7979_v6 }
 0x1d3   :  { %6250 = vmatprep.subr.bf16.mxu0 %v7983_v8  ;;  %6275 = vmatprep.subr.bf16.mxu1 %v9348_v56 }
 0x1d6   :  { %6252 = vmatpush1.bf16.msra.mxu0 %v7987_v14  ;;  %6277 = vmatpush3.bf16.msra.mxu1 %v7989_v16 }
 0x1d7   :  { %6254 = vmatprep.subr.bf16.mxu0 %v7993_v18  ;;  %6278 = vmatprep.subr.bf16.mxu1 %v9348_v56 }
 0x1da   :  { %6256 = vmatpush1.bf16.msra.mxu0 %v7997_v24  ;;  %6280 = vmatpush3.bf16.msra.mxu1 %v7999_v26 }
 0x1db   :  { %6282 = vmatprep.subr.bf16.mxu0 %v8016_v30  ;;  %6313 = vmatprep.subr.bf16.mxu1 %v9348_v56 }
 0x1dd   :  { %1061 = vmatmul.mubr.f32.vlgmr.msra.gmra.mrb[6].mxu0 %v8136_v35  ;;  %5264 = vmatmul.mubr.f32.vlgmr.msra.gmra.mrb[8].mxu1 %v8136_v35 }
 0x1de   :  { %6284 = vmatpush1.bf16.msra.mxu0 %v8018_v37  ;;  %6315 = vmatpush3.bf16.msra.mxu1 %v8021_v39 }
 0x1df   :  { %6286 = vmatprep.subr.bf16.mxu0 %v8025_v45  ;;  %6316 = vmatprep.subr.bf16.mxu1 %v9348_v56 }
 0x1e0   :  { %1256 = vmatprep.mubr.f32.mxu0 %v9350_v1  ;;  %5298 = vmatprep.mubr.msk.f32.mxu1 %vm7801_vm0, %v9350_v1 }
 0x1e2   :  { %6288 = vmatpush1.bf16.msra.mxu0 %v8028_v51  ;;  %6318 = vmatpush3.bf16.msra.mxu1 %v8031_v54  ;;  %v9375_v51 = vld [vmem:[#allocation59_spill] sm:$0xff] }
 0x1e3   :  { %6290 = vmatprep.subr.bf16.mxu0 %v8035_v57  ;;  %6319 = vmatprep.subr.bf16.mxu1 %v9348_v56 }
 0x1e6   :  { %6292 = vmatpush1.bf16.msra.mxu0 %v8038_v2  ;;  %6321 = vmatpush3.bf16.msra.mxu1 %v8041_v4 }
 0x1e7   :  { %6294 = vmatprep.subr.bf16.mxu0 %v8045_v10  ;;  %6322 = vmatprep.subr.bf16.mxu1 %v9348_v56 }
 0x1ea   :  { %6296 = vmatpush1.bf16.msra.mxu0 %v8048_v17  ;;  %6324 = vmatpush3.bf16.msra.mxu1 %v8051_v20 }
 0x1eb   :  { %6298 = vmatprep.subr.bf16.mxu0 %v8055_v29  ;;  %6325 = vmatprep.subr.bf16.mxu1 %v9348_v56 }
 0x1ee   :  { %6300 = vmatpush1.bf16.msra.mxu0 %v8058_v38  ;;  %6327 = vmatpush3.bf16.msra.mxu1 %v8061_v44 }
 0x1ef   :  { %6302 = vmatprep.subr.bf16.mxu0 %v8065_v48  ;;  %6328 = vmatprep.subr.bf16.mxu1 %v9348_v56 }
 0x1f2   :  { %6304 = vmatpush1.bf16.msra.mxu0 %v8068_v60  ;;  %6330 = vmatpush3.bf16.msra.mxu1 %v8071_v7  ;;  %v9367_v60 = vld [vmem:[#allocation55_spill] sm:$0xff] }
 0x1f3   :  { %6306 = vmatprep.subr.bf16.mxu0 %v9359_v11  ;;  %6331 = vmatprep.subr.bf16.mxu1 %v9348_v56 }
 0x1f6   :  { %6308 = vmatpush1.bf16.msra.mxu0 %v9360_v12  ;;  %6333 = vmatpush3.bf16.msra.mxu1 %v9361_v53  ;;  %v4618_v12 = vld [vmem:[%s9174_s5 + $0x3] sm:$0x7]  ;;  %v9366_v53 = vld [vmem:[#allocation53_spill] sm:$0xff] }
 0x1f7   :  { %6310 = vmatprep.subr.bf16.mxu0 %v9362_v0  ;;  %6334 = vmatprep.subr.bf16.mxu1 %v9348_v56  ;;  %v4617_v0 = vld [vmem:[%s9173_s4 + $0x3] sm:$0x7]  ;;  %s7803_s4 = smov [#allocation12]  }
 0x1f8   :  { %v614_v7 = vrot.slane %v4617_v0, %v9366_v53  ;;  %s4596_s5 = sshll.u32 %s7803_s4, 4  ;;  %s4597_s5 = int_to_ptr.vmem [resolvable:$true] %s4596_s5 }
 0x1f9   :  { %s7737_s27 = scalar_lea.vmem %s4597_s5, 32  ;;  %p7742_p5 = scmp.lt.s32.totalorder %s4597_s5, %s4597_s5 }
 0x1fa   :  { %6312 = vmatpush1.bf16.msra.mxu0 %v9363_v13  ;;  %6336 = vmatpush3.bf16.msra.mxu1 %v9364_v42  ;;  %v822_v13 = vrot.slane %v4618_v12, %v9366_v53  ;;  %v618_v42 = vrot.slane %v4617_v0, %v9367_v60  ;;  %p7738_p4 = scmp.ne.s32.totalorder %s4597_s5, %s7737_s27  ;;  %p7743_p6 = scmp.lt.s32.totalorder %s7737_s27, %s7737_s27 }
 0x1fb   :  { %6338 = vmatprep.subr.bf16.mxu0 %v9365_v47  ;;  %6369 = vmatprep.subr.bf16.mxu1 %v9348_v56  ;;  %v826_v47 = vrot.slane %v4618_v12, %v9367_v60 }
 0x1fc   :  { %v8306_v48 = vadd.f32 %v822_v13, %v614_v7  ;;  %v9370_v7 = vld [vmem:[#allocation54_spill] sm:$0xff]  ;;  %p7744_p7 = por %p7743_p6, %p7742_p5 }
 0x1fd   :  { %v8308_v44 = vadd.f32 %v826_v47, %v618_v42  ;;  %v8313_v13 = vrot.slane %v4618_v12, %v9370_v7  ;;  %v8316_v42 = vrot.slane %v4617_v0, %v9370_v7  ;;  %v9374_v0 = vld [vmem:[#allocation58_spill] sm:$0xff] }
 0x1fe   :  { %9368 = vst [vmem:[#allocation53_spill] sm:$0xff] %v8306_v48  ;;  %p7745_p8 = pnand %p7744_p7, %p7738_p4 }
 0x1ff   :  { %9369 = vst [vmem:[#allocation55_spill] sm:$0xff] %v8308_v44  ;;  %9371 = vst [vmem:[#allocation54_spill] sm:$0xff] %v8313_v13 }
 0x270   :  { %v763_v55 = vpop.f32.mrb[4].mxu1 }
 0x271   :  { %v5195_v11 = vpop.f32.mrb[5].mxu1 }
 0x290   :  { %v900_v11 = vpop.f32.mrb[4].mxu0  ;;  %v971_v38 = vpop.f32.mrb[6].mxu1 }
 0x291   :  { %v7426_v29 = vadd.f32 %v8306_v48, %v900_v11  ;;  %v902_v20 = vpop.f32.mrb[5].mxu0  ;;  %v5230_v17 = vpop.f32.mrb[7].mxu1  ;;  %v972_v11 = vadd.f32 %v971_v38, %v8313_v13  ;;  %v9373_v48 = vld [vmem:[#allocation57_spill] sm:$0xff] }
 0x292   :  { %v7428_v4 = vadd.f32 %v8308_v44, %v902_v20 }
 0x293   :  { %v4619_v10 = vmul.f32 -1.442695, %v7426_v29  ;;  %v764_v29 = vadd.f32 %v763_v55, %v8316_v42 }
 0x294   :  { %v4620_v2 = vmul.f32 -1.442695, %v7428_v4 }
 0x295   :  { %7499 = vpow2.f32 %v4619_v10 }
 0x296   :  { %7501 = vpow2.f32 %v4620_v2 }
 0x29f   :  { %v7500_v53 = vpop.eup %7499 }
 0x2a0   :  { %v980_v57 = vadd.f32 1.0, %v7500_v53  ;;  %v7502_v60 = vpop.eup %7501 }
 0x2a1   :  { %v986_v47 = vadd.f32 1.0, %v7502_v60 }
 0x2a2   :  { %7503 = vrcp.f32 %v980_v57  ;;  %v9372_v57 = vld [vmem:[#allocation56_spill] sm:$0xff] }
 0x2a3   :  { %7505 = vrcp.f32 %v986_v47 }
 0x2ac   :  { %v7504_v17 = vpop.eup %7503 }
 0x2ad   :  { %v989_v10 = vmul.f32 %v7504_v17, %v972_v11  ;;  %v7506_v55 = vpop.eup %7505 }
 0x2ae   :  { %v992_v17 = vsub.f32 1.0, %v7506_v55 }
 0x2af   :  { %v990_v4 = vadd.f32 %v989_v10, %v764_v29  ;;  %v1138_v10 = vld [vmem:[#allocation2 + $0x1] ss:$8 sm:$0x7] }
 0x2b0   :  { %v1062_v2 = vpop.f32.mrb[6].mxu0  ;;  %v1133_v20 = vpop.f32.mrb[8].mxu1 }
 0x2b1   :  { %7507 = vtanh.f32 %v990_v4  ;;  %v1063_v53 = vadd.f32 %v1062_v2, %v9372_v57  ;;  %v1064_v44 = vpop.f32.mrb[7].mxu0  ;;  %v5265_v12 = vpop.f32.mrb[9].mxu1  ;;  %v1134_v54 = vadd.f32 %v1133_v20, %v9373_v48 }
 0x2b2   :  { %v1065_v7 = vadd.f32 %v1064_v44, %v9374_v0  ;;  %v994_v12 = vmul.f32 %v7506_v55, %v8218_v28  ;;  %v1184_v0 = vrot.slane %v1138_v10, 2 }
 0x2b3   :  { %v1156_v38 = vrot.slane %v1134_v54, %v9375_v51 }
 0x2b4   :  { %v1142_v60 = vcombine.low %v1063_v53, %v1065_v7 }
 0x2b6   :  { %v1149_v13 = vrot.slane %v1142_v60, %v9375_v51 }
 0x2b8   :  { %v1157_v47 = vcombine.low %v1149_v13, %v1156_v38 }
 0x2ba   :  { %v1164_v11 = vrot.slane %v1157_v47, %v9375_v51 }
 0x2bb   :  { %v7508_v29 = vpop.eup %7507 }
 0x2bc   :  { %v1166_v4 = vadd.f32 %v1164_v11, %v1138_v10  ;;  %v993_v2 = vmul.f32 %v7508_v29, %v992_v17  ;;  %v9381_v10 = vld [vmem:[#allocation65_spill] sm:$0xff] }
 0x2be   :  { %v4621_v57 = vmul.f32 -1.442695, %v1166_v4  ;;  %v8327_v20 = vadd.f32 %v994_v12, %v993_v2  ;;  %v1174_v44 = vrot.slane %v1166_v4, 1  ;;  %v9376_v2 = vld [vmem:[#allocation60_spill] sm:$0xff]  ;;  %v9382_v12 = vld [vmem:[#allocation66_spill] sm:$0xff] }
 0x2c0   :  { %7509 = vpow2.f32 %v4621_v57  ;;  %v4622_v53 = vmul.f32 -1.442695, %v1174_v44  ;;  %v9383_v44 = vld [vmem:[#allocation67_spill] sm:$0xff] }
 0x2c2   :  { %7511 = vpow2.f32 %v4622_v53  ;;  %v9384_v53 = vld [vmem:[#allocation68_spill] sm:$0xff] }
 0x2ca   :  { %v7510_v7 = vpop.eup %7509 }
 0x2cb   :  { %v1170_v60 = vadd.f32 1.0, %v7510_v7  ;;  %v9385_v7 = vld [vmem:[#allocation69_spill] sm:$0xff] }
 0x2cc   :  { %v7512_v13 = vpop.eup %7511 }
 0x2cd   :  { %7513 = vrcp.f32 %v1170_v60  ;;  %v1179_v38 = vadd.f32 1.0, %v7512_v13  ;;  %v9386_v60 = vld [vmem:[#allocation70_spill] sm:$0xff]  ;;  %v9387_v13 = vld [vmem:[#allocation71_spill] sm:$0xff] }
 0x2cf   :  { %7515 = vrcp.f32 %v1179_v38  ;;  %v9388_v38 = vld [vmem:[#allocation72_spill] sm:$0xff] }
 0x2d7   :  { %v7514_v47 = vpop.eup %7513 }
 0x2d8   :  { %v1182_v51 = vmul.f32 %v7514_v47, %v1134_v54  ;;  %v9377_v54 = vld [vmem:[#allocation61_spill] sm:$0xff]  ;;  %v9389_v47 = vld [vmem:[#allocation32_spill] sm:$0xff] }
 0x2d9   :  { %v7516_v17 = vpop.eup %7515 }
 0x2da   :  { %v1186_v11 = vadd.f32 %v1184_v0, %v1182_v51  ;;  %v1188_v28 = vsub.f32 1.0, %v7516_v17  ;;  %v1190_v4 = vmul.f32 %v7516_v17, %v8136_v35  ;;  %v9378_v51 = vld [vmem:[#allocation62_spill] sm:$0xff]  ;;  %v9379_v35 = vld [vmem:[#allocation63_spill] sm:$0xff]  ;;  %v9380_v0 = vld [vmem:[#allocation64_spill] sm:$0xff] }
 0x2db   :  { %v9391_v17 = vld [vmem:[#allocation34_spill] sm:$0xff] }
 0x2dc   :  { %7517 = vtanh.f32 %v1186_v11  ;;  %v9390_v11 = vld [vmem:[#allocation33_spill] sm:$0xff] }
 0x2e6   :  { %v7518_v55 = vpop.eup %7517 }
 0x2e7   :  { %v1189_v29 = vmul.f32 %v7518_v55, %v1188_v28  ;;  %v9392_v28 = vld [vmem:[#allocation35_spill] sm:$0xff]  ;;  %v9393_v55 = vld [vmem:[#allocation36_spill] sm:$0xff] }
 0x2e9   :  { %v8330_v57 = vadd.f32 %v1190_v4, %v1189_v29  ;;  %v9394_v29 = vld [vmem:[#allocation37_spill] sm:$0xff]  ;;  %v9395_v4 = vld [vmem:[#allocation38_spill] sm:$0xff] }
 0x2eb   :  { %1257 = vmatmul.mubr.f32.vlgmr.msra.gmra.mrb[8].mxu0 %v8330_v57  ;;  %5299 = vmatmul.mubr.f32.vlgmr.msra.gmra.mrb[10].mxu1 %v8330_v57 }
 0x2ec   :  { %6340 = vmatpush1.bf16.msra.mxu0 %v8132_v3  ;;  %6371 = vmatpush3.bf16.msra.mxu1 %v9376_v2 }
 0x2ed   :  { %6342 = vmatprep.subr.bf16.mxu0 %v9377_v54  ;;  %6372 = vmatprep.subr.bf16.mxu1 %v9348_v56 }
 0x2ee   :  { %1397 = vmatprep.mubr.f32.mxu0 %v9350_v1  ;;  %5333 = vmatprep.mubr.msk.f32.mxu1 %vm7801_vm0, %v9350_v1 }
 0x2f0   :  { %6344 = vmatpush1.bf16.msra.mxu0 %v9378_v51  ;;  %6374 = vmatpush3.bf16.msra.mxu1 %v9379_v35 }
 0x2f1   :  { %6346 = vmatprep.subr.bf16.mxu0 %v9380_v0  ;;  %6375 = vmatprep.subr.bf16.mxu1 %v9348_v56 }
 0x2f4   :  { %6348 = vmatpush1.bf16.msra.mxu0 %v9381_v10  ;;  %6377 = vmatpush3.bf16.msra.mxu1 %v9382_v12 }
 0x2f5   :  { %6350 = vmatprep.subr.bf16.mxu0 %v9383_v44  ;;  %6378 = vmatprep.subr.bf16.mxu1 %v9348_v56 }
 0x2f8   :  { %6352 = vmatpush1.bf16.msra.mxu0 %v9384_v53  ;;  %6380 = vmatpush3.bf16.msra.mxu1 %v9385_v7 }
 0x2f9   :  { %6354 = vmatprep.subr.bf16.mxu0 %v9386_v60  ;;  %6381 = vmatprep.subr.bf16.mxu1 %v9348_v56 }
 0x2fc   :  { %6356 = vmatpush1.bf16.msra.mxu0 %v8177_v9  ;;  %6383 = vmatpush3.bf16.msra.mxu1 %v8179_v63 }
 0x2fd   :  { %6358 = vmatprep.subr.bf16.mxu0 %v9387_v13  ;;  %6384 = vmatprep.subr.bf16.mxu1 %v9348_v56 }
 0x300   :  { %6360 = vmatpush1.bf16.msra.mxu0 %v9388_v38  ;;  %6386 = vmatpush3.bf16.msra.mxu1 %v8189_v21 }
 0x301   :  { %6362 = vmatprep.subr.bf16.mxu0 %v8193_v27  ;;  %6387 = vmatprep.subr.bf16.mxu1 %v9348_v56 }
 0x304   :  { %6364 = vmatpush1.bf16.msra.mxu0 %v8197_v62  ;;  %6389 = vmatpush3.bf16.msra.mxu1 %v8199_v46 }
 0x305   :  { %6366 = vmatprep.subr.bf16.mxu0 %v8203_v19  ;;  %6390 = vmatprep.subr.bf16.mxu1 %v9348_v56 }
 0x308   :  { %6368 = vmatpush1.bf16.msra.mxu0 %v8207_v36  ;;  %6392 = vmatpush3.bf16.msra.mxu1 %v8209_v33 }
 0x309   :  { %6394 = vmatprep.subr.bf16.mxu0 %v7922_v15  ;;  %6425 = vmatprep.subr.bf16.mxu1 %v9348_v56 }
 0x30b   :  { %1398 = vmatmul.mubr.f32.vlgmr.msra.gmra.mrb[8].mxu0 %v8327_v20  ;;  %5334 = vmatmul.mubr.f32.vlgmr.msra.gmra.mrb[12].mxu1 %v8327_v20 }
 0x30c   :  { %6396 = vmatpush1.bf16.msra.mxu0 %v7924_v22  ;;  %6427 = vmatpush3.bf16.msra.mxu1 %v7926_v23 }
 0x30d   :  { %6398 = vmatprep.subr.bf16.mxu0 %v7930_v25  ;;  %6428 = vmatprep.subr.bf16.mxu1 %v9348_v56 }
 0x30e   :  { %1559 = vmatprep.mubr.f32.mxu0 %v9350_v1  ;;  %5368 = vmatprep.mubr.msk.f32.mxu1 %vm7801_vm0, %v9350_v1 }
 0x310   :  { %6400 = vmatpush1.bf16.msra.mxu0 %v7934_v31  ;;  %6430 = vmatpush3.bf16.msra.mxu1 %v7936_v32 }
 0x311   :  { %6402 = vmatprep.subr.bf16.mxu0 %v7940_v34  ;;  %6431 = vmatprep.subr.bf16.mxu1 %v9348_v56 }
 0x314   :  { %6404 = vmatpush1.bf16.msra.mxu0 %v7947_v40  ;;  %6433 = vmatpush3.bf16.msra.mxu1 %v7949_v41 }
 0x315   :  { %6406 = vmatprep.subr.bf16.mxu0 %v7953_v43  ;;  %6434 = vmatprep.subr.bf16.mxu1 %v9348_v56 }
 0x318   :  { %6408 = vmatpush1.bf16.msra.mxu0 %v7957_v49  ;;  %6436 = vmatpush3.bf16.msra.mxu1 %v7959_v50 }
 0x319   :  { %6410 = vmatprep.subr.bf16.mxu0 %v7963_v52  ;;  %6437 = vmatprep.subr.bf16.mxu1 %v9348_v56 }
 0x31c   :  { %6412 = vmatpush1.bf16.msra.mxu0 %v7967_v58  ;;  %6439 = vmatpush3.bf16.msra.mxu1 %v7969_v59 }
 0x31d   :  { %6414 = vmatprep.subr.bf16.mxu0 %v7973_v61  ;;  %6440 = vmatprep.subr.bf16.mxu1 %v9348_v56 }
 0x320   :  { %6416 = vmatpush1.bf16.msra.mxu0 %v7977_v5  ;;  %6442 = vmatpush3.bf16.msra.mxu1 %v7979_v6 }
 0x321   :  { %6418 = vmatprep.subr.bf16.mxu0 %v7983_v8  ;;  %6443 = vmatprep.subr.bf16.mxu1 %v9348_v56  ;;  %v9412_v8 = vld [vmem:[#allocation54_spill] sm:$0xff] }
 0x324   :  { %6420 = vmatpush1.bf16.msra.mxu0 %v7987_v14  ;;  %6445 = vmatpush3.bf16.msra.mxu1 %v7989_v16 }
 0x325   :  { %6422 = vmatprep.subr.bf16.mxu0 %v7993_v18  ;;  %6446 = vmatprep.subr.bf16.mxu1 %v9348_v56 }
 0x328   :  { %6424 = vmatpush1.bf16.msra.mxu0 %v7997_v24  ;;  %6448 = vmatpush3.bf16.msra.mxu1 %v7999_v26 }
 0x329   :  { %6450 = vmatprep.subr.bf16.mxu0 %v8016_v30  ;;  %6481 = vmatprep.subr.bf16.mxu1 %v9348_v56  ;;  %v9410_v30 = vld [vmem:[#allocation53_spill] sm:$0xff] }
 0x32b   :  { %1560 = vmatmul.mubr.f32.vlgmr.msra.gmra.mrb[10].mxu0 %v8330_v57  ;;  %5369 = vmatmul.mubr.f32.vlgmr.msra.gmra.mrb[14].mxu1 %v8330_v57 }
 0x32c   :  { %6452 = vmatpush1.bf16.msra.mxu0 %v8018_v37  ;;  %6483 = vmatpush3.bf16.msra.mxu1 %v8021_v39  ;;  %v9397_v39 = vld [vmem:[#allocation40_spill] sm:$0xff] }
 0x32d   :  { %6454 = vmatprep.subr.bf16.mxu0 %v8025_v45  ;;  %6484 = vmatprep.subr.bf16.mxu1 %v9348_v56  ;;  %v9396_v45 = vld [vmem:[#allocation39_spill] sm:$0xff] }
 0x32e   :  { %1755 = vmatprep.mubr.f32.mxu0 %v9350_v1  ;;  %5403 = vmatprep.mubr.msk.f32.mxu1 %vm7801_vm0, %v9350_v1 }
 0x330   :  { %6456 = vmatpush1.bf16.msra.mxu0 %v9389_v47  ;;  %6486 = vmatpush3.bf16.msra.mxu1 %v9390_v11  ;;  %v9398_v11 = vld [vmem:[#allocation41_spill] sm:$0xff]  ;;  %v9400_v47 = vld [vmem:[#allocation43_spill] sm:$0xff] }
 0x331   :  { %6458 = vmatprep.subr.bf16.mxu0 %v9391_v17  ;;  %6487 = vmatprep.subr.bf16.mxu1 %v9348_v56  ;;  %v9399_v17 = vld [vmem:[#allocation42_spill] sm:$0xff] }
 0x334   :  { %6460 = vmatpush1.bf16.msra.mxu0 %v9392_v28  ;;  %6489 = vmatpush3.bf16.msra.mxu1 %v9393_v55  ;;  %v9401_v55 = vld [vmem:[#allocation44_spill] sm:$0xff]  ;;  %v9403_v28 = vld [vmem:[#allocation46_spill] sm:$0xff] }
 0x335   :  { %6462 = vmatprep.subr.bf16.mxu0 %v9394_v29  ;;  %6490 = vmatprep.subr.bf16.mxu1 %v9348_v56  ;;  %v9402_v29 = vld [vmem:[#allocation45_spill] sm:$0xff] }
 0x338   :  { %6464 = vmatpush1.bf16.msra.mxu0 %v9395_v4  ;;  %6492 = vmatpush3.bf16.msra.mxu1 %v9396_v45  ;;  %v9404_v45 = vld [vmem:[#allocation47_spill] sm:$0xff]  ;;  %v9406_v4 = vld [vmem:[#allocation49_spill] sm:$0xff] }
 0x339   :  { %6466 = vmatprep.subr.bf16.mxu0 %v9397_v39  ;;  %6493 = vmatprep.subr.bf16.mxu1 %v9348_v56  ;;  %v9405_v39 = vld [vmem:[#allocation48_spill] sm:$0xff] }
 0x33c   :  { %6468 = vmatpush1.bf16.msra.mxu0 %v9398_v11  ;;  %6495 = vmatpush3.bf16.msra.mxu1 %v9399_v17  ;;  %v9407_v17 = vld [vmem:[#allocation50_spill] sm:$0xff]  ;;  %v9409_v11 = vld [vmem:[#allocation52_spill] sm:$0xff] }
 0x33d   :  { %6470 = vmatprep.subr.bf16.mxu0 %v9400_v47  ;;  %6496 = vmatprep.subr.bf16.mxu1 %v9348_v56  ;;  %v9408_v47 = vld [vmem:[#allocation51_spill] sm:$0xff] }
 0x340   :  { %6472 = vmatpush1.bf16.msra.mxu0 %v9401_v55  ;;  %6498 = vmatpush3.bf16.msra.mxu1 %v9402_v29 }
 0x341   :  { %6474 = vmatprep.subr.bf16.mxu0 %v9403_v28  ;;  %6499 = vmatprep.subr.bf16.mxu1 %v9348_v56 }
 0x344   :  { %6476 = vmatpush1.bf16.msra.mxu0 %v9404_v45  ;;  %6501 = vmatpush3.bf16.msra.mxu1 %v9405_v39 }
 0x345   :  { %6478 = vmatprep.subr.bf16.mxu0 %v9406_v4  ;;  %6502 = vmatprep.subr.bf16.mxu1 %v9348_v56  ;;  %v9411_v4 = vld [vmem:[#allocation55_spill] sm:$0xff] }
 0x348   :  { %6480 = vmatpush1.bf16.msra.mxu0 %v9407_v17  ;;  %6504 = vmatpush3.bf16.msra.mxu1 %v9408_v47 }
 0x349   :  { %6506 = vmatprep.subr.bf16.mxu0 %v9409_v11  ;;  %6537 = vmatprep.subr.bf16.mxu1 %v9348_v56 }
 0x3be   :  { %v1329_v29 = vpop.f32.mrb[10].mxu1 }
 0x3bf   :  { %v5300_v28 = vpop.f32.mrb[11].mxu1  ;;  %v1330_v5 = vadd.f32 %v1329_v29, %v8316_v42 }
 0x3de   :  { %v1399_v55 = vpop.f32.mrb[8].mxu0  ;;  %v1470_v37 = vpop.f32.mrb[12].mxu1 }
 0x3df   :  { %v7430_v45 = vadd.f32 %v9410_v30, %v1399_v55  ;;  %v1401_v26 = vpop.f32.mrb[9].mxu0  ;;  %v5335_v39 = vpop.f32.mrb[13].mxu1  ;;  %v1471_v6 = vadd.f32 %v1470_v37, %v9412_v8  ;;  %v9415_v30 = vld [vmem:[#allocation59_spill] sm:$0xff] }
 0x3e0   :  { %v7432_v18 = vadd.f32 %v9411_v4, %v1401_v26  ;;  %v9413_v26 = vld [vmem:[#allocation56_spill] sm:$0xff] }
 0x3e1   :  { %v4623_v24 = vmul.f32 -1.442695, %v7430_v45 }
 0x3e2   :  { %v4624_v16 = vmul.f32 -1.442695, %v7432_v18 }
 0x3e3   :  { %7519 = vpow2.f32 %v4623_v24 }
 0x3e4   :  { %7521 = vpow2.f32 %v4624_v16 }
 0x3ed   :  { %v7520_v17 = vpop.eup %7519 }
 0x3ee   :  { %v1479_v47 = vadd.f32 1.0, %v7520_v17  ;;  %v7522_v11 = vpop.eup %7521 }
 0x3ef   :  { %v1485_v14 = vadd.f32 1.0, %v7522_v11 }
 0x3f0   :  { %7523 = vrcp.f32 %v1479_v47  ;;  %v9414_v47 = vld [vmem:[#allocation58_spill] sm:$0xff] }
 0x3f1   :  { %7525 = vrcp.f32 %v1485_v14 }
 0x3fa   :  { %v7524_v28 = vpop.eup %7523 }
 0x3fb   :  { %v1488_v61 = vmul.f32 %v7524_v28, %v1471_v6  ;;  %v7526_v29 = vpop.eup %7525  ;;  %v1637_v28 = vld [vmem:[#allocation2 + $0x2] ss:$8 sm:$0x7] }
 0x3fd   :  { %v1489_v55 = vadd.f32 %v1488_v61, %v1330_v5  ;;  %v1491_v5 = vsub.f32 1.0, %v7526_v29 }
 0x3fe   :  { %v1561_v39 = vpop.f32.mrb[10].mxu0  ;;  %v1632_v45 = vpop.f32.mrb[14].mxu1 }
 0x3ff   :  { %7527 = vtanh.f32 %v1489_v55  ;;  %v1562_v24 = vadd.f32 %v1561_v39, %v9413_v26  ;;  %v1563_v18 = vpop.f32.mrb[11].mxu0  ;;  %v5370_v16 = vpop.f32.mrb[15].mxu1  ;;  %v1633_v17 = vadd.f32 %v1632_v45, %v9373_v48 }
 0x400   :  { %v1564_v4 = vadd.f32 %v1563_v18, %v9414_v47  ;;  %v1493_v16 = vmul.f32 %v7526_v29, %v8327_v20  ;;  %v1683_v47 = vrot.slane %v1637_v28, 2 }
 0x401   :  { %v1655_v37 = vrot.slane %v1633_v17, %v9415_v30 }
 0x402   :  { %v1641_v11 = vcombine.low %v1562_v24, %v1564_v4 }
 0x404   :  { %v1648_v8 = vrot.slane %v1641_v11, %v9415_v30 }
 0x406   :  { %v1656_v6 = vcombine.low %v1648_v8, %v1655_v37 }
 0x408   :  { %v1663_v61 = vrot.slane %v1656_v6, %v9415_v30 }
 0x409   :  { %v7528_v14 = vpop.eup %7527 }
 0x40a   :  { %v1665_v55 = vadd.f32 %v1663_v61, %v1637_v28  ;;  %v1492_v39 = vmul.f32 %v7528_v14, %v1491_v5  ;;  %v9420_v28 = vld [vmem:[#allocation23_spill] sm:$0xff] }
 0x40c   :  { %v4625_v26 = vmul.f32 -1.442695, %v1665_v55  ;;  %v8454_v45 = vadd.f32 %v1493_v16, %v1492_v39  ;;  %v1673_v18 = vrot.slane %v1665_v55, 1  ;;  %v9421_v39 = vld [vmem:[#allocation24_spill] sm:$0xff]  ;;  %v9422_v16 = vld [vmem:[#allocation25_spill] sm:$0xff] }
 0x40e   :  { %7529 = vpow2.f32 %v4625_v26  ;;  %v4626_v4 = vmul.f32 -1.442695, %v1673_v18  ;;  %v9423_v18 = vld [vmem:[#allocation26_spill] sm:$0xff] }
 0x410   :  { %7531 = vpow2.f32 %v4626_v4  ;;  %v9424_v4 = vld [vmem:[#allocation27_spill] sm:$0xff] }
 0x418   :  { %v7530_v24 = vpop.eup %7529 }
 0x419   :  { %v1669_v11 = vadd.f32 1.0, %v7530_v24  ;;  %v9425_v24 = vld [vmem:[#allocation28_spill] sm:$0xff] }
 0x41a   :  { %v7532_v8 = vpop.eup %7531 }
 0x41b   :  { %7533 = vrcp.f32 %v1669_v11  ;;  %v1678_v37 = vadd.f32 1.0, %v7532_v8  ;;  %v9426_v11 = vld [vmem:[#allocation29_spill] sm:$0xff]  ;;  %v9427_v8 = vld [vmem:[#allocation30_spill] sm:$0xff] }
 0x41d   :  { %7535 = vrcp.f32 %v1678_v37  ;;  %v9428_v37 = vld [vmem:[#allocation31_spill] sm:$0xff] }
 0x425   :  { %v7534_v6 = vpop.eup %7533 }
 0x426   :  { %v1681_v30 = vmul.f32 %v7534_v6, %v1633_v17  ;;  %v9418_v17 = vld [vmem:[#allocation21_spill] sm:$0xff]  ;;  %v9429_v6 = vld [vmem:[#allocation32_spill] sm:$0xff] }
 0x427   :  { %v7536_v5 = vpop.eup %7535 }
 0x428   :  { %v1685_v61 = vadd.f32 %v1683_v47, %v1681_v30  ;;  %v1687_v20 = vsub.f32 1.0, %v7536_v5  ;;  %v1689_v55 = vmul.f32 %v7536_v5, %v8330_v57  ;;  %v9416_v30 = vld [vmem:[#allocation19_spill] sm:$0xff]  ;;  %v9417_v57 = vld [vmem:[#allocation20_spill] sm:$0xff]  ;;  %v9419_v47 = vld [vmem:[#allocation22_spill] sm:$0xff] }
 0x429   :  { %v9431_v5 = vld [vmem:[#allocation34_spill] sm:$0xff] }
 0x42a   :  { %7537 = vtanh.f32 %v1685_v61  ;;  %v9430_v61 = vld [vmem:[#allocation33_spill] sm:$0xff] }
 0x434   :  { %v7538_v29 = vpop.eup %7537 }
 0x435   :  { %v1688_v14 = vmul.f32 %v7538_v29, %v1687_v20  ;;  %v9432_v20 = vld [vmem:[#allocation35_spill] sm:$0xff]  ;;  %v9433_v29 = vld [vmem:[#allocation36_spill] sm:$0xff] }
 0x437   :  { %v8457_v26 = vadd.f32 %v1689_v55, %v1688_v14  ;;  %v9434_v14 = vld [vmem:[#allocation37_spill] sm:$0xff]  ;;  %v9435_v55 = vld [vmem:[#allocation38_spill] sm:$0xff] }
 0x439   :  { %1756 = vmatmul.mubr.f32.vlgmr.msra.gmra.mrb[12].mxu0 %v8457_v26  ;;  %5404 = vmatmul.mubr.f32.vlgmr.msra.gmra.mrb[16].mxu1 %v8457_v26 }
 0x43a   :  { %6508 = vmatpush1.bf16.msra.mxu0 %v8132_v3  ;;  %6539 = vmatpush3.bf16.msra.mxu1 %v9376_v2 }
 0x43b   :  { %6510 = vmatprep.subr.bf16.mxu0 %v9377_v54  ;;  %6540 = vmatprep.subr.bf16.mxu1 %v9348_v56 }
 0x43c   :  { %1896 = vmatprep.mubr.f32.mxu0 %v9350_v1  ;;  %5438 = vmatprep.mubr.msk.f32.mxu1 %vm7801_vm0, %v9350_v1 }
 0x43e   :  { %6512 = vmatpush1.bf16.msra.mxu0 %v9378_v51  ;;  %6542 = vmatpush3.bf16.msra.mxu1 %v9379_v35 }
 0x43f   :  { %6514 = vmatprep.subr.bf16.mxu0 %v9380_v0  ;;  %6543 = vmatprep.subr.bf16.mxu1 %v9348_v56 }
 0x442   :  { %6516 = vmatpush1.bf16.msra.mxu0 %v9381_v10  ;;  %6545 = vmatpush3.bf16.msra.mxu1 %v9382_v12 }
 0x443   :  { %6518 = vmatprep.subr.bf16.mxu0 %v9383_v44  ;;  %6546 = vmatprep.subr.bf16.mxu1 %v9348_v56 }
 0x446   :  { %6520 = vmatpush1.bf16.msra.mxu0 %v9384_v53  ;;  %6548 = vmatpush3.bf16.msra.mxu1 %v9385_v7 }
 0x447   :  { %6522 = vmatprep.subr.bf16.mxu0 %v9386_v60  ;;  %6549 = vmatprep.subr.bf16.mxu1 %v9348_v56 }
 0x44a   :  { %6524 = vmatpush1.bf16.msra.mxu0 %v8177_v9  ;;  %6551 = vmatpush3.bf16.msra.mxu1 %v8179_v63 }
 0x44b   :  { %6526 = vmatprep.subr.bf16.mxu0 %v9387_v13  ;;  %6552 = vmatprep.subr.bf16.mxu1 %v9348_v56 }
 0x44e   :  { %6528 = vmatpush1.bf16.msra.mxu0 %v9388_v38  ;;  %6554 = vmatpush3.bf16.msra.mxu1 %v8189_v21 }
 0x44f   :  { %6530 = vmatprep.subr.bf16.mxu0 %v8193_v27  ;;  %6555 = vmatprep.subr.bf16.mxu1 %v9348_v56 }
 0x452   :  { %6532 = vmatpush1.bf16.msra.mxu0 %v8197_v62  ;;  %6557 = vmatpush3.bf16.msra.mxu1 %v8199_v46 }
 0x453   :  { %6534 = vmatprep.subr.bf16.mxu0 %v8203_v19  ;;  %6558 = vmatprep.subr.bf16.mxu1 %v9348_v56 }
 0x456   :  { %6536 = vmatpush1.bf16.msra.mxu0 %v8207_v36  ;;  %6560 = vmatpush3.bf16.msra.mxu1 %v8209_v33 }
 0x457   :  { %6562 = vmatprep.subr.bf16.mxu0 %v7922_v15  ;;  %6593 = vmatprep.subr.bf16.mxu1 %v9348_v56 }
 0x459   :  { %1897 = vmatmul.mubr.f32.vlgmr.msra.gmra.mrb[12].mxu0 %v8454_v45  ;;  %5439 = vmatmul.mubr.f32.vlgmr.msra.gmra.mrb[18].mxu1 %v8454_v45 }
 0x45a   :  { %6564 = vmatpush1.bf16.msra.mxu0 %v7924_v22  ;;  %6595 = vmatpush3.bf16.msra.mxu1 %v7926_v23 }
 0x45b   :  { %6566 = vmatprep.subr.bf16.mxu0 %v7930_v25  ;;  %6596 = vmatprep.subr.bf16.mxu1 %v9348_v56 }
 0x45c   :  { %2058 = vmatprep.mubr.f32.mxu0 %v9350_v1  ;;  %5473 = vmatprep.mubr.msk.f32.mxu1 %vm7801_vm0, %v9350_v1 }
 0x45e   :  { %6568 = vmatpush1.bf16.msra.mxu0 %v7934_v31  ;;  %6598 = vmatpush3.bf16.msra.mxu1 %v7936_v32 }
 0x45f   :  { %6570 = vmatprep.subr.bf16.mxu0 %v7940_v34  ;;  %6599 = vmatprep.subr.bf16.mxu1 %v9348_v56 }
 0x462   :  { %6572 = vmatpush1.bf16.msra.mxu0 %v7947_v40  ;;  %6601 = vmatpush3.bf16.msra.mxu1 %v7949_v41 }
 0x463   :  { %6574 = vmatprep.subr.bf16.mxu0 %v7953_v43  ;;  %6602 = vmatprep.subr.bf16.mxu1 %v9348_v56 }
 0x466   :  { %6576 = vmatpush1.bf16.msra.mxu0 %v7957_v49  ;;  %6604 = vmatpush3.bf16.msra.mxu1 %v7959_v50 }
 0x467   :  { %6578 = vmatprep.subr.bf16.mxu0 %v7963_v52  ;;  %6605 = vmatprep.subr.bf16.mxu1 %v9348_v56 }
 0x46a   :  { %6580 = vmatpush1.bf16.msra.mxu0 %v7967_v58  ;;  %6607 = vmatpush3.bf16.msra.mxu1 %v7969_v59 }
 0x46b   :  { %6582 = vmatprep.subr.bf16.mxu0 %v9416_v30  ;;  %6608 = vmatprep.subr.bf16.mxu1 %v9348_v56 }
 0x46e   :  { %6584 = vmatpush1.bf16.msra.mxu0 %v9417_v57  ;;  %6610 = vmatpush3.bf16.msra.mxu1 %v9418_v17 }
 0x46f   :  { %6586 = vmatprep.subr.bf16.mxu0 %v9419_v47  ;;  %6611 = vmatprep.subr.bf16.mxu1 %v9348_v56  ;;  %v9452_v47 = vld [vmem:[#allocation54_spill] sm:$0xff] }
 0x472   :  { %6588 = vmatpush1.bf16.msra.mxu0 %v9420_v28  ;;  %6613 = vmatpush3.bf16.msra.mxu1 %v9421_v39 }
 0x473   :  { %6590 = vmatprep.subr.bf16.mxu0 %v9422_v16  ;;  %6614 = vmatprep.subr.bf16.mxu1 %v9348_v56 }
 0x476   :  { %6592 = vmatpush1.bf16.msra.mxu0 %v9423_v18  ;;  %6616 = vmatpush3.bf16.msra.mxu1 %v9424_v4 }
 0x477   :  { %6618 = vmatprep.subr.bf16.mxu0 %v9425_v24  ;;  %6649 = vmatprep.subr.bf16.mxu1 %v9348_v56  ;;  %v9450_v24 = vld [vmem:[#allocation53_spill] sm:$0xff] }
 0x479   :  { %2059 = vmatmul.mubr.f32.vlgmr.msra.gmra.mrb[14].mxu0 %v8457_v26  ;;  %5474 = vmatmul.mubr.f32.vlgmr.msra.gmra.mrb[20].mxu1 %v8457_v26 }
 0x47a   :  { %6620 = vmatpush1.bf16.msra.mxu0 %v9426_v11  ;;  %6651 = vmatpush3.bf16.msra.mxu1 %v9427_v8  ;;  %v9437_v8 = vld [vmem:[#allocation40_spill] sm:$0xff] }
 0x47b   :  { %6622 = vmatprep.subr.bf16.mxu0 %v9428_v37  ;;  %6652 = vmatprep.subr.bf16.mxu1 %v9348_v56  ;;  %v9436_v37 = vld [vmem:[#allocation39_spill] sm:$0xff] }
 0x47c   :  { %2254 = vmatprep.mubr.f32.mxu0 %v9350_v1  ;;  %5508 = vmatprep.mubr.msk.f32.mxu1 %vm7801_vm0, %v9350_v1 }
 0x47e   :  { %6624 = vmatpush1.bf16.msra.mxu0 %v9429_v6  ;;  %6654 = vmatpush3.bf16.msra.mxu1 %v9430_v61  ;;  %v9438_v61 = vld [vmem:[#allocation41_spill] sm:$0xff]  ;;  %v9440_v6 = vld [vmem:[#allocation43_spill] sm:$0xff] }
 0x47f   :  { %6626 = vmatprep.subr.bf16.mxu0 %v9431_v5  ;;  %6655 = vmatprep.subr.bf16.mxu1 %v9348_v56  ;;  %v9439_v5 = vld [vmem:[#allocation42_spill] sm:$0xff] }
 0x482   :  { %6628 = vmatpush1.bf16.msra.mxu0 %v9432_v20  ;;  %6657 = vmatpush3.bf16.msra.mxu1 %v9433_v29  ;;  %v9441_v29 = vld [vmem:[#allocation44_spill] sm:$0xff]  ;;  %v9443_v20 = vld [vmem:[#allocation46_spill] sm:$0xff] }
 0x483   :  { %6630 = vmatprep.subr.bf16.mxu0 %v9434_v14  ;;  %6658 = vmatprep.subr.bf16.mxu1 %v9348_v56  ;;  %v9442_v14 = vld [vmem:[#allocation45_spill] sm:$0xff] }
 0x486   :  { %6632 = vmatpush1.bf16.msra.mxu0 %v9435_v55  ;;  %6660 = vmatpush3.bf16.msra.mxu1 %v9436_v37  ;;  %v9444_v37 = vld [vmem:[#allocation47_spill] sm:$0xff]  ;;  %v9446_v55 = vld [vmem:[#allocation49_spill] sm:$0xff] }
 0x487   :  { %6634 = vmatprep.subr.bf16.mxu0 %v9437_v8  ;;  %6661 = vmatprep.subr.bf16.mxu1 %v9348_v56  ;;  %v9445_v8 = vld [vmem:[#allocation48_spill] sm:$0xff] }
 0x48a   :  { %6636 = vmatpush1.bf16.msra.mxu0 %v9438_v61  ;;  %6663 = vmatpush3.bf16.msra.mxu1 %v9439_v5  ;;  %v9447_v5 = vld [vmem:[#allocation50_spill] sm:$0xff]  ;;  %v9449_v61 = vld [vmem:[#allocation52_spill] sm:$0xff] }
 0x48b   :  { %6638 = vmatprep.subr.bf16.mxu0 %v9440_v6  ;;  %6664 = vmatprep.subr.bf16.mxu1 %v9348_v56  ;;  %v9448_v6 = vld [vmem:[#allocation51_spill] sm:$0xff] }
 0x48e   :  { %6640 = vmatpush1.bf16.msra.mxu0 %v9441_v29  ;;  %6666 = vmatpush3.bf16.msra.mxu1 %v9442_v14 }
 0x48f   :  { %6642 = vmatprep.subr.bf16.mxu0 %v9443_v20  ;;  %6667 = vmatprep.subr.bf16.mxu1 %v9348_v56 }
 0x492   :  { %6644 = vmatpush1.bf16.msra.mxu0 %v9444_v37  ;;  %6669 = vmatpush3.bf16.msra.mxu1 %v9445_v8 }
 0x493   :  { %6646 = vmatprep.subr.bf16.mxu0 %v9446_v55  ;;  %6670 = vmatprep.subr.bf16.mxu1 %v9348_v56  ;;  %v9451_v55 = vld [vmem:[#allocation55_spill] sm:$0xff] }
 0x496   :  { %6648 = vmatpush1.bf16.msra.mxu0 %v9447_v5  ;;  %6672 = vmatpush3.bf16.msra.mxu1 %v9448_v6 }
 0x497   :  { %6674 = vmatprep.subr.bf16.mxu0 %v9449_v61  ;;  %6705 = vmatprep.subr.bf16.mxu1 %v9348_v56 }
 0x50c   :  { %v1828_v14 = vpop.f32.mrb[16].mxu1 }
 0x50d   :  { %v5405_v20 = vpop.f32.mrb[17].mxu1  ;;  %v1829_v57 = vadd.f32 %v1828_v14, %v8316_v42 }
 0x52c   :  { %v1898_v29 = vpop.f32.mrb[12].mxu0  ;;  %v1969_v11 = vpop.f32.mrb[18].mxu1 }
 0x52d   :  { %v7434_v37 = vadd.f32 %v9450_v24, %v1898_v29  ;;  %v1900_v4 = vpop.f32.mrb[13].mxu0  ;;  %v5440_v8 = vpop.f32.mrb[19].mxu1  ;;  %v1970_v17 = vadd.f32 %v1969_v11, %v9452_v47  ;;  %v9455_v24 = vld [vmem:[#allocation59_spill] sm:$0xff] }
 0x52e   :  { %v7436_v16 = vadd.f32 %v9451_v55, %v1900_v4  ;;  %v9453_v4 = vld [vmem:[#allocation56_spill] sm:$0xff] }
 0x52f   :  { %v4627_v18 = vmul.f32 -1.442695, %v7434_v37 }
 0x530   :  { %v4628_v39 = vmul.f32 -1.442695, %v7436_v16 }
 0x531   :  { %7539 = vpow2.f32 %v4627_v18 }
 0x532   :  { %7541 = vpow2.f32 %v4628_v39 }
 0x53b   :  { %v7540_v5 = vpop.eup %7539 }
 0x53c   :  { %v1978_v6 = vadd.f32 1.0, %v7540_v5  ;;  %v7542_v61 = vpop.eup %7541 }
 0x53d   :  { %v1984_v28 = vadd.f32 1.0, %v7542_v61 }
 0x53e   :  { %7543 = vrcp.f32 %v1978_v6  ;;  %v9454_v6 = vld [vmem:[#allocation58_spill] sm:$0xff] }
 0x53f   :  { %7545 = vrcp.f32 %v1984_v28 }
 0x548   :  { %v7544_v20 = vpop.eup %7543 }
 0x549   :  { %v1987_v30 = vmul.f32 %v7544_v20, %v1970_v17  ;;  %v7546_v14 = vpop.eup %7545  ;;  %v2136_v20 = vld [vmem:[#allocation2 + $0x3] ss:$8 sm:$0x7] }
 0x54b   :  { %v1988_v29 = vadd.f32 %v1987_v30, %v1829_v57  ;;  %v1990_v57 = vsub.f32 1.0, %v7546_v14 }
 0x54c   :  { %v2060_v8 = vpop.f32.mrb[14].mxu0  ;;  %v2131_v37 = vpop.f32.mrb[20].mxu1 }
 0x54d   :  { %7547 = vtanh.f32 %v1988_v29  ;;  %v2061_v18 = vadd.f32 %v2060_v8, %v9453_v4  ;;  %v2062_v16 = vpop.f32.mrb[15].mxu0  ;;  %v5475_v39 = vpop.f32.mrb[21].mxu1  ;;  %v2132_v5 = vadd.f32 %v2131_v37, %v9373_v48 }
 0x54e   :  { %v2063_v55 = vadd.f32 %v2062_v16, %v9454_v6  ;;  %v1992_v39 = vmul.f32 %v7546_v14, %v8454_v45  ;;  %v2182_v6 = vrot.slane %v2136_v20, 2 }
 0x54f   :  { %v2154_v11 = vrot.slane %v2132_v5, %v9455_v24 }
 0x550   :  { %v2140_v61 = vcombine.low %v2061_v18, %v2063_v55 }
 0x552   :  { %v2147_v47 = vrot.slane %v2140_v61, %v9455_v24 }
 0x554   :  { %v2155_v17 = vcombine.low %v2147_v47, %v2154_v11 }
 0x556   :  { %v2162_v30 = vrot.slane %v2155_v17, %v9455_v24 }
 0x557   :  { %v7548_v28 = vpop.eup %7547 }
 0x558   :  { %v2164_v29 = vadd.f32 %v2162_v30, %v2136_v20  ;;  %v1991_v8 = vmul.f32 %v7548_v28, %v1990_v57  ;;  %v9460_v20 = vld [vmem:[#allocation23_spill] sm:$0xff] }
 0x55a   :  { %v4629_v4 = vmul.f32 -1.442695, %v2164_v29  ;;  %v8581_v37 = vadd.f32 %v1992_v39, %v1991_v8  ;;  %v2172_v16 = vrot.slane %v2164_v29, 1  ;;  %v9461_v8 = vld [vmem:[#allocation24_spill] sm:$0xff]  ;;  %v9462_v39 = vld [vmem:[#allocation25_spill] sm:$0xff] }
 0x55c   :  { %7549 = vpow2.f32 %v4629_v4  ;;  %v4630_v55 = vmul.f32 -1.442695, %v2172_v16  ;;  %v9463_v16 = vld [vmem:[#allocation26_spill] sm:$0xff] }
 0x55e   :  { %7551 = vpow2.f32 %v4630_v55  ;;  %v9464_v55 = vld [vmem:[#allocation27_spill] sm:$0xff] }
 0x566   :  { %v7550_v18 = vpop.eup %7549 }
 0x567   :  { %v2168_v61 = vadd.f32 1.0, %v7550_v18  ;;  %v9465_v18 = vld [vmem:[#allocation28_spill] sm:$0xff] }
 0x568   :  { %v7552_v47 = vpop.eup %7551 }
 0x569   :  { %7553 = vrcp.f32 %v2168_v61  ;;  %v2177_v11 = vadd.f32 1.0, %v7552_v47  ;;  %v9466_v61 = vld [vmem:[#allocation29_spill] sm:$0xff]  ;;  %v9467_v47 = vld [vmem:[#allocation30_spill] sm:$0xff] }
 0x56b   :  { %7555 = vrcp.f32 %v2177_v11  ;;  %v9468_v11 = vld [vmem:[#allocation31_spill] sm:$0xff] }
 0x573   :  { %v7554_v17 = vpop.eup %7553 }
 0x574   :  { %v2180_v24 = vmul.f32 %v7554_v17, %v2132_v5  ;;  %v9458_v5 = vld [vmem:[#allocation21_spill] sm:$0xff]  ;;  %v9469_v17 = vld [vmem:[#allocation32_spill] sm:$0xff] }
 0x575   :  { %v7556_v57 = vpop.eup %7555 }
 0x576   :  { %v2184_v30 = vadd.f32 %v2182_v6, %v2180_v24  ;;  %v2186_v45 = vsub.f32 1.0, %v7556_v57  ;;  %v2188_v29 = vmul.f32 %v7556_v57, %v8457_v26  ;;  %v9456_v26 = vld [vmem:[#allocation19_spill] sm:$0xff]  ;;  %v9457_v24 = vld [vmem:[#allocation20_spill] sm:$0xff]  ;;  %v9459_v6 = vld [vmem:[#allocation22_spill] sm:$0xff] }
 0x577   :  { %v9471_v57 = vld [vmem:[#allocation34_spill] sm:$0xff] }
 0x578   :  { %7557 = vtanh.f32 %v2184_v30  ;;  %v9470_v30 = vld [vmem:[#allocation33_spill] sm:$0xff] }
 0x582   :  { %v7558_v14 = vpop.eup %7557 }
 0x583   :  { %v2187_v28 = vmul.f32 %v7558_v14, %v2186_v45  ;;  %v9472_v45 = vld [vmem:[#allocation35_spill] sm:$0xff]  ;;  %v9473_v14 = vld [vmem:[#allocation36_spill] sm:$0xff] }
 0x585   :  { %v8584_v4 = vadd.f32 %v2188_v29, %v2187_v28  ;;  %v9474_v28 = vld [vmem:[#allocation37_spill] sm:$0xff]  ;;  %v9475_v29 = vld [vmem:[#allocation38_spill] sm:$0xff] }
 0x587   :  { %2255 = vmatmul.mubr.f32.vlgmr.msra.gmra.mrb[16].mxu0 %v8584_v4  ;;  %5509 = vmatmul.mubr.f32.vlgmr.msra.gmra.mrb[22].mxu1 %v8584_v4 }
 0x588   :  { %6676 = vmatpush1.bf16.msra.mxu0 %v8132_v3  ;;  %6707 = vmatpush3.bf16.msra.mxu1 %v9376_v2 }
 0x589   :  { %6678 = vmatprep.subr.bf16.mxu0 %v9377_v54  ;;  %6708 = vmatprep.subr.bf16.mxu1 %v9348_v56 }
 0x58a   :  { %2395 = vmatprep.mubr.f32.mxu0 %v9350_v1  ;;  %5543 = vmatprep.mubr.msk.f32.mxu1 %vm7801_vm0, %v9350_v1 }
 0x58c   :  { %6680 = vmatpush1.bf16.msra.mxu0 %v9378_v51  ;;  %6710 = vmatpush3.bf16.msra.mxu1 %v9379_v35 }
 0x58d   :  { %6682 = vmatprep.subr.bf16.mxu0 %v9380_v0  ;;  %6711 = vmatprep.subr.bf16.mxu1 %v9348_v56 }
 0x590   :  { %6684 = vmatpush1.bf16.msra.mxu0 %v9381_v10  ;;  %6713 = vmatpush3.bf16.msra.mxu1 %v9382_v12 }
 0x591   :  { %6686 = vmatprep.subr.bf16.mxu0 %v9383_v44  ;;  %6714 = vmatprep.subr.bf16.mxu1 %v9348_v56 }
 0x594   :  { %6688 = vmatpush1.bf16.msra.mxu0 %v9384_v53  ;;  %6716 = vmatpush3.bf16.msra.mxu1 %v9385_v7 }
 0x595   :  { %6690 = vmatprep.subr.bf16.mxu0 %v9386_v60  ;;  %6717 = vmatprep.subr.bf16.mxu1 %v9348_v56 }
 0x598   :  { %6692 = vmatpush1.bf16.msra.mxu0 %v8177_v9  ;;  %6719 = vmatpush3.bf16.msra.mxu1 %v8179_v63 }
 0x599   :  { %6694 = vmatprep.subr.bf16.mxu0 %v9387_v13  ;;  %6720 = vmatprep.subr.bf16.mxu1 %v9348_v56 }
 0x59c   :  { %6696 = vmatpush1.bf16.msra.mxu0 %v9388_v38  ;;  %6722 = vmatpush3.bf16.msra.mxu1 %v8189_v21 }
 0x59d   :  { %6698 = vmatprep.subr.bf16.mxu0 %v8193_v27  ;;  %6723 = vmatprep.subr.bf16.mxu1 %v9348_v56 }
 0x5a0   :  { %6700 = vmatpush1.bf16.msra.mxu0 %v8197_v62  ;;  %6725 = vmatpush3.bf16.msra.mxu1 %v8199_v46 }
 0x5a1   :  { %6702 = vmatprep.subr.bf16.mxu0 %v8203_v19  ;;  %6726 = vmatprep.subr.bf16.mxu1 %v9348_v56 }
 0x5a4   :  { %6704 = vmatpush1.bf16.msra.mxu0 %v8207_v36  ;;  %6728 = vmatpush3.bf16.msra.mxu1 %v8209_v33 }
 0x5a5   :  { %6730 = vmatprep.subr.bf16.mxu0 %v7922_v15  ;;  %6761 = vmatprep.subr.bf16.mxu1 %v9348_v56 }
 0x5a7   :  { %2396 = vmatmul.mubr.f32.vlgmr.msra.gmra.mrb[16].mxu0 %v8581_v37  ;;  %5544 = vmatmul.mubr.f32.vlgmr.msra.gmra.mrb[24].mxu1 %v8581_v37 }
 0x5a8   :  { %6732 = vmatpush1.bf16.msra.mxu0 %v7924_v22  ;;  %6763 = vmatpush3.bf16.msra.mxu1 %v7926_v23 }
 0x5a9   :  { %6734 = vmatprep.subr.bf16.mxu0 %v7930_v25  ;;  %6764 = vmatprep.subr.bf16.mxu1 %v9348_v56 }
 0x5aa   :  { %2557 = vmatprep.mubr.f32.mxu0 %v9350_v1  ;;  %5578 = vmatprep.mubr.msk.f32.mxu1 %vm7801_vm0, %v9350_v1 }
 0x5ac   :  { %6736 = vmatpush1.bf16.msra.mxu0 %v7934_v31  ;;  %6766 = vmatpush3.bf16.msra.mxu1 %v7936_v32 }
 0x5ad   :  { %6738 = vmatprep.subr.bf16.mxu0 %v7940_v34  ;;  %6767 = vmatprep.subr.bf16.mxu1 %v9348_v56 }
 0x5b0   :  { %6740 = vmatpush1.bf16.msra.mxu0 %v7947_v40  ;;  %6769 = vmatpush3.bf16.msra.mxu1 %v7949_v41 }
 0x5b1   :  { %6742 = vmatprep.subr.bf16.mxu0 %v7953_v43  ;;  %6770 = vmatprep.subr.bf16.mxu1 %v9348_v56 }
 0x5b4   :  { %6744 = vmatpush1.bf16.msra.mxu0 %v7957_v49  ;;  %6772 = vmatpush3.bf16.msra.mxu1 %v7959_v50 }
 0x5b5   :  { %6746 = vmatprep.subr.bf16.mxu0 %v7963_v52  ;;  %6773 = vmatprep.subr.bf16.mxu1 %v9348_v56 }
 0x5b8   :  { %6748 = vmatpush1.bf16.msra.mxu0 %v7967_v58  ;;  %6775 = vmatpush3.bf16.msra.mxu1 %v7969_v59 }
 0x5b9   :  { %6750 = vmatprep.subr.bf16.mxu0 %v9456_v26  ;;  %6776 = vmatprep.subr.bf16.mxu1 %v9348_v56 }
 0x5bc   :  { %6752 = vmatpush1.bf16.msra.mxu0 %v9457_v24  ;;  %6778 = vmatpush3.bf16.msra.mxu1 %v9458_v5 }
 0x5bd   :  { %6754 = vmatprep.subr.bf16.mxu0 %v9459_v6  ;;  %6779 = vmatprep.subr.bf16.mxu1 %v9348_v56  ;;  %v9492_v6 = vld [vmem:[#allocation54_spill] sm:$0xff] }
 0x5c0   :  { %6756 = vmatpush1.bf16.msra.mxu0 %v9460_v20  ;;  %6781 = vmatpush3.bf16.msra.mxu1 %v9461_v8 }
 0x5c1   :  { %6758 = vmatprep.subr.bf16.mxu0 %v9462_v39  ;;  %6782 = vmatprep.subr.bf16.mxu1 %v9348_v56 }
 0x5c4   :  { %6760 = vmatpush1.bf16.msra.mxu0 %v9463_v16  ;;  %6784 = vmatpush3.bf16.msra.mxu1 %v9464_v55 }
 0x5c5   :  { %6786 = vmatprep.subr.bf16.mxu0 %v9465_v18  ;;  %6817 = vmatprep.subr.bf16.mxu1 %v9348_v56  ;;  %v9490_v18 = vld [vmem:[#allocation53_spill] sm:$0xff] }
 0x5c7   :  { %2558 = vmatmul.mubr.f32.vlgmr.msra.gmra.mrb[18].mxu0 %v8584_v4  ;;  %5579 = vmatmul.mubr.f32.vlgmr.msra.gmra.mrb[26].mxu1 %v8584_v4 }
 0x5c8   :  { %6788 = vmatpush1.bf16.msra.mxu0 %v9466_v61  ;;  %6819 = vmatpush3.bf16.msra.mxu1 %v9467_v47  ;;  %v9477_v47 = vld [vmem:[#allocation40_spill] sm:$0xff] }
 0x5c9   :  { %6790 = vmatprep.subr.bf16.mxu0 %v9468_v11  ;;  %6820 = vmatprep.subr.bf16.mxu1 %v9348_v56  ;;  %v9476_v11 = vld [vmem:[#allocation39_spill] sm:$0xff] }
 0x5ca   :  { %2753 = vmatprep.mubr.f32.mxu0 %v9350_v1  ;;  %5613 = vmatprep.mubr.msk.f32.mxu1 %vm7801_vm0, %v9350_v1 }
 0x5cc   :  { %6792 = vmatpush1.bf16.msra.mxu0 %v9469_v17  ;;  %6822 = vmatpush3.bf16.msra.mxu1 %v9470_v30  ;;  %v9478_v30 = vld [vmem:[#allocation41_spill] sm:$0xff]  ;;  %v9480_v17 = vld [vmem:[#allocation43_spill] sm:$0xff] }
 0x5cd   :  { %6794 = vmatprep.subr.bf16.mxu0 %v9471_v57  ;;  %6823 = vmatprep.subr.bf16.mxu1 %v9348_v56  ;;  %v9479_v57 = vld [vmem:[#allocation42_spill] sm:$0xff] }
 0x5d0   :  { %6796 = vmatpush1.bf16.msra.mxu0 %v9472_v45  ;;  %6825 = vmatpush3.bf16.msra.mxu1 %v9473_v14  ;;  %v9481_v14 = vld [vmem:[#allocation44_spill] sm:$0xff]  ;;  %v9483_v45 = vld [vmem:[#allocation46_spill] sm:$0xff] }
 0x5d1   :  { %6798 = vmatprep.subr.bf16.mxu0 %v9474_v28  ;;  %6826 = vmatprep.subr.bf16.mxu1 %v9348_v56  ;;  %v9482_v28 = vld [vmem:[#allocation45_spill] sm:$0xff] }
 0x5d4   :  { %6800 = vmatpush1.bf16.msra.mxu0 %v9475_v29  ;;  %6828 = vmatpush3.bf16.msra.mxu1 %v9476_v11  ;;  %v9484_v11 = vld [vmem:[#allocation47_spill] sm:$0xff]  ;;  %v9486_v29 = vld [vmem:[#allocation49_spill] sm:$0xff] }
 0x5d5   :  { %6802 = vmatprep.subr.bf16.mxu0 %v9477_v47  ;;  %6829 = vmatprep.subr.bf16.mxu1 %v9348_v56  ;;  %v9485_v47 = vld [vmem:[#allocation48_spill] sm:$0xff] }
 0x5d8   :  { %6804 = vmatpush1.bf16.msra.mxu0 %v9478_v30  ;;  %6831 = vmatpush3.bf16.msra.mxu1 %v9479_v57  ;;  %v9487_v57 = vld [vmem:[#allocation50_spill] sm:$0xff]  ;;  %v9489_v30 = vld [vmem:[#allocation52_spill] sm:$0xff] }
 0x5d9   :  { %6806 = vmatprep.subr.bf16.mxu0 %v9480_v17  ;;  %6832 = vmatprep.subr.bf16.mxu1 %v9348_v56  ;;  %v9488_v17 = vld [vmem:[#allocation51_spill] sm:$0xff] }
 0x5dc   :  { %6808 = vmatpush1.bf16.msra.mxu0 %v9481_v14  ;;  %6834 = vmatpush3.bf16.msra.mxu1 %v9482_v28 }
 0x5dd   :  { %6810 = vmatprep.subr.bf16.mxu0 %v9483_v45  ;;  %6835 = vmatprep.subr.bf16.mxu1 %v9348_v56 }
 0x5e0   :  { %6812 = vmatpush1.bf16.msra.mxu0 %v9484_v11  ;;  %6837 = vmatpush3.bf16.msra.mxu1 %v9485_v47 }
 0x5e1   :  { %6814 = vmatprep.subr.bf16.mxu0 %v9486_v29  ;;  %6838 = vmatprep.subr.bf16.mxu1 %v9348_v56  ;;  %v9491_v29 = vld [vmem:[#allocation55_spill] sm:$0xff] }
 0x5e4   :  { %6816 = vmatpush1.bf16.msra.mxu0 %v9487_v57  ;;  %6840 = vmatpush3.bf16.msra.mxu1 %v9488_v17 }
 0x5e5   :  { %6842 = vmatprep.subr.bf16.mxu0 %v9489_v30  ;;  %6873 = vmatprep.subr.bf16.mxu1 %v9348_v56 }
 0x65a   :  { %v2327_v28 = vpop.f32.mrb[22].mxu1 }
 0x65b   :  { %v5510_v45 = vpop.f32.mrb[23].mxu1  ;;  %v2328_v24 = vadd.f32 %v2327_v28, %v8316_v42 }
 0x67a   :  { %v2397_v14 = vpop.f32.mrb[16].mxu0  ;;  %v2468_v61 = vpop.f32.mrb[24].mxu1 }
 0x67b   :  { %v7438_v11 = vadd.f32 %v9490_v18, %v2397_v14  ;;  %v2399_v55 = vpop.f32.mrb[17].mxu0  ;;  %v5545_v47 = vpop.f32.mrb[25].mxu1  ;;  %v2469_v5 = vadd.f32 %v2468_v61, %v9492_v6  ;;  %v9495_v18 = vld [vmem:[#allocation59_spill] sm:$0xff] }
 0x67c   :  { %v7440_v39 = vadd.f32 %v9491_v29, %v2399_v55  ;;  %v9493_v55 = vld [vmem:[#allocation56_spill] sm:$0xff] }
 0x67d   :  { %v4631_v16 = vmul.f32 -1.442695, %v7438_v11 }
 0x67e   :  { %v4632_v8 = vmul.f32 -1.442695, %v7440_v39 }
 0x67f   :  { %7559 = vpow2.f32 %v4631_v16 }
 0x680   :  { %7561 = vpow2.f32 %v4632_v8 }
 0x689   :  { %v7560_v57 = vpop.eup %7559 }
 0x68a   :  { %v2477_v17 = vadd.f32 1.0, %v7560_v57  ;;  %v7562_v30 = vpop.eup %7561 }
 0x68b   :  { %v2483_v20 = vadd.f32 1.0, %v7562_v30 }
 0x68c   :  { %7563 = vrcp.f32 %v2477_v17  ;;  %v9494_v17 = vld [vmem:[#allocation58_spill] sm:$0xff] }
 0x68d   :  { %7565 = vrcp.f32 %v2483_v20 }
 0x696   :  { %v7564_v45 = vpop.eup %7563 }
 0x697   :  { %v2486_v26 = vmul.f32 %v7564_v45, %v2469_v5  ;;  %v7566_v28 = vpop.eup %7565  ;;  %v2635_v45 = vld [vmem:[#allocation2 + $0x4] ss:$8 sm:$0x7] }
 0x699   :  { %v2487_v14 = vadd.f32 %v2486_v26, %v2328_v24  ;;  %v2489_v24 = vsub.f32 1.0, %v7566_v28 }
 0x69a   :  { %v2559_v47 = vpop.f32.mrb[18].mxu0  ;;  %v2630_v11 = vpop.f32.mrb[26].mxu1 }
 0x69b   :  { %7567 = vtanh.f32 %v2487_v14  ;;  %v2560_v16 = vadd.f32 %v2559_v47, %v9493_v55  ;;  %v2561_v39 = vpop.f32.mrb[19].mxu0  ;;  %v5580_v8 = vpop.f32.mrb[27].mxu1  ;;  %v2631_v57 = vadd.f32 %v2630_v11, %v9373_v48 }
 0x69c   :  { %v2562_v29 = vadd.f32 %v2561_v39, %v9494_v17  ;;  %v2491_v8 = vmul.f32 %v7566_v28, %v8581_v37  ;;  %v2681_v17 = vrot.slane %v2635_v45, 2 }
 0x69d   :  { %v2653_v61 = vrot.slane %v2631_v57, %v9495_v18 }
 0x69e   :  { %v2639_v30 = vcombine.low %v2560_v16, %v2562_v29 }
 0x6a0   :  { %v2646_v6 = vrot.slane %v2639_v30, %v9495_v18 }
 0x6a2   :  { %v2654_v5 = vcombine.low %v2646_v6, %v2653_v61 }
 0x6a4   :  { %v2661_v26 = vrot.slane %v2654_v5, %v9495_v18 }
 0x6a5   :  { %v7568_v20 = vpop.eup %7567 }
 0x6a6   :  { %v2663_v14 = vadd.f32 %v2661_v26, %v2635_v45  ;;  %v2490_v47 = vmul.f32 %v7568_v20, %v2489_v24  ;;  %v9500_v45 = vld [vmem:[#allocation23_spill] sm:$0xff] }
 0x6a8   :  { %v4633_v55 = vmul.f32 -1.442695, %v2663_v14  ;;  %v8708_v11 = vadd.f32 %v2491_v8, %v2490_v47  ;;  %v2671_v39 = vrot.slane %v2663_v14, 1  ;;  %v9501_v47 = vld [vmem:[#allocation24_spill] sm:$0xff]  ;;  %v9502_v8 = vld [vmem:[#allocation25_spill] sm:$0xff] }
 0x6aa   :  { %7569 = vpow2.f32 %v4633_v55  ;;  %v4634_v29 = vmul.f32 -1.442695, %v2671_v39  ;;  %v9503_v39 = vld [vmem:[#allocation26_spill] sm:$0xff] }
 0x6ac   :  { %7571 = vpow2.f32 %v4634_v29  ;;  %v9504_v29 = vld [vmem:[#allocation27_spill] sm:$0xff] }
 0x6b4   :  { %v7570_v16 = vpop.eup %7569 }
 0x6b5   :  { %v2667_v30 = vadd.f32 1.0, %v7570_v16  ;;  %v9505_v16 = vld [vmem:[#allocation28_spill] sm:$0xff] }
 0x6b6   :  { %v7572_v6 = vpop.eup %7571 }
 0x6b7   :  { %7573 = vrcp.f32 %v2667_v30  ;;  %v2676_v61 = vadd.f32 1.0, %v7572_v6  ;;  %v9506_v30 = vld [vmem:[#allocation29_spill] sm:$0xff]  ;;  %v9507_v6 = vld [vmem:[#allocation30_spill] sm:$0xff] }
 0x6b9   :  { %7575 = vrcp.f32 %v2676_v61  ;;  %v9508_v61 = vld [vmem:[#allocation31_spill] sm:$0xff] }
 0x6c1   :  { %v7574_v5 = vpop.eup %7573 }
 0x6c2   :  { %v2679_v18 = vmul.f32 %v7574_v5, %v2631_v57  ;;  %v9498_v57 = vld [vmem:[#allocation21_spill] sm:$0xff]  ;;  %v9509_v5 = vld [vmem:[#allocation32_spill] sm:$0xff] }
 0x6c3   :  { %v7576_v24 = vpop.eup %7575 }
 0x6c4   :  { %v2683_v26 = vadd.f32 %v2681_v17, %v2679_v18  ;;  %v2685_v37 = vsub.f32 1.0, %v7576_v24  ;;  %v2687_v14 = vmul.f32 %v7576_v24, %v8584_v4  ;;  %v9496_v4 = vld [vmem:[#allocation19_spill] sm:$0xff]  ;;  %v9497_v18 = vld [vmem:[#allocation20_spill] sm:$0xff]  ;;  %v9499_v17 = vld [vmem:[#allocation22_spill] sm:$0xff] }
 0x6c5   :  { %v9511_v24 = vld [vmem:[#allocation34_spill] sm:$0xff] }
 0x6c6   :  { %7577 = vtanh.f32 %v2683_v26  ;;  %v9510_v26 = vld [vmem:[#allocation33_spill] sm:$0xff] }
 0x6d0   :  { %v7578_v28 = vpop.eup %7577 }
 0x6d1   :  { %v2686_v20 = vmul.f32 %v7578_v28, %v2685_v37  ;;  %v9512_v37 = vld [vmem:[#allocation35_spill] sm:$0xff]  ;;  %v9513_v28 = vld [vmem:[#allocation36_spill] sm:$0xff] }
 0x6d3   :  { %v8711_v55 = vadd.f32 %v2687_v14, %v2686_v20  ;;  %v9514_v20 = vld [vmem:[#allocation37_spill] sm:$0xff]  ;;  %v9515_v14 = vld [vmem:[#allocation38_spill] sm:$0xff] }
 0x6d5   :  { %2754 = vmatmul.mubr.f32.vlgmr.msra.gmra.mrb[20].mxu0 %v8711_v55  ;;  %5614 = vmatmul.mubr.f32.vlgmr.msra.gmra.mrb[28].mxu1 %v8711_v55 }
 0x6d6   :  { %6844 = vmatpush1.bf16.msra.mxu0 %v8132_v3  ;;  %6875 = vmatpush3.bf16.msra.mxu1 %v9376_v2 }
 0x6d7   :  { %6846 = vmatprep.subr.bf16.mxu0 %v9377_v54  ;;  %6876 = vmatprep.subr.bf16.mxu1 %v9348_v56 }
 0x6d8   :  { %2894 = vmatprep.mubr.f32.mxu0 %v9350_v1  ;;  %5648 = vmatprep.mubr.msk.f32.mxu1 %vm7801_vm0, %v9350_v1 }
 0x6da   :  { %6848 = vmatpush1.bf16.msra.mxu0 %v9378_v51  ;;  %6878 = vmatpush3.bf16.msra.mxu1 %v9379_v35 }
 0x6db   :  { %6850 = vmatprep.subr.bf16.mxu0 %v9380_v0  ;;  %6879 = vmatprep.subr.bf16.mxu1 %v9348_v56 }
 0x6de   :  { %6852 = vmatpush1.bf16.msra.mxu0 %v9381_v10  ;;  %6881 = vmatpush3.bf16.msra.mxu1 %v9382_v12 }
 0x6df   :  { %6854 = vmatprep.subr.bf16.mxu0 %v9383_v44  ;;  %6882 = vmatprep.subr.bf16.mxu1 %v9348_v56 }
 0x6e2   :  { %6856 = vmatpush1.bf16.msra.mxu0 %v9384_v53  ;;  %6884 = vmatpush3.bf16.msra.mxu1 %v9385_v7 }
 0x6e3   :  { %6858 = vmatprep.subr.bf16.mxu0 %v9386_v60  ;;  %6885 = vmatprep.subr.bf16.mxu1 %v9348_v56 }
 0x6e6   :  { %6860 = vmatpush1.bf16.msra.mxu0 %v8177_v9  ;;  %6887 = vmatpush3.bf16.msra.mxu1 %v8179_v63 }
 0x6e7   :  { %6862 = vmatprep.subr.bf16.mxu0 %v9387_v13  ;;  %6888 = vmatprep.subr.bf16.mxu1 %v9348_v56 }
 0x6ea   :  { %6864 = vmatpush1.bf16.msra.mxu0 %v9388_v38  ;;  %6890 = vmatpush3.bf16.msra.mxu1 %v8189_v21 }
 0x6eb   :  { %6866 = vmatprep.subr.bf16.mxu0 %v8193_v27  ;;  %6891 = vmatprep.subr.bf16.mxu1 %v9348_v56 }
 0x6ee   :  { %6868 = vmatpush1.bf16.msra.mxu0 %v8197_v62  ;;  %6893 = vmatpush3.bf16.msra.mxu1 %v8199_v46 }
 0x6ef   :  { %6870 = vmatprep.subr.bf16.mxu0 %v8203_v19  ;;  %6894 = vmatprep.subr.bf16.mxu1 %v9348_v56 }
 0x6f2   :  { %6872 = vmatpush1.bf16.msra.mxu0 %v8207_v36  ;;  %6896 = vmatpush3.bf16.msra.mxu1 %v8209_v33 }
 0x6f3   :  { %6898 = vmatprep.subr.bf16.mxu0 %v7922_v15  ;;  %6929 = vmatprep.subr.bf16.mxu1 %v9348_v56 }
 0x6f5   :  { %2895 = vmatmul.mubr.f32.vlgmr.msra.gmra.mrb[20].mxu0 %v8708_v11  ;;  %5649 = vmatmul.mubr.f32.vlgmr.msra.gmra.mrb[30].mxu1 %v8708_v11 }
 0x6f6   :  { %6900 = vmatpush1.bf16.msra.mxu0 %v7924_v22  ;;  %6931 = vmatpush3.bf16.msra.mxu1 %v7926_v23 }
 0x6f7   :  { %6902 = vmatprep.subr.bf16.mxu0 %v7930_v25  ;;  %6932 = vmatprep.subr.bf16.mxu1 %v9348_v56 }
 0x6f8   :  { %3056 = vmatprep.mubr.f32.mxu0 %v9350_v1  ;;  %5683 = vmatprep.mubr.msk.f32.mxu1 %vm7801_vm0, %v9350_v1 }
 0x6fa   :  { %6904 = vmatpush1.bf16.msra.mxu0 %v7934_v31  ;;  %6934 = vmatpush3.bf16.msra.mxu1 %v7936_v32 }
 0x6fb   :  { %6906 = vmatprep.subr.bf16.mxu0 %v7940_v34  ;;  %6935 = vmatprep.subr.bf16.mxu1 %v9348_v56 }
 0x6fe   :  { %6908 = vmatpush1.bf16.msra.mxu0 %v7947_v40  ;;  %6937 = vmatpush3.bf16.msra.mxu1 %v7949_v41 }
 0x6ff   :  { %6910 = vmatprep.subr.bf16.mxu0 %v7953_v43  ;;  %6938 = vmatprep.subr.bf16.mxu1 %v9348_v56 }
 0x702   :  { %6912 = vmatpush1.bf16.msra.mxu0 %v7957_v49  ;;  %6940 = vmatpush3.bf16.msra.mxu1 %v7959_v50 }
 0x703   :  { %6914 = vmatprep.subr.bf16.mxu0 %v7963_v52  ;;  %6941 = vmatprep.subr.bf16.mxu1 %v9348_v56 }
 0x706   :  { %6916 = vmatpush1.bf16.msra.mxu0 %v7967_v58  ;;  %6943 = vmatpush3.bf16.msra.mxu1 %v7969_v59 }
 0x707   :  { %6918 = vmatprep.subr.bf16.mxu0 %v9496_v4  ;;  %6944 = vmatprep.subr.bf16.mxu1 %v9348_v56 }
 0x70a   :  { %6920 = vmatpush1.bf16.msra.mxu0 %v9497_v18  ;;  %6946 = vmatpush3.bf16.msra.mxu1 %v9498_v57 }
 0x70b   :  { %6922 = vmatprep.subr.bf16.mxu0 %v9499_v17  ;;  %6947 = vmatprep.subr.bf16.mxu1 %v9348_v56  ;;  %v9532_v17 = vld [vmem:[#allocation54_spill] sm:$0xff] }
 0x70e   :  { %6924 = vmatpush1.bf16.msra.mxu0 %v9500_v45  ;;  %6949 = vmatpush3.bf16.msra.mxu1 %v9501_v47 }
 0x70f   :  { %6926 = vmatprep.subr.bf16.mxu0 %v9502_v8  ;;  %6950 = vmatprep.subr.bf16.mxu1 %v9348_v56 }
 0x712   :  { %6928 = vmatpush1.bf16.msra.mxu0 %v9503_v39  ;;  %6952 = vmatpush3.bf16.msra.mxu1 %v9504_v29 }
 0x713   :  { %6954 = vmatprep.subr.bf16.mxu0 %v9505_v16  ;;  %6985 = vmatprep.subr.bf16.mxu1 %v9348_v56  ;;  %v9530_v16 = vld [vmem:[#allocation53_spill] sm:$0xff] }
 0x715   :  { %3057 = vmatmul.mubr.f32.vlgmr.msra.gmra.mrb[22].mxu0 %v8711_v55  ;;  %5684 = vmatmul.mubr.f32.vlgmr.msra.gmra.mrb[32].mxu1 %v8711_v55 }
 0x716   :  { %6956 = vmatpush1.bf16.msra.mxu0 %v9506_v30  ;;  %6987 = vmatpush3.bf16.msra.mxu1 %v9507_v6  ;;  %v9517_v6 = vld [vmem:[#allocation40_spill] sm:$0xff] }
 0x717   :  { %6958 = vmatprep.subr.bf16.mxu0 %v9508_v61  ;;  %6988 = vmatprep.subr.bf16.mxu1 %v9348_v56  ;;  %v9516_v61 = vld [vmem:[#allocation39_spill] sm:$0xff] }
 0x718   :  { %3252 = vmatprep.mubr.f32.mxu0 %v9350_v1  ;;  %5718 = vmatprep.mubr.msk.f32.mxu1 %vm7801_vm0, %v9350_v1 }
 0x71a   :  { %6960 = vmatpush1.bf16.msra.mxu0 %v9509_v5  ;;  %6990 = vmatpush3.bf16.msra.mxu1 %v9510_v26  ;;  %v9518_v26 = vld [vmem:[#allocation41_spill] sm:$0xff]  ;;  %v9520_v5 = vld [vmem:[#allocation43_spill] sm:$0xff] }
 0x71b   :  { %6962 = vmatprep.subr.bf16.mxu0 %v9511_v24  ;;  %6991 = vmatprep.subr.bf16.mxu1 %v9348_v56  ;;  %v9519_v24 = vld [vmem:[#allocation42_spill] sm:$0xff] }
 0x71e   :  { %6964 = vmatpush1.bf16.msra.mxu0 %v9512_v37  ;;  %6993 = vmatpush3.bf16.msra.mxu1 %v9513_v28  ;;  %v9521_v28 = vld [vmem:[#allocation44_spill] sm:$0xff]  ;;  %v9523_v37 = vld [vmem:[#allocation46_spill] sm:$0xff] }
 0x71f   :  { %6966 = vmatprep.subr.bf16.mxu0 %v9514_v20  ;;  %6994 = vmatprep.subr.bf16.mxu1 %v9348_v56  ;;  %v9522_v20 = vld [vmem:[#allocation45_spill] sm:$0xff] }
 0x722   :  { %6968 = vmatpush1.bf16.msra.mxu0 %v9515_v14  ;;  %6996 = vmatpush3.bf16.msra.mxu1 %v9516_v61  ;;  %v9524_v61 = vld [vmem:[#allocation47_spill] sm:$0xff]  ;;  %v9526_v14 = vld [vmem:[#allocation49_spill] sm:$0xff] }
 0x723   :  { %6970 = vmatprep.subr.bf16.mxu0 %v9517_v6  ;;  %6997 = vmatprep.subr.bf16.mxu1 %v9348_v56  ;;  %v9525_v6 = vld [vmem:[#allocation48_spill] sm:$0xff] }
 0x726   :  { %6972 = vmatpush1.bf16.msra.mxu0 %v9518_v26  ;;  %6999 = vmatpush3.bf16.msra.mxu1 %v9519_v24  ;;  %v9527_v24 = vld [vmem:[#allocation50_spill] sm:$0xff]  ;;  %v9529_v26 = vld [vmem:[#allocation52_spill] sm:$0xff] }
 0x727   :  { %6974 = vmatprep.subr.bf16.mxu0 %v9520_v5  ;;  %7000 = vmatprep.subr.bf16.mxu1 %v9348_v56  ;;  %v9528_v5 = vld [vmem:[#allocation51_spill] sm:$0xff] }
 0x72a   :  { %6976 = vmatpush1.bf16.msra.mxu0 %v9521_v28  ;;  %7002 = vmatpush3.bf16.msra.mxu1 %v9522_v20 }
 0x72b   :  { %6978 = vmatprep.subr.bf16.mxu0 %v9523_v37  ;;  %7003 = vmatprep.subr.bf16.mxu1 %v9348_v56 }
 0x72e   :  { %6980 = vmatpush1.bf16.msra.mxu0 %v9524_v61  ;;  %7005 = vmatpush3.bf16.msra.mxu1 %v9525_v6 }
 0x72f   :  { %6982 = vmatprep.subr.bf16.mxu0 %v9526_v14  ;;  %7006 = vmatprep.subr.bf16.mxu1 %v9348_v56  ;;  %v9531_v14 = vld [vmem:[#allocation55_spill] sm:$0xff] }
 0x732   :  { %6984 = vmatpush1.bf16.msra.mxu0 %v9527_v24  ;;  %7008 = vmatpush3.bf16.msra.mxu1 %v9528_v5 }
 0x733   :  { %7010 = vmatprep.subr.bf16.mxu0 %v9529_v26  ;;  %7041 = vmatprep.subr.bf16.mxu1 %v9348_v56 }
 0x7a8   :  { %v2826_v20 = vpop.f32.mrb[28].mxu1 }
 0x7a9   :  { %v5615_v37 = vpop.f32.mrb[29].mxu1  ;;  %v2827_v18 = vadd.f32 %v2826_v20, %v8316_v42 }
 0x7c8   :  { %v2896_v28 = vpop.f32.mrb[20].mxu0  ;;  %v2967_v30 = vpop.f32.mrb[30].mxu1 }
 0x7c9   :  { %v7442_v61 = vadd.f32 %v9530_v16, %v2896_v28  ;;  %v2898_v29 = vpop.f32.mrb[21].mxu0  ;;  %v5650_v6 = vpop.f32.mrb[31].mxu1  ;;  %v2968_v57 = vadd.f32 %v2967_v30, %v9532_v17  ;;  %v9535_v16 = vld [vmem:[#allocation59_spill] sm:$0xff] }
 0x7ca   :  { %v7444_v8 = vadd.f32 %v9531_v14, %v2898_v29  ;;  %v9533_v29 = vld [vmem:[#allocation56_spill] sm:$0xff] }
 0x7cb   :  { %v4635_v39 = vmul.f32 -1.442695, %v7442_v61 }
 0x7cc   :  { %v4636_v47 = vmul.f32 -1.442695, %v7444_v8 }
 0x7cd   :  { %7579 = vpow2.f32 %v4635_v39 }
 0x7ce   :  { %7581 = vpow2.f32 %v4636_v47 }
 0x7d7   :  { %v7580_v24 = vpop.eup %7579 }
 0x7d8   :  { %v2976_v5 = vadd.f32 1.0, %v7580_v24  ;;  %v7582_v26 = vpop.eup %7581 }
 0x7d9   :  { %v2982_v45 = vadd.f32 1.0, %v7582_v26 }
 0x7da   :  { %7583 = vrcp.f32 %v2976_v5  ;;  %v9534_v5 = vld [vmem:[#allocation58_spill] sm:$0xff] }
 0x7db   :  { %7585 = vrcp.f32 %v2982_v45 }
 0x7e4   :  { %v7584_v37 = vpop.eup %7583 }
 0x7e5   :  { %v2985_v4 = vmul.f32 %v7584_v37, %v2968_v57  ;;  %v7586_v20 = vpop.eup %7585  ;;  %v3134_v37 = vld [vmem:[#allocation2 + $0x5] ss:$8 sm:$0x7] }
 0x7e7   :  { %v2986_v28 = vadd.f32 %v2985_v4, %v2827_v18  ;;  %v2988_v18 = vsub.f32 1.0, %v7586_v20 }
 0x7e8   :  { %v3058_v6 = vpop.f32.mrb[22].mxu0  ;;  %v3129_v61 = vpop.f32.mrb[32].mxu1 }
 0x7e9   :  { %7587 = vtanh.f32 %v2986_v28  ;;  %v3059_v39 = vadd.f32 %v3058_v6, %v9533_v29  ;;  %v3060_v8 = vpop.f32.mrb[23].mxu0  ;;  %v5685_v47 = vpop.f32.mrb[33].mxu1  ;;  %v3130_v24 = vadd.f32 %v3129_v61, %v9373_v48 }
 0x7ea   :  { %v3061_v14 = vadd.f32 %v3060_v8, %v9534_v5  ;;  %v2990_v47 = vmul.f32 %v7586_v20, %v8708_v11  ;;  %v3180_v5 = vrot.slane %v3134_v37, 2 }
 0x7eb   :  { %v3152_v30 = vrot.slane %v3130_v24, %v9535_v16 }
 0x7ec   :  { %v3138_v26 = vcombine.low %v3059_v39, %v3061_v14 }
 0x7ee   :  { %v3145_v17 = vrot.slane %v3138_v26, %v9535_v16 }
 0x7f0   :  { %v3153_v57 = vcombine.low %v3145_v17, %v3152_v30 }
 0x7f2   :  { %v3160_v4 = vrot.slane %v3153_v57, %v9535_v16 }
 0x7f3   :  { %v7588_v45 = vpop.eup %7587 }
 0x7f4   :  { %v3162_v28 = vadd.f32 %v3160_v4, %v3134_v37  ;;  %v2989_v6 = vmul.f32 %v7588_v45, %v2988_v18  ;;  %v9540_v37 = vld [vmem:[#allocation23_spill] sm:$0xff] }
 0x7f6   :  { %v4637_v29 = vmul.f32 -1.442695, %v3162_v28  ;;  %v8835_v61 = vadd.f32 %v2990_v47, %v2989_v6  ;;  %v3170_v8 = vrot.slane %v3162_v28, 1  ;;  %v9541_v6 = vld [vmem:[#allocation24_spill] sm:$0xff]  ;;  %v9542_v47 = vld [vmem:[#allocation25_spill] sm:$0xff] }
 0x7f8   :  { %7589 = vpow2.f32 %v4637_v29  ;;  %v4638_v14 = vmul.f32 -1.442695, %v3170_v8  ;;  %v9543_v8 = vld [vmem:[#allocation26_spill] sm:$0xff] }
 0x7fa   :  { %7591 = vpow2.f32 %v4638_v14  ;;  %v9544_v14 = vld [vmem:[#allocation27_spill] sm:$0xff] }
 0x802   :  { %v7590_v39 = vpop.eup %7589 }
 0x803   :  { %v3166_v26 = vadd.f32 1.0, %v7590_v39  ;;  %v9545_v39 = vld [vmem:[#allocation28_spill] sm:$0xff] }
 0x804   :  { %v7592_v17 = vpop.eup %7591 }
 0x805   :  { %7593 = vrcp.f32 %v3166_v26  ;;  %v3175_v30 = vadd.f32 1.0, %v7592_v17  ;;  %v9546_v26 = vld [vmem:[#allocation29_spill] sm:$0xff]  ;;  %v9547_v17 = vld [vmem:[#allocation30_spill] sm:$0xff] }
 0x807   :  { %7595 = vrcp.f32 %v3175_v30  ;;  %v9548_v30 = vld [vmem:[#allocation31_spill] sm:$0xff] }
 0x80f   :  { %v7594_v57 = vpop.eup %7593 }
 0x810   :  { %v3178_v16 = vmul.f32 %v7594_v57, %v3130_v24  ;;  %v9538_v24 = vld [vmem:[#allocation21_spill] sm:$0xff]  ;;  %v9549_v57 = vld [vmem:[#allocation32_spill] sm:$0xff] }
 0x811   :  { %v7596_v18 = vpop.eup %7595 }
 0x812   :  { %v3182_v4 = vadd.f32 %v3180_v5, %v3178_v16  ;;  %v3184_v11 = vsub.f32 1.0, %v7596_v18  ;;  %v3186_v28 = vmul.f32 %v7596_v18, %v8711_v55  ;;  %v9536_v55 = vld [vmem:[#allocation19_spill] sm:$0xff]  ;;  %v9537_v16 = vld [vmem:[#allocation20_spill] sm:$0xff]  ;;  %v9539_v5 = vld [vmem:[#allocation22_spill] sm:$0xff] }
 0x813   :  { %v9551_v18 = vld [vmem:[#allocation34_spill] sm:$0xff] }
 0x814   :  { %7597 = vtanh.f32 %v3182_v4  ;;  %v9550_v4 = vld [vmem:[#allocation33_spill] sm:$0xff] }
 0x81e   :  { %v7598_v20 = vpop.eup %7597 }
 0x81f   :  { %v3185_v45 = vmul.f32 %v7598_v20, %v3184_v11  ;;  %v9552_v11 = vld [vmem:[#allocation35_spill] sm:$0xff]  ;;  %v9553_v20 = vld [vmem:[#allocation36_spill] sm:$0xff] }
 0x821   :  { %v8838_v29 = vadd.f32 %v3186_v28, %v3185_v45  ;;  %v9554_v45 = vld [vmem:[#allocation37_spill] sm:$0xff]  ;;  %v9555_v28 = vld [vmem:[#allocation38_spill] sm:$0xff] }
 0x823   :  { %3253 = vmatmul.mubr.f32.vlgmr.msra.gmra.mrb[24].mxu0 %v8838_v29  ;;  %5719 = vmatmul.mubr.f32.vlgmr.msra.gmra.mrb[34].mxu1 %v8838_v29 }
 0x824   :  { %7012 = vmatpush1.bf16.msra.mxu0 %v8132_v3  ;;  %7043 = vmatpush3.bf16.msra.mxu1 %v9376_v2 }
 0x825   :  { %7014 = vmatprep.subr.bf16.mxu0 %v9377_v54  ;;  %7044 = vmatprep.subr.bf16.mxu1 %v9348_v56 }
 0x826   :  { %3393 = vmatprep.mubr.f32.mxu0 %v9350_v1  ;;  %5753 = vmatprep.mubr.msk.f32.mxu1 %vm7801_vm0, %v9350_v1 }
 0x828   :  { %7016 = vmatpush1.bf16.msra.mxu0 %v9378_v51  ;;  %7046 = vmatpush3.bf16.msra.mxu1 %v9379_v35 }
 0x829   :  { %7018 = vmatprep.subr.bf16.mxu0 %v9380_v0  ;;  %7047 = vmatprep.subr.bf16.mxu1 %v9348_v56 }
 0x82c   :  { %7020 = vmatpush1.bf16.msra.mxu0 %v9381_v10  ;;  %7049 = vmatpush3.bf16.msra.mxu1 %v9382_v12 }
 0x82d   :  { %7022 = vmatprep.subr.bf16.mxu0 %v9383_v44  ;;  %7050 = vmatprep.subr.bf16.mxu1 %v9348_v56 }
 0x830   :  { %7024 = vmatpush1.bf16.msra.mxu0 %v9384_v53  ;;  %7052 = vmatpush3.bf16.msra.mxu1 %v9385_v7 }
 0x831   :  { %7026 = vmatprep.subr.bf16.mxu0 %v9386_v60  ;;  %7053 = vmatprep.subr.bf16.mxu1 %v9348_v56 }
 0x834   :  { %7028 = vmatpush1.bf16.msra.mxu0 %v8177_v9  ;;  %7055 = vmatpush3.bf16.msra.mxu1 %v8179_v63 }
 0x835   :  { %7030 = vmatprep.subr.bf16.mxu0 %v9387_v13  ;;  %7056 = vmatprep.subr.bf16.mxu1 %v9348_v56 }
 0x838   :  { %7032 = vmatpush1.bf16.msra.mxu0 %v9388_v38  ;;  %7058 = vmatpush3.bf16.msra.mxu1 %v8189_v21 }
 0x839   :  { %7034 = vmatprep.subr.bf16.mxu0 %v8193_v27  ;;  %7059 = vmatprep.subr.bf16.mxu1 %v9348_v56 }
 0x83c   :  { %7036 = vmatpush1.bf16.msra.mxu0 %v8197_v62  ;;  %7061 = vmatpush3.bf16.msra.mxu1 %v8199_v46 }
 0x83d   :  { %7038 = vmatprep.subr.bf16.mxu0 %v8203_v19  ;;  %7062 = vmatprep.subr.bf16.mxu1 %v9348_v56 }
 0x840   :  { %7040 = vmatpush1.bf16.msra.mxu0 %v8207_v36  ;;  %7064 = vmatpush3.bf16.msra.mxu1 %v8209_v33 }
 0x841   :  { %7066 = vmatprep.subr.bf16.mxu0 %v7922_v15  ;;  %7097 = vmatprep.subr.bf16.mxu1 %v9348_v56 }
 0x843   :  { %3394 = vmatmul.mubr.f32.vlgmr.msra.gmra.mrb[24].mxu0 %v8835_v61  ;;  %5754 = vmatmul.mubr.f32.vlgmr.msra.gmra.mrb[36].mxu1 %v8835_v61 }
 0x844   :  { %7068 = vmatpush1.bf16.msra.mxu0 %v7924_v22  ;;  %7099 = vmatpush3.bf16.msra.mxu1 %v7926_v23 }
 0x845   :  { %7070 = vmatprep.subr.bf16.mxu0 %v7930_v25  ;;  %7100 = vmatprep.subr.bf16.mxu1 %v9348_v56 }
 0x846   :  { %3555 = vmatprep.mubr.f32.mxu0 %v9350_v1  ;;  %5788 = vmatprep.mubr.msk.f32.mxu1 %vm7801_vm0, %v9350_v1 }
 0x848   :  { %7072 = vmatpush1.bf16.msra.mxu0 %v7934_v31  ;;  %7102 = vmatpush3.bf16.msra.mxu1 %v7936_v32 }
 0x849   :  { %7074 = vmatprep.subr.bf16.mxu0 %v7940_v34  ;;  %7103 = vmatprep.subr.bf16.mxu1 %v9348_v56 }
 0x84c   :  { %7076 = vmatpush1.bf16.msra.mxu0 %v7947_v40  ;;  %7105 = vmatpush3.bf16.msra.mxu1 %v7949_v41 }
 0x84d   :  { %7078 = vmatprep.subr.bf16.mxu0 %v7953_v43  ;;  %7106 = vmatprep.subr.bf16.mxu1 %v9348_v56 }
 0x850   :  { %7080 = vmatpush1.bf16.msra.mxu0 %v7957_v49  ;;  %7108 = vmatpush3.bf16.msra.mxu1 %v7959_v50 }
 0x851   :  { %7082 = vmatprep.subr.bf16.mxu0 %v7963_v52  ;;  %7109 = vmatprep.subr.bf16.mxu1 %v9348_v56 }
 0x854   :  { %7084 = vmatpush1.bf16.msra.mxu0 %v7967_v58  ;;  %7111 = vmatpush3.bf16.msra.mxu1 %v7969_v59 }
 0x855   :  { %7086 = vmatprep.subr.bf16.mxu0 %v9536_v55  ;;  %7112 = vmatprep.subr.bf16.mxu1 %v9348_v56 }
 0x858   :  { %7088 = vmatpush1.bf16.msra.mxu0 %v9537_v16  ;;  %7114 = vmatpush3.bf16.msra.mxu1 %v9538_v24 }
 0x859   :  { %7090 = vmatprep.subr.bf16.mxu0 %v9539_v5  ;;  %7115 = vmatprep.subr.bf16.mxu1 %v9348_v56  ;;  %v9572_v5 = vld [vmem:[#allocation54_spill] sm:$0xff] }
 0x85c   :  { %7092 = vmatpush1.bf16.msra.mxu0 %v9540_v37  ;;  %7117 = vmatpush3.bf16.msra.mxu1 %v9541_v6 }
 0x85d   :  { %7094 = vmatprep.subr.bf16.mxu0 %v9542_v47  ;;  %7118 = vmatprep.subr.bf16.mxu1 %v9348_v56 }
 0x860   :  { %7096 = vmatpush1.bf16.msra.mxu0 %v9543_v8  ;;  %7120 = vmatpush3.bf16.msra.mxu1 %v9544_v14 }
 0x861   :  { %7122 = vmatprep.subr.bf16.mxu0 %v9545_v39  ;;  %7153 = vmatprep.subr.bf16.mxu1 %v9348_v56  ;;  %v9570_v39 = vld [vmem:[#allocation53_spill] sm:$0xff] }
 0x863   :  { %3556 = vmatmul.mubr.f32.vlgmr.msra.gmra.mrb[26].mxu0 %v8838_v29  ;;  %5789 = vmatmul.mubr.f32.vlgmr.msra.gmra.mrb[38].mxu1 %v8838_v29 }
 0x864   :  { %7124 = vmatpush1.bf16.msra.mxu0 %v9546_v26  ;;  %7155 = vmatpush3.bf16.msra.mxu1 %v9547_v17  ;;  %v9557_v17 = vld [vmem:[#allocation40_spill] sm:$0xff] }
 0x865   :  { %7126 = vmatprep.subr.bf16.mxu0 %v9548_v30  ;;  %7156 = vmatprep.subr.bf16.mxu1 %v9348_v56  ;;  %v9556_v30 = vld [vmem:[#allocation39_spill] sm:$0xff] }
 0x866   :  { %3751 = vmatprep.mubr.f32.mxu0 %v9350_v1  ;;  %5823 = vmatprep.mubr.msk.f32.mxu1 %vm7801_vm0, %v9350_v1 }
 0x868   :  { %7128 = vmatpush1.bf16.msra.mxu0 %v9549_v57  ;;  %7158 = vmatpush3.bf16.msra.mxu1 %v9550_v4  ;;  %v9558_v4 = vld [vmem:[#allocation41_spill] sm:$0xff]  ;;  %v9560_v57 = vld [vmem:[#allocation43_spill] sm:$0xff] }
 0x869   :  { %7130 = vmatprep.subr.bf16.mxu0 %v9551_v18  ;;  %7159 = vmatprep.subr.bf16.mxu1 %v9348_v56  ;;  %v9559_v18 = vld [vmem:[#allocation42_spill] sm:$0xff] }
 0x86c   :  { %7132 = vmatpush1.bf16.msra.mxu0 %v9552_v11  ;;  %7161 = vmatpush3.bf16.msra.mxu1 %v9553_v20  ;;  %v9561_v20 = vld [vmem:[#allocation44_spill] sm:$0xff]  ;;  %v9563_v11 = vld [vmem:[#allocation46_spill] sm:$0xff] }
 0x86d   :  { %7134 = vmatprep.subr.bf16.mxu0 %v9554_v45  ;;  %7162 = vmatprep.subr.bf16.mxu1 %v9348_v56  ;;  %v9562_v45 = vld [vmem:[#allocation45_spill] sm:$0xff] }
 0x870   :  { %7136 = vmatpush1.bf16.msra.mxu0 %v9555_v28  ;;  %7164 = vmatpush3.bf16.msra.mxu1 %v9556_v30  ;;  %v9564_v30 = vld [vmem:[#allocation47_spill] sm:$0xff]  ;;  %v9566_v28 = vld [vmem:[#allocation49_spill] sm:$0xff] }
 0x871   :  { %7138 = vmatprep.subr.bf16.mxu0 %v9557_v17  ;;  %7165 = vmatprep.subr.bf16.mxu1 %v9348_v56  ;;  %v9565_v17 = vld [vmem:[#allocation48_spill] sm:$0xff] }
 0x874   :  { %7140 = vmatpush1.bf16.msra.mxu0 %v9558_v4  ;;  %7167 = vmatpush3.bf16.msra.mxu1 %v9559_v18  ;;  %v9567_v18 = vld [vmem:[#allocation50_spill] sm:$0xff]  ;;  %v9569_v4 = vld [vmem:[#allocation52_spill] sm:$0xff] }
 0x875   :  { %7142 = vmatprep.subr.bf16.mxu0 %v9560_v57  ;;  %7168 = vmatprep.subr.bf16.mxu1 %v9348_v56  ;;  %v9568_v57 = vld [vmem:[#allocation51_spill] sm:$0xff] }
 0x878   :  { %7144 = vmatpush1.bf16.msra.mxu0 %v9561_v20  ;;  %7170 = vmatpush3.bf16.msra.mxu1 %v9562_v45 }
 0x879   :  { %7146 = vmatprep.subr.bf16.mxu0 %v9563_v11  ;;  %7171 = vmatprep.subr.bf16.mxu1 %v9348_v56 }
 0x87c   :  { %7148 = vmatpush1.bf16.msra.mxu0 %v9564_v30  ;;  %7173 = vmatpush3.bf16.msra.mxu1 %v9565_v17 }
 0x87d   :  { %7150 = vmatprep.subr.bf16.mxu0 %v9566_v28  ;;  %7174 = vmatprep.subr.bf16.mxu1 %v9348_v56  ;;  %v9571_v28 = vld [vmem:[#allocation55_spill] sm:$0xff] }
 0x880   :  { %7152 = vmatpush1.bf16.msra.mxu0 %v9567_v18  ;;  %7176 = vmatpush3.bf16.msra.mxu1 %v9568_v57 }
 0x881   :  { %7178 = vmatprep.subr.bf16.mxu0 %v9569_v4  ;;  %7209 = vmatprep.subr.bf16.mxu1 %v9348_v56 }
 0x8f6   :  { %v3325_v45 = vpop.f32.mrb[34].mxu1 }
 0x8f7   :  { %v5720_v11 = vpop.f32.mrb[35].mxu1  ;;  %v3326_v16 = vadd.f32 %v3325_v45, %v8316_v42 }
 0x916   :  { %v3395_v20 = vpop.f32.mrb[24].mxu0  ;;  %v3466_v26 = vpop.f32.mrb[36].mxu1 }
 0x917   :  { %v7446_v30 = vadd.f32 %v9570_v39, %v3395_v20  ;;  %v3397_v14 = vpop.f32.mrb[25].mxu0  ;;  %v5755_v17 = vpop.f32.mrb[37].mxu1  ;;  %v3467_v24 = vadd.f32 %v3466_v26, %v9572_v5  ;;  %v9575_v39 = vld [vmem:[#allocation59_spill] sm:$0xff] }
 0x918   :  { %v7448_v47 = vadd.f32 %v9571_v28, %v3397_v14  ;;  %v9573_v14 = vld [vmem:[#allocation56_spill] sm:$0xff] }
 0x919   :  { %v4639_v8 = vmul.f32 -1.442695, %v7446_v30 }
 0x91a   :  { %v4640_v6 = vmul.f32 -1.442695, %v7448_v47 }
 0x91b   :  { %7599 = vpow2.f32 %v4639_v8 }
 0x91c   :  { %7601 = vpow2.f32 %v4640_v6 }
 0x925   :  { %v7600_v18 = vpop.eup %7599 }
 0x926   :  { %v3475_v57 = vadd.f32 1.0, %v7600_v18  ;;  %v7602_v4 = vpop.eup %7601 }
 0x927   :  { %v3481_v37 = vadd.f32 1.0, %v7602_v4 }
 0x928   :  { %7603 = vrcp.f32 %v3475_v57  ;;  %v9574_v57 = vld [vmem:[#allocation58_spill] sm:$0xff] }
 0x929   :  { %7605 = vrcp.f32 %v3481_v37 }
 0x932   :  { %v7604_v11 = vpop.eup %7603 }
 0x933   :  { %v3484_v55 = vmul.f32 %v7604_v11, %v3467_v24  ;;  %v7606_v45 = vpop.eup %7605  ;;  %v3633_v11 = vld [vmem:[#allocation2 + $0x6] ss:$8 sm:$0x7] }
 0x935   :  { %v3485_v20 = vadd.f32 %v3484_v55, %v3326_v16  ;;  %v3487_v16 = vsub.f32 1.0, %v7606_v45 }
 0x936   :  { %v3557_v17 = vpop.f32.mrb[26].mxu0  ;;  %v3628_v30 = vpop.f32.mrb[38].mxu1 }
 0x937   :  { %7607 = vtanh.f32 %v3485_v20  ;;  %v3558_v8 = vadd.f32 %v3557_v17, %v9573_v14  ;;  %v3559_v47 = vpop.f32.mrb[27].mxu0  ;;  %v5790_v6 = vpop.f32.mrb[39].mxu1  ;;  %v3629_v18 = vadd.f32 %v3628_v30, %v9373_v48 }
 0x938   :  { %v3560_v28 = vadd.f32 %v3559_v47, %v9574_v57  ;;  %v3489_v6 = vmul.f32 %v7606_v45, %v8835_v61  ;;  %v3679_v57 = vrot.slane %v3633_v11, 2 }
 0x939   :  { %v3651_v26 = vrot.slane %v3629_v18, %v9575_v39 }
 0x93a   :  { %v3637_v4 = vcombine.low %v3558_v8, %v3560_v28 }
 0x93c   :  { %v3644_v5 = vrot.slane %v3637_v4, %v9575_v39 }
 0x93e   :  { %v3652_v24 = vcombine.low %v3644_v5, %v3651_v26 }
 0x940   :  { %v3659_v55 = vrot.slane %v3652_v24, %v9575_v39 }
 0x941   :  { %v7608_v37 = vpop.eup %7607 }
 0x942   :  { %v3661_v20 = vadd.f32 %v3659_v55, %v3633_v11  ;;  %v3488_v17 = vmul.f32 %v7608_v37, %v3487_v16  ;;  %v9595_v11 = vld [vmem:[#allocation38_spill] sm:$0xff] }
 0x944   :  { %v4641_v14 = vmul.f32 -1.442695, %v3661_v20  ;;  %v8962_v30 = vadd.f32 %v3489_v6, %v3488_v17  ;;  %v3669_v47 = vrot.slane %v3661_v20, 1  ;;  %v9596_v17 = vld [vmem:[#allocation39_spill] sm:$0xff]  ;;  %v9597_v6 = vld [vmem:[#allocation40_spill] sm:$0xff] }
 0x946   :  { %7609 = vpow2.f32 %v4641_v14  ;;  %v4642_v28 = vmul.f32 -1.442695, %v3669_v47  ;;  %v9598_v47 = vld [vmem:[#allocation41_spill] sm:$0xff] }
 0x948   :  { %7611 = vpow2.f32 %v4642_v28  ;;  %v9599_v28 = vld [vmem:[#allocation42_spill] sm:$0xff] }
 0x950   :  { %v7610_v8 = vpop.eup %7609 }
 0x951   :  { %v3665_v4 = vadd.f32 1.0, %v7610_v8  ;;  %v9600_v8 = vld [vmem:[#allocation43_spill] sm:$0xff] }
 0x952   :  { %v7612_v5 = vpop.eup %7611 }
 0x953   :  { %7613 = vrcp.f32 %v3665_v4  ;;  %v3674_v26 = vadd.f32 1.0, %v7612_v5  ;;  %v9601_v4 = vld [vmem:[#allocation44_spill] sm:$0xff]  ;;  %v9602_v5 = vld [vmem:[#allocation45_spill] sm:$0xff] }
 0x955   :  { %7615 = vrcp.f32 %v3674_v26  ;;  %v9603_v26 = vld [vmem:[#allocation46_spill] sm:$0xff] }
 0x95d   :  { %v7614_v24 = vpop.eup %7613 }
 0x95e   :  { %v3677_v39 = vmul.f32 %v7614_v24, %v3629_v18  ;;  %v9593_v18 = vld [vmem:[#allocation36_spill] sm:$0xff]  ;;  %v9604_v24 = vld [vmem:[#allocation47_spill] sm:$0xff] }
 0x95f   :  { %v7616_v16 = vpop.eup %7615 }
 0x960   :  { %v3681_v55 = vadd.f32 %v3679_v57, %v3677_v39  ;;  %v3683_v61 = vsub.f32 1.0, %v7616_v16  ;;  %v3685_v20 = vmul.f32 %v7616_v16, %v8838_v29  ;;  %v9591_v29 = vld [vmem:[#allocation34_spill] sm:$0xff]  ;;  %v9592_v39 = vld [vmem:[#allocation35_spill] sm:$0xff]  ;;  %v9594_v57 = vld [vmem:[#allocation37_spill] sm:$0xff] }
 0x961   :  { %v9606_v16 = vld [vmem:[#allocation49_spill] sm:$0xff] }
 0x962   :  { %7617 = vtanh.f32 %v3681_v55  ;;  %v9605_v55 = vld [vmem:[#allocation48_spill] sm:$0xff] }
 0x96c   :  { %v7618_v45 = vpop.eup %7617 }
 0x96d   :  { %v3684_v37 = vmul.f32 %v7618_v45, %v3683_v61  ;;  %v9607_v61 = vld [vmem:[#allocation50_spill] sm:$0xff]  ;;  %v9608_v45 = vld [vmem:[#allocation51_spill] sm:$0xff] }
 0x96f   :  { %v8965_v14 = vadd.f32 %v3685_v20, %v3684_v37  ;;  %v9609_v37 = vld [vmem:[#allocation52_spill] sm:$0xff] }
 0x971   :  { %3752 = vmatmul.mubr.f32.vlgmr.msra.gmra.mrb[28].mxu0 %v8965_v14  ;;  %5824 = vmatmul.mubr.f32.vlgmr.msra.gmra.mrb[40].mxu1 %v8965_v14 }
 0x972   :  { %7180 = vmatpush1.bf16.msra.mxu0 %v8132_v3  ;;  %7211 = vmatpush3.bf16.msra.mxu1 %v9376_v2 }
 0x973   :  { %7182 = vmatprep.subr.bf16.mxu0 %v9377_v54  ;;  %7212 = vmatprep.subr.bf16.mxu1 %v9348_v56 }
 0x974   :  { %3892 = vmatprep.mubr.f32.mxu0 %v9350_v1  ;;  %5858 = vmatprep.mubr.msk.f32.mxu1 %vm7801_vm0, %v9350_v1 }
 0x976   :  { %7184 = vmatpush1.bf16.msra.mxu0 %v9378_v51  ;;  %7214 = vmatpush3.bf16.msra.mxu1 %v9379_v35 }
 0x977   :  { %7186 = vmatprep.subr.bf16.mxu0 %v9380_v0  ;;  %7215 = vmatprep.subr.bf16.mxu1 %v9348_v56 }
 0x97a   :  { %7188 = vmatpush1.bf16.msra.mxu0 %v9381_v10  ;;  %7217 = vmatpush3.bf16.msra.mxu1 %v9382_v12 }
 0x97b   :  { %7190 = vmatprep.subr.bf16.mxu0 %v9383_v44  ;;  %7218 = vmatprep.subr.bf16.mxu1 %v9348_v56 }
 0x97e   :  { %7192 = vmatpush1.bf16.msra.mxu0 %v9384_v53  ;;  %7220 = vmatpush3.bf16.msra.mxu1 %v9385_v7 }
 0x97f   :  { %7194 = vmatprep.subr.bf16.mxu0 %v9386_v60  ;;  %7221 = vmatprep.subr.bf16.mxu1 %v9348_v56 }
 0x982   :  { %7196 = vmatpush1.bf16.msra.mxu0 %v8177_v9  ;;  %7223 = vmatpush3.bf16.msra.mxu1 %v8179_v63 }
 0x983   :  { %7198 = vmatprep.subr.bf16.mxu0 %v9387_v13  ;;  %7224 = vmatprep.subr.bf16.mxu1 %v9348_v56 }
 0x986   :  { %7200 = vmatpush1.bf16.msra.mxu0 %v9388_v38  ;;  %7226 = vmatpush3.bf16.msra.mxu1 %v8189_v21 }
 0x987   :  { %7202 = vmatprep.subr.bf16.mxu0 %v8193_v27  ;;  %7227 = vmatprep.subr.bf16.mxu1 %v9348_v56 }
 0x98a   :  { %7204 = vmatpush1.bf16.msra.mxu0 %v8197_v62  ;;  %7229 = vmatpush3.bf16.msra.mxu1 %v8199_v46 }
 0x98b   :  { %7206 = vmatprep.subr.bf16.mxu0 %v8203_v19  ;;  %7230 = vmatprep.subr.bf16.mxu1 %v9348_v56 }
 0x98e   :  { %7208 = vmatpush1.bf16.msra.mxu0 %v8207_v36  ;;  %7232 = vmatpush3.bf16.msra.mxu1 %v8209_v33 }
 0x98f   :  { %7234 = vmatprep.subr.bf16.mxu0 %v7922_v15  ;;  %7265 = vmatprep.subr.bf16.mxu1 %v9348_v56  ;;  %v9576_v15 = vld [vmem:[#allocation19_spill] sm:$0xff] }
 0x991   :  { %3893 = vmatmul.mubr.f32.vlgmr.msra.gmra.mrb[28].mxu0 %v8962_v30  ;;  %5859 = vmatmul.mubr.f32.vlgmr.msra.gmra.mrb[42].mxu1 %v8962_v30 }
 0x992   :  { %7236 = vmatpush1.bf16.msra.mxu0 %v7924_v22  ;;  %7267 = vmatpush3.bf16.msra.mxu1 %v7926_v23  ;;  %v9577_v22 = vld [vmem:[#allocation20_spill] sm:$0xff]  ;;  %v9578_v23 = vld [vmem:[#allocation21_spill] sm:$0xff] }
 0x993   :  { %7238 = vmatprep.subr.bf16.mxu0 %v7930_v25  ;;  %7268 = vmatprep.subr.bf16.mxu1 %v9348_v56  ;;  %v9579_v25 = vld [vmem:[#allocation22_spill] sm:$0xff] }
 0x994   :  { %4054 = vmatprep.mubr.f32.mxu0 %v9350_v1  ;;  %5893 = vmatprep.mubr.msk.f32.mxu1 %vm7801_vm0, %v9350_v1 }
 0x996   :  { %7240 = vmatpush1.bf16.msra.mxu0 %v7934_v31  ;;  %7270 = vmatpush3.bf16.msra.mxu1 %v7936_v32  ;;  %v9580_v31 = vld [vmem:[#allocation23_spill] sm:$0xff]  ;;  %v9581_v32 = vld [vmem:[#allocation24_spill] sm:$0xff] }
 0x997   :  { %7242 = vmatprep.subr.bf16.mxu0 %v7940_v34  ;;  %7271 = vmatprep.subr.bf16.mxu1 %v9348_v56  ;;  %v9582_v34 = vld [vmem:[#allocation25_spill] sm:$0xff] }
 0x99a   :  { %7244 = vmatpush1.bf16.msra.mxu0 %v7947_v40  ;;  %7273 = vmatpush3.bf16.msra.mxu1 %v7949_v41  ;;  %v9583_v40 = vld [vmem:[#allocation26_spill] sm:$0xff]  ;;  %v9584_v41 = vld [vmem:[#allocation27_spill] sm:$0xff] }
 0x99b   :  { %7246 = vmatprep.subr.bf16.mxu0 %v7953_v43  ;;  %7274 = vmatprep.subr.bf16.mxu1 %v9348_v56  ;;  %v9585_v43 = vld [vmem:[#allocation28_spill] sm:$0xff] }
 0x99e   :  { %7248 = vmatpush1.bf16.msra.mxu0 %v7957_v49  ;;  %7276 = vmatpush3.bf16.msra.mxu1 %v7959_v50  ;;  %v9586_v49 = vld [vmem:[#allocation29_spill] sm:$0xff]  ;;  %v9587_v50 = vld [vmem:[#allocation30_spill] sm:$0xff] }
 0x99f   :  { %7250 = vmatprep.subr.bf16.mxu0 %v7963_v52  ;;  %7277 = vmatprep.subr.bf16.mxu1 %v9348_v56  ;;  %v9588_v52 = vld [vmem:[#allocation31_spill] sm:$0xff] }
 0x9a2   :  { %7252 = vmatpush1.bf16.msra.mxu0 %v7967_v58  ;;  %7279 = vmatpush3.bf16.msra.mxu1 %v7969_v59  ;;  %v9589_v58 = vld [vmem:[#allocation32_spill] sm:$0xff]  ;;  %v9590_v59 = vld [vmem:[#allocation33_spill] sm:$0xff] }
 0x9a3   :  { %7254 = vmatprep.subr.bf16.mxu0 %v9576_v15  ;;  %7280 = vmatprep.subr.bf16.mxu1 %v9348_v56 }
 0x9a6   :  { %7256 = vmatpush1.bf16.msra.mxu0 %v9577_v22  ;;  %7282 = vmatpush3.bf16.msra.mxu1 %v9578_v23 }
 0x9a7   :  { %7258 = vmatprep.subr.bf16.mxu0 %v9579_v25  ;;  %7283 = vmatprep.subr.bf16.mxu1 %v9348_v56  ;;  %v9610_v25 = vld [vmem:[#allocation53_spill] sm:$0xff] }
 0x9aa   :  { %7260 = vmatpush1.bf16.msra.mxu0 %v9580_v31  ;;  %7285 = vmatpush3.bf16.msra.mxu1 %v9581_v32 }
 0x9ab   :  { %7262 = vmatprep.subr.bf16.mxu0 %v9582_v34  ;;  %7286 = vmatprep.subr.bf16.mxu1 %v9348_v56 }
 0x9ae   :  { %7264 = vmatpush1.bf16.msra.mxu0 %v9583_v40  ;;  %7288 = vmatpush3.bf16.msra.mxu1 %v9584_v41  ;;  %v9611_v41 = vld [vmem:[#allocation55_spill] sm:$0xff] }
 0x9af   :  { %7290 = vmatprep.subr.bf16.mxu0 %v9585_v43  ;;  %7321 = vmatprep.subr.bf16.mxu1 %v9348_v56 }
 0x9b1   :  { %4055 = vmatmul.mubr.f32.vlgmr.msra.gmra.mrb[30].mxu0 %v8965_v14  ;;  %5894 = vmatmul.mubr.f32.vlgmr.msra.gmra.mrb[44].mxu1 %v8965_v14 }
 0x9b2   :  { %7292 = vmatpush1.bf16.msra.mxu0 %v9586_v49  ;;  %7323 = vmatpush3.bf16.msra.mxu1 %v9587_v50 }
 0x9b3   :  { %7294 = vmatprep.subr.bf16.mxu0 %v9588_v52  ;;  %7324 = vmatprep.subr.bf16.mxu1 %v9348_v56 }
 0x9b4   :  { %4250 = vmatprep.mubr.f32.mxu0 %v9350_v1  ;;  %5928 = vmatprep.mubr.msk.f32.mxu1 %vm7801_vm0, %v9350_v1 }
 0x9b6   :  { %7296 = vmatpush1.bf16.msra.mxu0 %v9589_v58  ;;  %7326 = vmatpush3.bf16.msra.mxu1 %v9590_v59 }
 0x9b7   :  { %7298 = vmatprep.subr.bf16.mxu0 %v9591_v29  ;;  %7327 = vmatprep.subr.bf16.mxu1 %v9348_v56  ;;  %v9612_v29 = vld [vmem:[#allocation54_spill] sm:$0xff] }
 0x9ba   :  { %7300 = vmatpush1.bf16.msra.mxu0 %v9592_v39  ;;  %7329 = vmatpush3.bf16.msra.mxu1 %v9593_v18 }
 0x9bb   :  { %7302 = vmatprep.subr.bf16.mxu0 %v9594_v57  ;;  %7330 = vmatprep.subr.bf16.mxu1 %v9348_v56 }
 0x9be   :  { %7304 = vmatpush1.bf16.msra.mxu0 %v9595_v11  ;;  %7332 = vmatpush3.bf16.msra.mxu1 %v9596_v17 }
 0x9bf   :  { %7306 = vmatprep.subr.bf16.mxu0 %v9597_v6  ;;  %7333 = vmatprep.subr.bf16.mxu1 %v9348_v56 }
 0x9c2   :  { %7308 = vmatpush1.bf16.msra.mxu0 %v9598_v47  ;;  %7335 = vmatpush3.bf16.msra.mxu1 %v9599_v28  ;;  %v9613_v28 = vld [vmem:[#allocation56_spill] sm:$0xff] }
 0x9c3   :  { %7310 = vmatprep.subr.bf16.mxu0 %v9600_v8  ;;  %7336 = vmatprep.subr.bf16.mxu1 %v9348_v56 }
 0x9c6   :  { %7312 = vmatpush1.bf16.msra.mxu0 %v9601_v4  ;;  %7338 = vmatpush3.bf16.msra.mxu1 %v9602_v5 }
 0x9c7   :  { %7314 = vmatprep.subr.bf16.mxu0 %v9603_v26  ;;  %7339 = vmatprep.subr.bf16.mxu1 %v9348_v56 }
 0x9ca   :  { %7316 = vmatpush1.bf16.msra.mxu0 %v9604_v24  ;;  %7341 = vmatpush3.bf16.msra.mxu1 %v9605_v55  ;;  %v9614_v24 = vld [vmem:[#allocation58_spill] sm:$0xff] }
 0x9cb   :  { %7318 = vmatprep.subr.bf16.mxu0 %v9606_v16  ;;  %7342 = vmatprep.subr.bf16.mxu1 %v9348_v56 }
 0x9ce   :  { %7320 = vmatpush1.bf16.msra.mxu0 %v9607_v61  ;;  %7344 = vmatpush3.bf16.msra.mxu1 %v9608_v45  ;;  %v9615_v61 = vld [vmem:[#allocation59_spill] sm:$0xff] }
 0x9cf   :  { %7346 = vmatprep.subr.bf16.mxu0 %v9609_v37  ;;  %7377 = vmatprep.subr.bf16.mxu1 %v9348_v56 }
 0xa44   :  { %v3824_v20 = vpop.f32.mrb[40].mxu1 }
 0xa45   :  { %v5825_v15 = vpop.f32.mrb[41].mxu1  ;;  %v3825_v57 = vadd.f32 %v3824_v20, %v8316_v42 }
 0xa64   :  { %v3894_v22 = vpop.f32.mrb[28].mxu0  ;;  %v3965_v23 = vpop.f32.mrb[42].mxu1 }
 0xa65   :  { %v7450_v31 = vadd.f32 %v9610_v25, %v3894_v22  ;;  %v3896_v32 = vpop.f32.mrb[29].mxu0  ;;  %v5860_v34 = vpop.f32.mrb[43].mxu1  ;;  %v3966_v39 = vadd.f32 %v3965_v23, %v9612_v29 }
 0xa66   :  { %v7452_v43 = vadd.f32 %v9611_v41, %v3896_v32  ;;  %v4132_v32 = vld [vmem:[#allocation2 + $0x7] ss:$8 sm:$0x7] }
 0xa67   :  { %v4643_v40 = vmul.f32 -1.442695, %v7450_v31 }
 0xa68   :  { %v4644_v49 = vmul.f32 -1.442695, %v7452_v43 }
 0xa69   :  { %7619 = vpow2.f32 %v4643_v40 }
 0xa6a   :  { %7621 = vpow2.f32 %v4644_v49 }
 0xa73   :  { %v7620_v50 = vpop.eup %7619 }
 0xa74   :  { %v3974_v52 = vadd.f32 1.0, %v7620_v50  ;;  %v7622_v58 = vpop.eup %7621 }
 0xa75   :  { %v3980_v59 = vadd.f32 1.0, %v7622_v58 }
 0xa76   :  { %7623 = vrcp.f32 %v3974_v52 }
 0xa77   :  { %7625 = vrcp.f32 %v3980_v59 }
 0xa80   :  { %v7624_v18 = vpop.eup %7623 }
 0xa81   :  { %v3983_v11 = vmul.f32 %v7624_v18, %v3966_v39  ;;  %v7626_v20 = vpop.eup %7625 }
 0xa82   :  { %v3986_v23 = vsub.f32 1.0, %v7626_v20  ;;  %v3988_v43 = vmul.f32 %v7626_v20, %v8962_v30 }
 0xa83   :  { %v3984_v17 = vadd.f32 %v3983_v11, %v3825_v57 }
 0xa84   :  { %v4056_v6 = vpop.f32.mrb[30].mxu0  ;;  %v4127_v47 = vpop.f32.mrb[44].mxu1 }
 0xa85   :  { %7627 = vtanh.f32 %v3984_v17  ;;  %v4057_v8 = vadd.f32 %v4056_v6, %v9613_v28  ;;  %v4058_v4 = vpop.f32.mrb[31].mxu0  ;;  %v5895_v5 = vpop.f32.mrb[45].mxu1  ;;  %v4128_v26 = vadd.f32 %v4127_v47, %v9373_v48  ;;  %v4178_v17 = vrot.slane %v4132_v32, 2 }
 0xa86   :  { %v4059_v55 = vadd.f32 %v4058_v4, %v9614_v24 }
 0xa87   :  { %v4150_v45 = vrot.slane %v4128_v26, %v9615_v61 }
 0xa88   :  { %v4136_v16 = vcombine.low %v4057_v8, %v4059_v55 }
 0xa8a   :  { %v4143_v37 = vrot.slane %v4136_v16, %v9615_v61 }
 0xa8c   :  { %v4151_v15 = vcombine.low %v4143_v37, %v4150_v45 }
 0xa8e   :  { %v4158_v22 = vrot.slane %v4151_v15, %v9615_v61 }
 0xa8f   :  { %v7628_v31 = vpop.eup %7627 }
 0xa90   :  { %v4160_v34 = vadd.f32 %v4158_v22, %v4132_v32  ;;  %v3987_v40 = vmul.f32 %v7628_v31, %v3986_v23 }
 0xa92   :  { %v4645_v49 = vmul.f32 -1.442695, %v4160_v34  ;;  %v9089_v48 = vadd.f32 %v3988_v43, %v3987_v40  ;;  %v4168_v50 = vrot.slane %v4160_v34, 1 }
 0xa94   :  { %7629 = vpow2.f32 %v4645_v49  ;;  %v4646_v52 = vmul.f32 -1.442695, %v4168_v50 }
 0xa96   :  { %7631 = vpow2.f32 %v4646_v52 }
 0xa9e   :  { %v7630_v58 = vpop.eup %7629 }
 0xa9f   :  { %v4164_v59 = vadd.f32 1.0, %v7630_v58 }
 0xaa0   :  { %v7632_v39 = vpop.eup %7631 }
 0xaa1   :  { %7633 = vrcp.f32 %v4164_v59  ;;  %v4173_v18 = vadd.f32 1.0, %v7632_v39 }
 0xaa3   :  { %7635 = vrcp.f32 %v4173_v18 }
 0xaab   :  { %v7634_v57 = vpop.eup %7633 }
 0xaac   :  { %v4176_v11 = vmul.f32 %v7634_v57, %v4128_v26 }
 0xaad   :  { %v7636_v47 = vpop.eup %7635 }
 0xaae   :  { %v4180_v6 = vadd.f32 %v4178_v17, %v4176_v11  ;;  %v4182_v30 = vsub.f32 1.0, %v7636_v47  ;;  %v4184_v4 = vmul.f32 %v7636_v47, %v8965_v14 }
 0xab0   :  { %7637 = vtanh.f32 %v4180_v6 }
 0xaba   :  { %v7638_v28 = vpop.eup %7637 }
 0xabb   :  { %v4183_v8 = vmul.f32 %v7638_v28, %v4182_v30 }
 0xabd   :  { %v4185_v5 = vadd.f32 %v4184_v4, %v4183_v8 }
 0xabf   :  { %4251 = vmatmul.mubr.f32.vlgmr.msra.gmra.mrb[32].mxu0 %v4185_v5  ;;  %4489 = vst [vmem:[#allocation12] sm:$0x1] %v4185_v5  ;;  %5929 = vmatmul.mubr.f32.vlgmr.msra.gmra.mrb[46].mxu1 %v4185_v5 }
 0xac0   :  { %7348 = vmatpush1.bf16.msra.mxu0 %v8132_v3  ;;  %7379 = vmatpush3.bf16.msra.mxu1 %v9376_v2  ;;  %v4493_v3 = vld [vmem:[#allocation9] sm:$0xff] }
 0xac1   :  { %7350 = vmatprep.subr.bf16.mxu0 %v9377_v54  ;;  %7380 = vmatprep.subr.bf16.mxu1 %v9348_v56  ;;  %v4501_v54 = vld [vmem:[#allocation9 + $0x40] sm:$0xff] }
 0xac2   :  { %4391 = vmatprep.mubr.f32.mxu0 %v9350_v1  ;;  %5963 = vmatprep.mubr.msk.f32.mxu1 %vm7801_vm0, %v9350_v1 }
 0xac4   :  { %7352 = vmatpush1.bf16.msra.mxu0 %v9378_v51  ;;  %7382 = vmatpush3.bf16.msra.mxu1 %v9379_v35  ;;  %v4502_v51 = vld [vmem:[#allocation9 + $0x48] sm:$0xff] }
 0xac5   :  { %7354 = vmatprep.subr.bf16.mxu0 %v9380_v0  ;;  %7383 = vmatprep.subr.bf16.mxu1 %v9348_v56  ;;  %v7414_v35 = vpack.c.bf16 %v4502_v51, %v4501_v54  ;;  %v4503_v0 = vld [vmem:[#allocation9 + $0x50] sm:$0xff] }
 0xac8   :  { %7356 = vmatpush1.bf16.msra.mxu0 %v9381_v10  ;;  %7385 = vmatpush3.bf16.msra.mxu1 %v9382_v12  ;;  %v4504_v10 = vld [vmem:[#allocation9 + $0x58] sm:$0xff] }
 0xac9   :  { %7358 = vmatprep.subr.bf16.mxu0 %v9383_v44  ;;  %7386 = vmatprep.subr.bf16.mxu1 %v9348_v56  ;;  %v7417_v12 = vpack.c.bf16 %v4504_v10, %v4503_v0  ;;  %v4505_v44 = vld [vmem:[#allocation9 + $0x60] sm:$0xff] }
 0xacc   :  { %7360 = vmatpush1.bf16.msra.mxu0 %v9384_v53  ;;  %7388 = vmatpush3.bf16.msra.mxu1 %v9385_v7  ;;  %v4506_v53 = vld [vmem:[#allocation9 + $0x68] sm:$0xff] }
 0xacd   :  { %7362 = vmatprep.subr.bf16.mxu0 %v9386_v60  ;;  %7389 = vmatprep.subr.bf16.mxu1 %v9348_v56  ;;  %v7420_v7 = vpack.c.bf16 %v4506_v53, %v4505_v44  ;;  %v4507_v60 = vld [vmem:[#allocation9 + $0x70] sm:$0xff] }
 0xad0   :  { %7364 = vmatpush1.bf16.msra.mxu0 %v8177_v9  ;;  %7391 = vmatpush3.bf16.msra.mxu1 %v8179_v63  ;;  %v4494_v9 = vld [vmem:[#allocation9 + $0x8] sm:$0xff] }
 0xad1   :  { %7366 = vmatprep.subr.bf16.mxu0 %v9387_v13  ;;  %7392 = vmatprep.subr.bf16.mxu1 %v9348_v56  ;;  %v7402_v63 = vpack.c.bf16 %v4494_v9, %v4493_v3  ;;  %v4508_v13 = vld [vmem:[#allocation9 + $0x78] sm:$0xff] }
 0xad4   :  { %7368 = vmatpush1.bf16.msra.mxu0 %v9388_v38  ;;  %7394 = vmatpush3.bf16.msra.mxu1 %v8189_v21  ;;  %v4495_v21 = vld [vmem:[#allocation9 + $0x10] sm:$0xff]  ;;  %v7423_v38 = vpack.c.bf16 %v4508_v13, %v4507_v60 }
 0xad5   :  { %7370 = vmatprep.subr.bf16.mxu0 %v8193_v27  ;;  %7395 = vmatprep.subr.bf16.mxu1 %v9348_v56  ;;  %v4496_v27 = vld [vmem:[#allocation9 + $0x18] sm:$0xff] }
 0xad8   :  { %7372 = vmatpush1.bf16.msra.mxu0 %v8197_v62  ;;  %7397 = vmatpush3.bf16.msra.mxu1 %v8199_v46  ;;  %v4497_v62 = vld [vmem:[#allocation9 + $0x20] sm:$0xff]  ;;  %v4498_v46 = vld [vmem:[#allocation9 + $0x28] sm:$0xff] }
 0xad9   :  { %7374 = vmatprep.subr.bf16.mxu0 %v8203_v19  ;;  %7398 = vmatprep.subr.bf16.mxu1 %v9348_v56  ;;  %v7408_v19 = vpack.c.bf16 %v4498_v46, %v4497_v62 }
 0xadc   :  { %7376 = vmatpush1.bf16.msra.mxu0 %v8207_v36  ;;  %7400 = vmatpush3.bf16.msra.mxu1 %v8209_v33  ;;  %v7405_v36 = vpack.c.bf16 %v4496_v27, %v4495_v21  ;;  %v4499_v33 = vld [vmem:[#allocation9 + $0x30] sm:$0xff] }
 0xadd   :  { %7401 = vmatprep.subr.bf16.mxu0 %v9348_v56 }
 0xadf   :  { %4392 = vmatmul.mubr.f32.vlgmr.msra.gmra.mrb[32].mxu0 %v9089_v48  ;;  %5964 = vmatmul.mubr.f32.vlgmr.msra.gmra.mrb[48].mxu1 %v9089_v48 }
 0xae0   :  { %5998 = vmatprep.mubr.msk.f32.mxu0 %vm7801_vm0, %v9350_v1  ;;  %7403 = vmatpush3.bf16.msra.mxu0 %v7402_v63  ;;  %v4500_v1 = vld [vmem:[#allocation9 + $0x38] sm:$0xff] }
 0xae1   :  { %7404 = vmatprep.subr.bf16.mxu0 %v9348_v56  ;;  %v7411_v2 = vpack.c.bf16 %v4500_v1, %v4499_v33 }
 0xae4   :  { %7406 = vmatpush3.bf16.msra.mxu0 %v7405_v36 }
 0xae5   :  { %7407 = vmatprep.subr.bf16.mxu0 %v9348_v56 }
 0xae8   :  { %7409 = vmatpush3.bf16.msra.mxu0 %v7408_v19 }
 0xae9   :  { %7410 = vmatprep.subr.bf16.mxu0 %v9348_v56 }
 0xaec   :  { %7412 = vmatpush3.bf16.msra.mxu0 %v7411_v2 }
 0xaed   :  { %7413 = vmatprep.subr.bf16.mxu0 %v9348_v56 }
 0xaf0   :  { %7415 = vmatpush3.bf16.msra.mxu0 %v7414_v35 }
 0xaf1   :  { %7416 = vmatprep.subr.bf16.mxu0 %v9348_v56 }
 0xaf4   :  { %7418 = vmatpush3.bf16.msra.mxu0 %v7417_v12 }
 0xaf5   :  { %7419 = vmatprep.subr.bf16.mxu0 %v9348_v56 }
 0xaf8   :  { %7421 = vmatpush3.bf16.msra.mxu0 %v7420_v7 }
 0xaf9   :  { %7422 = vmatprep.subr.bf16.mxu0 %v9348_v56 }
 0xafc   :  { %7424 = vmatpush3.bf16.msra.mxu0 %v7423_v38 }
 0xb92   :  { %v4323_v14 = vpop.f32.mrb[46].mxu1 }
 0xb93   :  { %v5930_v26 = vpop.f32.mrb[47].mxu1  ;;  %v4324_v40 = vadd.f32 %v4323_v14, %v8316_v42 }
 0xbb2   :  { %v4393_v24 = vpop.f32.mrb[32].mxu0  ;;  %v4464_v55 = vpop.f32.mrb[48].mxu1 }
 0xbb3   :  { %v7454_v16 = vadd.f32 %v9610_v25, %v4393_v24  ;;  %v4395_v61 = vpop.f32.mrb[33].mxu0  ;;  %v5965_v45 = vpop.f32.mrb[49].mxu1  ;;  %v4465_v32 = vadd.f32 %v4464_v55, %v9612_v29 }
 0xbb4   :  { %v7456_v20 = vadd.f32 %v9611_v41, %v4395_v61 }
 0xbb5   :  { %v4647_v37 = vmul.f32 -1.442695, %v7454_v16 }
 0xbb6   :  { %v4648_v15 = vmul.f32 -1.442695, %v7456_v20 }
 0xbb7   :  { %7639 = vpow2.f32 %v4647_v37 }
 0xbb8   :  { %7641 = vpow2.f32 %v4648_v15 }
 0xbc1   :  { %v7640_v22 = vpop.eup %7639 }
 0xbc2   :  { %v4473_v23 = vadd.f32 1.0, %v7640_v22  ;;  %v7642_v31 = vpop.eup %7641 }
 0xbc3   :  { %v4479_v56 = vadd.f32 1.0, %v7642_v31 }
 0xbc4   :  { %7643 = vrcp.f32 %v4473_v23 }
 0xbc5   :  { %7645 = vrcp.f32 %v4479_v56 }
 0xbce   :  { %v7644_v34 = vpop.eup %7643 }
 0xbcf   :  { %v4482_v43 = vmul.f32 %v7644_v34, %v4465_v32  ;;  %v7646_v49 = vpop.eup %7645 }
 0xbd0   :  { %v4485_v50 = vsub.f32 1.0, %v7646_v49  ;;  %v4487_v58 = vmul.f32 %v7646_v49, %v9089_v48 }
 0xbd1   :  { %v4483_v25 = vadd.f32 %v4482_v43, %v4324_v40 }
 0xbd3   :  { %7647 = vtanh.f32 %v4483_v25 }
 0xbdd   :  { %v7648_v41 = vpop.eup %7647 }
 0xbde   :  { %v4486_v52 = vmul.f32 %v7648_v41, %v4485_v50 }
 0xbe0   :  { %v4488_v59 = vadd.f32 %v4487_v58, %v4486_v52 }
 0xbe2   :  { %v4492_v39 = vmax.f32 %v4488_v59, 0.0  ;;  %4491 = vst [vmem:[#allocation12 + $0x1] sm:$0x1] %v4488_v59 }
 0xbe4   :  { %5999 = vmatmul.mubr.f32.vlgmr.msra.gmra.mrb[34].mxu0 %v4492_v39 }
 0xbe5   :  { %7748 = shalt.err (!%p7745_p8)
}
 0xbe6   :  { %s7749_s30 = scalar_lea.hbm %s9178_s9, 32 }
 0xbe7   :  { %p7750_p9 = scmp.ne.s32.totalorder %s9178_s9, %s7749_s30  ;;  %p7753_p10 = scmp.lt.u32.totalorder %s7749_s30, %s9178_s9 }
 0xbe9   :  { %p7755_p11 = pnand %p7753_p10, %p7750_p9 }
 0xbeb   :  { %7758 = shalt.err (!%p7755_p11)
}
 0xbec   :  { %s7804_s10 = smov 16   ;;  %s7805_s14 = smov 1   ;;  %v4509_v42 = vld [vmem:[%s9176_s7] sm:$0x1] }
 0xbed   :  { %4602 = dma.vmem_to_hbm [thread:$0]  %s4597_s5, 32, %s9178_s9, [#allocation13], %s7804_s10, %s7804_s10, %s7805_s14  }
 0xbee   :  { %s7806_s6 = smov [#allocation11]  }
 0xbef   :  { %s4587_s15 = sshll.u32 %s7806_s6, 4  ;;  %s4588_s15 = int_to_ptr.vmem [resolvable:$true] %s4587_s15 }
 0xbf0   :  { %s7759_s16 = scalar_lea.vmem %s4588_s15, 16  ;;  %s7763_s17 = scalar_lea.vmem %s4588_s15, 32 }
 0xbf1   :  { %p7760_p12 = scmp.ne.s32.totalorder %s4588_s15, %s7759_s16  ;;  %p7764_p13 = scmp.lt.s32.totalorder %s4588_s15, %s4588_s15 }
 0xbf2   :  { %p7765_p0 = scmp.lt.s32.totalorder %s7763_s17, %s7759_s16 }
 0xbf4   :  { %p7766_p1 = por %p7765_p0, %p7764_p13 }
 0xbf6   :  { %p7767_p2 = pnand %p7766_p1, %p7760_p12 }
 0xcb7   :  { %v4576_v29 = vpop.f32.mrb[34].mxu0 }
 0xcb8   :  { %v4577_v48 = vadd.f32 %v4576_v29, %v4509_v42  ;;  %v6000_v18 = vpop.f32.mrb[35].mxu0 }
 0xcba   :  { %4580 = vst [vmem:[#allocation11] sm:$0x1] %v4577_v48 }
 0xcbb   :  { %7770 = shalt.err (!%p7767_p2)
}
 0xcbc   :  { %s7771_s21 = scalar_lea.hbm %s9177_s8, 16 }
 0xcbd   :  { %p7772_p3 = scmp.ne.s32.totalorder %s9177_s8, %s7771_s21  ;;  %p7775_p4 = scmp.lt.u32.totalorder %s7771_s21, %s9177_s8 }
 0xcbf   :  { %p7777_p5 = pnand %p7775_p4, %p7772_p3 }
 0xcc1   :  { %7780 = shalt.err (!%p7777_p5)
}
 0xcc2   :  { %4590 = dma.vmem_to_hbm [thread:$0]  %s4588_s15, 16, %s9177_s8, [#allocation5]  }
 0xcc3   :  { %7787 = dma.done.wait [#allocation5], 16  }
 0xcc4   :  { %7788 = vsyncadd [#allocation5], 4294967280 }
 0xcc5   :  { %7789 = dma.done.wait [#allocation13], 32  }
 0xcc6   :  { %7790 = vsyncadd [#allocation13], 4294967264 }
 0xcc7   :  { %4609 = vsyncpa [#allocation4], 1 }
 0xcc8   :  { %4610 = vsyncpa [#allocation7], 1 }
 0xcc9   :  { %4611 = vsyncpa [#allocation10], 1 }
 0xcca   :  { %4612 = vsyncpa [#allocation5], 1 }
 0xccb   :  { %4613 = vsyncpa [#allocation13], 1 }

</bundles_post_ra>
